<compile_context>
chip_gen: v7x
topology: tpu7x:2x2x1
jax: 0.10.0
libtpu: 0.0.40
codegen_flags: <defaults>
</compile_context>

<pallas_src>
import jax
import jax.numpy as jnp
from jax.experimental import pallas as pl
from jax.experimental.pallas import tpu as pltpu

EPS = 1e-5


def bn_relu_conv1x1_kernel(x_ref, scale_ref, shift_ref, w_ref, o_ref):
    # x_ref:     (P, Cin)   f32 activations (same resident block every grid step)
    # scale_ref: (1, Cin)   f32 folded BN scale  = gamma * rsqrt(var + eps)
    # shift_ref: (1, Cin)   f32 folded BN shift  = beta - mean * scale
    # w_ref:     (Cin, TN)  bf16 conv-weight tile in (K, N) layout
    # o_ref:     (P, TN)    f32 output tile
    y = jnp.maximum(x_ref[...] * scale_ref[...] + shift_ref[...], 0.0)
    # 1x1 conv == matmul; canonical (M,K)x(K,N) form feeds the MXU directly.
    o_ref[...] = jnp.dot(
        y.astype(jnp.bfloat16),
        w_ref[...],
        preferred_element_type=jnp.float32,
    )


def prepare_conv_weight(w_oihw):
    """One-time weight prep (call ONCE, outside the jit'd per-call path).

    (Cout, Cin, 1, 1) f32  ->  (Cin, Cout) bf16, ready for (M,K)x(K,N) matmul.
    """
    Cout, Cin = w_oihw.shape[0], w_oihw.shape[1]
    return jnp.asarray(w_oihw).reshape(Cout, Cin).T.astype(jnp.bfloat16)


def _pick_tn(cout: int) -> int:
    """Output-channel tile: 1 grid step on 1-TC chips (v5e/v6e), 2 on v7x."""
    try:
        kind = jax.devices()[0].device_kind.lower()
    except Exception:
        kind = ""
    two_tensorcores = ("v7" in kind) or ("7x" in kind)
    tn = cout // 2 if two_tensorcores else cout
    tn = max(tn, 128)
    while cout % tn != 0 and tn > 128:
        tn //= 2
    return tn


def bn_relu_conv1x1_2d(x2d, gamma, beta, w_kn, *, eps=EPS):
    """Core fused op on channel-last 2-D activations.

    x2d:  (P, Cin) f32   (P = N*H*W, channels lane-major)
    w_kn: (Cin, Cout) bf16, prepared once via prepare_conv_weight.
    Returns (P, Cout) f32.
    """
    P, C = x2d.shape
    Cin_w, Cout = w_kn.shape
    assert Cin_w == C

    tn = _pick_tn(Cout)
    assert Cout % tn == 0

    # Training-mode BatchNorm batch statistics (biased variance), folded into a
    # per-channel affine transform.  Tiny reduction done once here instead of
    # on every grid step inside the kernel.
    gamma_f = gamma.astype(jnp.float32)
    beta_f = beta.astype(jnp.float32)
    mean = jnp.mean(x2d, axis=0)
    var = jnp.mean(jnp.square(x2d - mean[None, :]), axis=0)
    scale = gamma_f * jax.lax.rsqrt(var + eps)
    shift = beta_f - mean * scale
    scale2d = scale.reshape(1, C)
    shift2d = shift.reshape(1, C)

    cost = pl.CostEstimate(
        flops=2 * P * C * Cout,
        transcendentals=0,
        bytes_accessed=(P * C * 4) + (C * Cout * 2) + (P * Cout * 4) + (2 * C * 4),
    )

    out2d = pl.pallas_call(
        bn_relu_conv1x1_kernel,
        out_shape=jax.ShapeDtypeStruct((P, Cout), jnp.float32),
        grid_spec=pltpu.PrefetchScalarGridSpec(
            num_scalar_prefetch=0,
            grid=(Cout // tn,),
            in_specs=[
                pl.BlockSpec((P, C), lambda j: (0, 0)),    # x (resident, reused)
                pl.BlockSpec((1, C), lambda j: (0, 0)),    # folded BN scale
                pl.BlockSpec((1, C), lambda j: (0, 0)),    # folded BN shift
                pl.BlockSpec((C, tn), lambda j: (0, j)),   # weight tile (K, N)
            ],
            out_specs=pl.BlockSpec((P, tn), lambda j: (0, j)),
        ),
        compiler_params=pltpu.CompilerParams(
            dimension_semantics=("parallel",),
        ),
        cost_estimate=cost,
    )(x2d, scale2d, shift2d, w_kn)

    # TODO(synk): for large N*H*W, re-tile over P (grid axis over P with
    # x/out BlockSpecs of (tp, Cin)/(tp, tn), tp a multiple of 8, stats still
    # precomputed here) so the resident activation block stays within v7x's
    # smaller 64 MiB physical / 32 MiB scoped VMEM.
    return out2d


def bn_relu_conv1x1(x_nchw, gamma, beta, w_kn, *, eps=EPS):
    """NCHW wrapper matching the PyTorch module interface.

    NHWC-native callers should use bn_relu_conv1x1_2d directly and skip both
    layout transposes (they are a full HBM round trip each).
    """
    N, C, H, W = x_nchw.shape
    Cout = w_kn.shape[1]
    P = N * H * W

    x2d = jnp.transpose(x_nchw, (0, 2, 3, 1)).reshape(P, C).astype(jnp.float32)
    out2d = bn_relu_conv1x1_2d(x2d, gamma, beta, w_kn, eps=eps)
    return jnp.transpose(out2d.reshape(N, H, W, Cout), (0, 3, 1, 2))


def reference(x_nchw, gamma, beta, w_oihw):
    # Pure-JAX f32 reference of the same forward (training-mode BN).
    mean = jnp.mean(x_nchw, axis=(0, 2, 3), keepdims=True)
    var = jnp.mean((x_nchw - mean) ** 2, axis=(0, 2, 3), keepdims=True)
    y = (x_nchw - mean) * jax.lax.rsqrt(var + EPS)
    y = y * gamma.reshape(1, -1, 1, 1) + beta.reshape(1, -1, 1, 1)
    y = jnp.maximum(y, 0.0)
    w2d = w_oihw.reshape(w_oihw.shape[0], w_oihw.shape[1])  # (Cout, Cin)
    return jnp.einsum("nchw,oc->nohw", y, w2d)


if __name__ == "__main__":
    key = jax.random.PRNGKey(0)
    k_x, k_g, k_b, k_w = jax.random.split(key, 4)

    N, Cin, H, W = 1, 1024, 7, 7
    Cout = 2048

    x = jax.random.normal(k_x, (N, Cin, H, W), dtype=jnp.float32)
    gamma = 1.0 + 0.1 * jax.random.normal(k_g, (Cin,), dtype=jnp.float32)
    beta = 0.1 * jax.random.normal(k_b, (Cin,), dtype=jnp.float32)
    w = 0.02 * jax.random.normal(k_w, (Cout, Cin, 1, 1), dtype=jnp.float32)

    # One-time weight prep: reshape + transpose + bf16 cast happen ONCE here,
    # outside the jit'd per-call path (cached like a model parameter).
    w_kn = jax.block_until_ready(prepare_conv_weight(w))

    fused = jax.jit(bn_relu_conv1x1)
    out = jax.block_until_ready(fused(x, gamma, beta, w_kn))

    ref = jax.block_until_ready(reference(x, gamma, beta, w))
    assert out.shape == (N, Cout, H, W), out.shape
    err = float(jnp.max(jnp.abs(out - ref)))
    # bf16 matmul operands with f32 accumulation over K=1024: expect ~1e-3
    # level max abs error vs. the pure-f32 reference for O(1) outputs.
    assert err < 2e-2, f"max abs err too large: {err}"

    print("KERNEL_OK")
</pallas_src>

<mosaic_0001>
module attributes {stable_mosaic.version = 11 : i64} {
  func.func @bn_relu_conv1x1_kernel(%arg0: i32, %arg1: memref<49x1024xf32, #tpu.memory_space<vmem>>, %arg2: memref<1x1024xf32, #tpu.memory_space<vmem>>, %arg3: memref<1x1024xf32, #tpu.memory_space<vmem>>, %arg4: memref<1024x2048xbf16, #tpu.memory_space<vmem>>, %arg5: memref<49x2048xf32, #tpu.memory_space<vmem>>) attributes {dimension_semantics = [#tpu.dimension_semantics<parallel>], iteration_bounds = array<i64: 1>, scalar_prefetch = 0 : i64, scratch_operands = 0 : i64, tpu.core_type = #tpu.core_type<tc>, window_params = [{pipeline_mode = #tpu.pipeline_mode<synchronous>, transform_indices = @transform_0, window_bounds = array<i64: 49, 1024>}, {pipeline_mode = #tpu.pipeline_mode<synchronous>, transform_indices = @transform_1, window_bounds = array<i64: 1, 1024>}, {pipeline_mode = #tpu.pipeline_mode<synchronous>, transform_indices = @transform_2, window_bounds = array<i64: 1, 1024>}, {transform_indices = @transform_3, window_bounds = array<i64: 1024, 2048>}, {transform_indices = @transform_4, window_bounds = array<i64: 49, 2048>}]} {
    %c0 = arith.constant 0 : index
    %c0_0 = arith.constant 0 : index
    %0 = vector.load %arg1[%c0, %c0_0] : memref<49x1024xf32, #tpu.memory_space<vmem>>, vector<49x1024xf32>
    %c0_1 = arith.constant 0 : index
    %c0_2 = arith.constant 0 : index
    %1 = vector.load %arg2[%c0_1, %c0_2] : memref<1x1024xf32, #tpu.memory_space<vmem>>, vector<1x1024xf32>
    %2 = vector.broadcast %1 : vector<1x1024xf32> to vector<49x1024xf32>
    %3 = arith.mulf %0, %2 : vector<49x1024xf32>
    %c0_3 = arith.constant 0 : index
    %c0_4 = arith.constant 0 : index
    %4 = vector.load %arg3[%c0_3, %c0_4] : memref<1x1024xf32, #tpu.memory_space<vmem>>, vector<1x1024xf32>
    %5 = vector.broadcast %4 : vector<1x1024xf32> to vector<49x1024xf32>
    %6 = arith.addf %3, %5 : vector<49x1024xf32>
    %cst = arith.constant 0.000000e+00 : f32
    %7 = vector.broadcast %cst : f32 to vector<49x1024xf32>
    %8 = arith.maximumf %6, %7 : vector<49x1024xf32>
    %9 = arith.truncf %8 : vector<49x1024xf32> to vector<49x1024xbf16>
    %c0_5 = arith.constant 0 : index
    %c0_6 = arith.constant 0 : index
    %10 = vector.load %arg4[%c0_5, %c0_6] : memref<1024x2048xbf16, #tpu.memory_space<vmem>>, vector<1024x2048xbf16>
    %cst_7 = arith.constant dense<0.000000e+00> : vector<49x2048xf32>
    %11 = tpu.matmul %9, %10, %cst_7 {dimension_numbers = #tpu.dot_dimension_numbers<[1], [0], [0], [1], [0, 0, 1, 1], [], []>} : vector<49x1024xbf16>, vector<1024x2048xbf16>, vector<49x2048xf32> -> vector<49x2048xf32>
    %c0_8 = arith.constant 0 : index
    %c0_9 = arith.constant 0 : index
    %12 = vector.load %arg5[%c0_8, %c0_9] : memref<49x2048xf32, #tpu.memory_space<vmem>>, vector<49x2048xf32>
    tpu.vector_store %arg5[%c0_8, %c0_9], %11 {strides = array<i32>} : memref<49x2048xf32, #tpu.memory_space<vmem>>, vector<49x2048xf32>,
    return
  }
  func.func @transform_0(%arg0: i32) -> (i32, i32) {
    %c0_i32 = arith.constant 0 : i32
    %c0_i32_0 = arith.constant 0 : i32
    %c0_i32_1 = arith.constant 0 : i32
    return %c0_i32, %c0_i32_0 : i32, i32
  }
  func.func @transform_1(%arg0: i32) -> (i32, i32) {
    %c0_i32 = arith.constant 0 : i32
    %c0_i32_0 = arith.constant 0 : i32
    %c0_i32_1 = arith.constant 0 : i32
    return %c0_i32, %c0_i32_0 : i32, i32
  }
  func.func @transform_2(%arg0: i32) -> (i32, i32) {
    %c0_i32 = arith.constant 0 : i32
    %c0_i32_0 = arith.constant 0 : i32
    %c0_i32_1 = arith.constant 0 : i32
    return %c0_i32, %c0_i32_0 : i32, i32
  }
  func.func @transform_3(%arg0: i32) -> (i32, i32) {
    %c0_i32 = arith.constant 0 : i32
    %c0_i32_0 = arith.constant 0 : i32
    return %c0_i32, %arg0 : i32, i32
  }
  func.func @transform_4(%arg0: i32) -> (i32, i32) {
    %c0_i32 = arith.constant 0 : i32
    %c0_i32_0 = arith.constant 0 : i32
    return %c0_i32, %arg0 : i32, i32
  }
}

</mosaic_0001>

<bundles_post_ra>
// kernel: bn_relu_conv1x1.1
= control target key start
LH: loop header
LB: loop body
LE: loop exit
PB: predicated region body
PF: predicated region fallthrough
CT: control target
= control target key end

     0   :  { %9 = vsyncpa [#allocation3], 0  ;;  %s10341_s15 = smov [#allocation2]   ;;  %s11395_s0 = inlined_call_operand.vmem [shape: f32[49,1024], index: 0, kind: input, shape index: {}]   ;;  %s11396_s1 = inlined_call_operand.vmem [shape: f32[1,1024], index: 1, kind: input, shape index: {}]   ;;  %s11397_s2 = inlined_call_operand.vmem [shape: f32[1,1024], index: 2, kind: input, shape index: {}]   ;;  %s11398_s3 = inlined_call_operand.hbm [shape: bf16[1024,2048], index: 3, kind: input, shape index: {}]   ;;  %s11399_s4 = inlined_call_operand.vmem [shape: f32[49,2048], index: 4, kind: output, shape index: {}]  }
   0x1   :  { %s21_s16 = sshll.u32 %s10341_s15, 4  ;;  %s10317_s19 = scalar_lea.hbm %s11398_s3, 131072  ;;  %s22_s16 = int_to_ptr.vmem [resolvable:$true] %s21_s16 }
   0x2   :  { %p10318_p0 = scmp.ne.s32.totalorder %s11398_s3, %s10317_s19  ;;  %p10321_p1 = scmp.lt.u32.totalorder %s10317_s19, %s11398_s3 }
   0x4   :  { %p10323_p2 = pnand %p10321_p1, %p10318_p0 }
   0x6   :  { %10326 = shalt.err (!%p10323_p2)
}
   0x7   :  { %s10327_s24 = scalar_lea.vmem %s22_s16, 131072  ;;  %p10332_p4 = scmp.lt.s32.totalorder %s22_s16, %s22_s16 }
   0x8   :  { %p10328_p3 = scmp.ne.s32.totalorder %s22_s16, %s10327_s24  ;;  %p10333_p5 = scmp.lt.s32.totalorder %s10327_s24, %s10327_s24 }
   0xa   :  { %p10334_p6 = por %p10333_p5, %p10332_p4 }
   0xc   :  { %p10335_p7 = pnand %p10334_p6, %p10328_p3 }
   0xe   :  { %10338 = shalt.err (!%p10335_p7)
}
   0xf   :  { %s10342_s25 = smov 1024   ;;  %s10343_s26 = smov 64  }
  0x10   :  { %27 = dma.hbm_to_vmem [thread:$0]  %s11398_s3, 131072, %s22_s16, [#allocation3], %s10342_s25, %s10342_s25, %s10343_s26  }
  0x11   :  { %10339 = dma.done.wait [#allocation3], 131072  }
  0x12   :  { %10340 = vsyncadd [#allocation3], 4294836224  ;;  %v371_v0 = vld [vmem:[#allocation2] sm:$0xff]  ;;  %v372_v2 = vld [vmem:[#allocation2 + $0x8] sm:$0xff]  ;;  %v89_v34 = vlaneseq }
  0x13   :  { %v379_v1 = vld [vmem:[#allocation2 + $0x40] sm:$0xff]  ;;  %v380_v4 = vld [vmem:[#allocation2 + $0x48] sm:$0xff] }
  0x14   :  { %v8905_v3 = vcombine.high %v371_v0, %v379_v1  ;;  %v8904_v5 = vcombine.low %v371_v0, %v379_v1  ;;  %v387_v6 = vld [vmem:[#allocation2 + $0x80] sm:$0xff]  ;;  %v8907_v8 = vcombine.high %v372_v2, %v380_v4  ;;  %v8906_v9 = vcombine.low %v372_v2, %v380_v4  ;;  %v388_v11 = vld [vmem:[#allocation2 + $0x88] sm:$0xff] }
  0x15   :  { %v395_v7 = vld [vmem:[#allocation2 + $0xc0] sm:$0xff]  ;;  %v396_v12 = vld [vmem:[#allocation2 + $0xc8] sm:$0xff]  ;;  %v10381_v43 = vshrl.u32 %v89_v34, 7 }
  0x16   :  { %v8921_v10 = vcombine.high %v387_v6, %v395_v7  ;;  %v403_v13 = vld [vmem:[#allocation2 + $0x100] sm:$0xff]  ;;  %6515 = vmatprep.subr.bf16.mxu0 %v8905_v3  ;;  %v8923_v14 = vcombine.high %v388_v11, %v396_v12  ;;  %v404_v16 = vld [vmem:[#allocation2 + $0x108] sm:$0xff]  ;;  %6799 = vmatprep.subr.bf16.mxu1 %v8907_v8  ;;  %v8920_v18 = vcombine.low %v387_v6, %v395_v7 }
  0x17   :  { %v411_v15 = vld [vmem:[#allocation2 + $0x140] sm:$0xff]  ;;  %v412_v17 = vld [vmem:[#allocation2 + $0x148] sm:$0xff]  ;;  %6516 = vmatpush1.bf16.msra.mxu0 %v8904_v5  ;;  %6800 = vmatpush1.bf16.msra.mxu1 %v8906_v9  ;;  %v8922_v19 = vcombine.low %v388_v11, %v396_v12  ;;  %v95_v52 = vsub.s32 1, %v10381_v43 }
  0x18   :  { %6517 = vmatprep.subr.bf16.mxu0 %v8921_v10  ;;  %v8937_v20 = vcombine.high %v403_v13, %v411_v15  ;;  %6801 = vmatprep.subr.bf16.mxu1 %v8923_v14  ;;  %v8939_v21 = vcombine.high %v404_v16, %v412_v17  ;;  %v419_v22 = vld [vmem:[#allocation2 + $0x180] sm:$0xff]  ;;  %v420_v24 = vld [vmem:[#allocation2 + $0x188] sm:$0xff]  ;;  %v8936_v26 = vcombine.low %v403_v13, %v411_v15 }
  0x19   :  { %v427_v23 = vld [vmem:[#allocation2 + $0x1c0] sm:$0xff]  ;;  %v428_v25 = vld [vmem:[#allocation2 + $0x1c8] sm:$0xff]  ;;  %v8938_v27 = vcombine.low %v404_v16, %v412_v17 }
  0x1a   :  { %v8953_v28 = vcombine.high %v419_v22, %v427_v23  ;;  %v8955_v29 = vcombine.high %v420_v24, %v428_v25  ;;  %v435_v30 = vld [vmem:[#allocation2 + $0x200] sm:$0xff]  ;;  %v436_v32 = vld [vmem:[#allocation2 + $0x208] sm:$0xff]  ;;  %v8952_v35 = vcombine.low %v419_v22, %v427_v23  ;;  %v8954_v36 = vcombine.low %v420_v24, %v428_v25 }
  0x1b   :  { %6518 = vmatpush1.bf16.msra.mxu0 %v8920_v18  ;;  %6802 = vmatpush1.bf16.msra.mxu1 %v8922_v19  ;;  %v443_v31 = vld [vmem:[#allocation2 + $0x240] sm:$0xff]  ;;  %v444_v33 = vld [vmem:[#allocation2 + $0x248] sm:$0xff] }
  0x1c   :  { %6519 = vmatprep.subr.bf16.mxu0 %v8937_v20  ;;  %6803 = vmatprep.subr.bf16.mxu1 %v8939_v21  ;;  %v8969_v37 = vcombine.high %v435_v30, %v443_v31  ;;  %v8971_v38 = vcombine.high %v436_v32, %v444_v33  ;;  %v451_v39 = vld [vmem:[#allocation2 + $0x280] sm:$0xff]  ;;  %v452_v41 = vld [vmem:[#allocation2 + $0x288] sm:$0xff]  ;;  %v8968_v44 = vcombine.low %v435_v30, %v443_v31 }
  0x1d   :  { %v459_v40 = vld [vmem:[#allocation2 + $0x2c0] sm:$0xff]  ;;  %v460_v42 = vld [vmem:[#allocation2 + $0x2c8] sm:$0xff]  ;;  %v8970_v45 = vcombine.low %v436_v32, %v444_v33 }
  0x1e   :  { %v8985_v46 = vcombine.high %v451_v39, %v459_v40  ;;  %v8987_v47 = vcombine.high %v452_v41, %v460_v42  ;;  %v467_v48 = vld [vmem:[#allocation2 + $0x300] sm:$0xff]  ;;  %v468_v50 = vld [vmem:[#allocation2 + $0x308] sm:$0xff]  ;;  %v8984_v53 = vcombine.low %v451_v39, %v459_v40  ;;  %v8986_v54 = vcombine.low %v452_v41, %v460_v42 }
  0x1f   :  { %6520 = vmatpush1.bf16.msra.mxu0 %v8936_v26  ;;  %6804 = vmatpush1.bf16.msra.mxu1 %v8938_v27  ;;  %v475_v49 = vld [vmem:[#allocation2 + $0x340] sm:$0xff]  ;;  %v476_v51 = vld [vmem:[#allocation2 + $0x348] sm:$0xff] }
  0x20   :  { %6521 = vmatprep.subr.bf16.mxu0 %v8953_v28  ;;  %6805 = vmatprep.subr.bf16.mxu1 %v8955_v29  ;;  %v9001_v55 = vcombine.high %v467_v48, %v475_v49  ;;  %v483_v56 = vld [vmem:[#allocation2 + $0x380] sm:$0xff]  ;;  %v32_v58 = vld [vmem:[%s11395_s0 + $0x8] sm:$0xff]  ;;  %v9003_v59 = vcombine.high %v468_v50, %v476_v51  ;;  %v9000_v3 = vcombine.low %v467_v48, %v475_v49 }
  0x21   :  { %v491_v57 = vld [vmem:[#allocation2 + $0x3c0] sm:$0xff]  ;;  %v40_v60 = vld [vmem:[%s11395_s0 + $0x48] sm:$0xff]  ;;  %v9002_v4 = vcombine.low %v468_v50, %v476_v51  ;;  %v91_v51 = vsub.s32 0, %v10381_v43 }
  0x22   :  { %v10393_v61 = vld [vmem:[%s11396_s1] sm:$0xff]  ;;  %v484_v63 = vld [vmem:[#allocation2 + $0x388] sm:$0xff]  ;;  %v9017_v5 = vcombine.high %v483_v56, %v491_v57  ;;  %v9016_v15 = vcombine.low %v483_v56, %v491_v57 }
  0x23   :  { %6522 = vmatpush1.bf16.msra.mxu0 %v8952_v35  ;;  %6806 = vmatpush1.bf16.msra.mxu1 %v8954_v36  ;;  %v10398_v62 = vld [vmem:[%s11397_s2] sm:$0xff]  ;;  %v492_v0 = vld [vmem:[#allocation2 + $0x3c8] sm:$0xff]  ;;  %v10401_v1 = vrot.slane %v10393_v61, %v95_v52 }
  0x24   :  { %6523 = vmatprep.subr.bf16.mxu0 %v8969_v37  ;;  %6807 = vmatprep.subr.bf16.mxu1 %v8971_v38  ;;  %v10404_v2 = vrot.slane %v10398_v62, %v95_v52  ;;  %v9019_v8 = vcombine.high %v484_v63, %v492_v0  ;;  %v499_v9 = vld [vmem:[#allocation2 + $0x400] sm:$0xff]  ;;  %v500_v11 = vld [vmem:[#allocation2 + $0x408] sm:$0xff]  ;;  %v9018_v16 = vcombine.low %v484_v63, %v492_v0 }
  0x25   :  { %v130_v6 = vmul.f32 %v10401_v1, %v32_v58  ;;  %v138_v7 = vmul.f32 %v10401_v1, %v40_v60  ;;  %v507_v10 = vld [vmem:[#allocation2 + $0x440] sm:$0xff]  ;;  %v508_v12 = vld [vmem:[#allocation2 + $0x448] sm:$0xff]  ;;  %v10416_v60 = vrot.slane %v10393_v61, %v91_v51 }
  0x26   :  { %v9033_v17 = vcombine.high %v499_v9, %v507_v10  ;;  %v9035_v20 = vcombine.high %v500_v11, %v508_v12  ;;  %v515_v21 = vld [vmem:[#allocation2 + $0x480] sm:$0xff]  ;;  %v516_v23 = vld [vmem:[#allocation2 + $0x488] sm:$0xff]  ;;  %v9032_v26 = vcombine.low %v499_v9, %v507_v10  ;;  %v9034_v27 = vcombine.low %v500_v11, %v508_v12 }
  0x27   :  { %6524 = vmatpush1.bf16.msra.mxu0 %v8968_v44  ;;  %6808 = vmatpush1.bf16.msra.mxu1 %v8970_v45  ;;  %v228_v13 = vadd.f32 %v10404_v2, %v130_v6  ;;  %v236_v14 = vadd.f32 %v10404_v2, %v138_v7  ;;  %v523_v22 = vld [vmem:[#allocation2 + $0x4c0] sm:$0xff]  ;;  %v524_v24 = vld [vmem:[#allocation2 + $0x4c8] sm:$0xff] }
  0x28   :  { %6525 = vmatprep.subr.bf16.mxu0 %v8985_v46  ;;  %6809 = vmatprep.subr.bf16.mxu1 %v8987_v47  ;;  %v9049_v28 = vcombine.high %v515_v21, %v523_v22  ;;  %v9051_v29 = vcombine.high %v516_v23, %v524_v24  ;;  %v531_v30 = vld [vmem:[#allocation2 + $0x500] sm:$0xff]  ;;  %v532_v32 = vld [vmem:[#allocation2 + $0x508] sm:$0xff]  ;;  %v9048_v34 = vcombine.low %v515_v21, %v523_v22 }
  0x29   :  { %v284_v18 = vmax.f32 %v228_v13, 0.0  ;;  %v292_v19 = vmax.f32 %v236_v14, 0.0  ;;  %v539_v31 = vld [vmem:[#allocation2 + $0x540] sm:$0xff]  ;;  %v540_v33 = vld [vmem:[#allocation2 + $0x548] sm:$0xff]  ;;  %v9050_v35 = vcombine.low %v516_v23, %v524_v24  ;;  %v10427_v13 = vrot.slane %v10398_v62, %v91_v51 }
  0x2a   :  { %v9065_v36 = vcombine.high %v531_v30, %v539_v31  ;;  %v9067_v37 = vcombine.high %v532_v32, %v540_v33  ;;  %v547_v38 = vld [vmem:[#allocation2 + $0x580] sm:$0xff]  ;;  %v548_v40 = vld [vmem:[#allocation2 + $0x588] sm:$0xff]  ;;  %v9064_v42 = vcombine.low %v531_v30, %v539_v31  ;;  %v9066_v44 = vcombine.low %v532_v32, %v540_v33 }
  0x2b   :  { %6526 = vmatpush1.bf16.msra.mxu0 %v8984_v53  ;;  %6810 = vmatpush1.bf16.msra.mxu1 %v8986_v54  ;;  %v10410_v25 = vpack.c.bf16 %v292_v19, %v284_v18  ;;  %v555_v39 = vld [vmem:[#allocation2 + $0x5c0] sm:$0xff]  ;;  %v556_v41 = vld [vmem:[#allocation2 + $0x5c8] sm:$0xff] }
  0x2c   :  { %6527 = vmatprep.subr.bf16.mxu0 %v9001_v55  ;;  %6811 = vmatprep.subr.bf16.mxu1 %v9003_v59  ;;  %v9081_v45 = vcombine.high %v547_v38, %v555_v39  ;;  %v9083_v46 = vcombine.high %v548_v40, %v556_v41  ;;  %v563_v47 = vld [vmem:[#allocation2 + $0x600] sm:$0xff]  ;;  %v564_v49 = vld [vmem:[#allocation2 + $0x608] sm:$0xff]  ;;  %v9080_v52 = vcombine.low %v547_v38, %v555_v39 }
  0x2d   :  { %6547 = vmatprep.mubr.bf16.mxu0 %v10410_v25  ;;  %6831 = vmatprep.mubr.bf16.mxu1 %v10410_v25  ;;  %v571_v48 = vld [vmem:[#allocation2 + $0x640] sm:$0xff]  ;;  %v572_v50 = vld [vmem:[#allocation2 + $0x648] sm:$0xff]  ;;  %v9082_v53 = vcombine.low %v548_v40, %v556_v41 }
  0x2e   :  { %v9097_v54 = vcombine.high %v563_v47, %v571_v48  ;;  %v9099_v55 = vcombine.high %v564_v49, %v572_v50  ;;  %v579_v56 = vld [vmem:[#allocation2 + $0x680] sm:$0xff]  ;;  %v580_v58 = vld [vmem:[#allocation2 + $0x688] sm:$0xff]  ;;  %v9096_v63 = vcombine.low %v563_v47, %v571_v48 }
  0x2f   :  { %6528 = vmatpush1.bf16.msra.mxu0 %v9000_v3  ;;  %6812 = vmatpush1.bf16.msra.mxu1 %v9002_v4  ;;  %v587_v57 = vld [vmem:[#allocation2 + $0x6c0] sm:$0xff]  ;;  %v588_v59 = vld [vmem:[#allocation2 + $0x6c8] sm:$0xff]  ;;  %v9098_v4 = vcombine.low %v564_v49, %v572_v50 }
  0x30   :  { %6529 = vmatprep.subr.bf16.mxu0 %v9017_v5  ;;  %6813 = vmatprep.subr.bf16.mxu1 %v9019_v8  ;;  %v31_v0 = vld [vmem:[%s11395_s0] sm:$0xff]  ;;  %v9113_v5 = vcombine.high %v579_v56, %v587_v57  ;;  %v9115_v6 = vcombine.high %v580_v58, %v588_v59  ;;  %v596_v9 = vld [vmem:[#allocation2 + $0x708] sm:$0xff] }
  0x31   :  { %v39_v3 = vld [vmem:[%s11395_s0 + $0x40] sm:$0xff]  ;;  %v604_v10 = vld [vmem:[#allocation2 + $0x748] sm:$0xff]  ;;  %v129_v11 = vmul.f32 %v10416_v60, %v31_v0 }
  0x32   :  { %v595_v7 = vld [vmem:[#allocation2 + $0x700] sm:$0xff]  ;;  %v137_v12 = vmul.f32 %v10416_v60, %v39_v3  ;;  %v48_v14 = vld [vmem:[%s11395_s0 + $0x88] sm:$0xff]  ;;  %v9131_v19 = vcombine.high %v596_v9, %v604_v10  ;;  %v9130_v32 = vcombine.low %v596_v9, %v604_v10 }
  0x33   :  { %6530 = vmatpush1.bf16.msra.mxu0 %v9016_v15  ;;  %6814 = vmatpush1.bf16.msra.mxu1 %v9018_v16  ;;  %v603_v8 = vld [vmem:[#allocation2 + $0x740] sm:$0xff]  ;;  %v56_v15 = vld [vmem:[%s11395_s0 + $0xc8] sm:$0xff]  ;;  %v9112_v16 = vcombine.low %v579_v56, %v587_v57  ;;  %v146_v22 = vmul.f32 %v10401_v1, %v48_v14 }
  0x34   :  { %6531 = vmatprep.subr.bf16.mxu0 %v9033_v17  ;;  %6815 = vmatprep.subr.bf16.mxu1 %v9035_v20  ;;  %v9114_v17 = vcombine.low %v580_v58, %v588_v59  ;;  %v9129_v18 = vcombine.high %v595_v7, %v603_v8  ;;  %v611_v20 = vld [vmem:[#allocation2 + $0x780] sm:$0xff]  ;;  %v154_v23 = vmul.f32 %v10401_v1, %v56_v15  ;;  %v612_v24 = vld [vmem:[#allocation2 + $0x788] sm:$0xff] }
  0x35   :  { %v619_v21 = vld [vmem:[#allocation2 + $0x7c0] sm:$0xff]  ;;  %v636_v38 = vld [vmem:[#allocation2 + $0x848] sm:$0xff]  ;;  %v244_v39 = vadd.f32 %v10404_v2, %v146_v22 }
  0x36   :  { %v47_v30 = vld [vmem:[%s11395_s0 + $0x80] sm:$0xff]  ;;  %v9145_v33 = vcombine.high %v611_v20, %v619_v21  ;;  %v252_v40 = vadd.f32 %v10404_v2, %v154_v23  ;;  %v72_v47 = vld [vmem:[%s11395_s0 + $0x148] sm:$0xff]  ;;  %v9144_v48 = vcombine.low %v611_v20, %v619_v21 }
  0x37   :  { %6532 = vmatpush1.bf16.msra.mxu0 %v9032_v26  ;;  %6816 = vmatpush1.bf16.msra.mxu1 %v9034_v27  ;;  %v620_v26 = vld [vmem:[#allocation2 + $0x7c8] sm:$0xff]  ;;  %v227_v27 = vadd.f32 %v10427_v13, %v129_v11  ;;  %v55_v31 = vld [vmem:[%s11395_s0 + $0xc0] sm:$0xff]  ;;  %v170_v57 = vmul.f32 %v10401_v1, %v72_v47 }
  0x38   :  { %6533 = vmatprep.subr.bf16.mxu0 %v9049_v28  ;;  %6817 = vmatprep.subr.bf16.mxu1 %v9051_v29  ;;  %v235_v28 = vadd.f32 %v10427_v13, %v137_v12  ;;  %v9128_v29 = vcombine.low %v595_v7, %v603_v8  ;;  %v9146_v49 = vcombine.low %v612_v24, %v620_v26  ;;  %v644_v59 = vld [vmem:[#allocation2 + $0x888] sm:$0xff]  ;;  %v659_v10 = vld [vmem:[#allocation2 + $0x900] sm:$0xff] }
  0x39   :  { %v283_v41 = vmax.f32 %v227_v27, 0.0  ;;  %v667_v11 = vld [vmem:[#allocation2 + $0x940] sm:$0xff]  ;;  %v268_v15 = vadd.f32 %v10404_v2, %v170_v57  ;;  %v80_v22 = vld [vmem:[%s11395_s0 + $0x188] sm:$0x1]  ;;  %v103_v27 = vsub.s32 3, %v10381_v43 }
  0x3a   :  { %v700_v47 = vld [vmem:[#allocation2 + $0xa48] sm:$0xff] }
  0x3b   :  { %6534 = vmatpush1.bf16.msra.mxu0 %v9048_v34  ;;  %6818 = vmatpush1.bf16.msra.mxu1 %v9050_v35  ;;  %v627_v34 = vld [vmem:[#allocation2 + $0x800] sm:$0xff]  ;;  %v9147_v35 = vcombine.high %v612_v24, %v620_v26  ;;  %v9193_v26 = vcombine.high %v659_v10, %v667_v11 }
  0x3c   :  { %6535 = vmatprep.subr.bf16.mxu0 %v9065_v36  ;;  %6819 = vmatprep.subr.bf16.mxu1 %v9067_v37  ;;  %v635_v36 = vld [vmem:[#allocation2 + $0x840] sm:$0xff]  ;;  %v628_v37 = vld [vmem:[#allocation2 + $0x808] sm:$0xff] }
  0x3d   :  { %v9161_v50 = vcombine.high %v627_v34, %v635_v36  ;;  %v9163_v51 = vcombine.high %v628_v37, %v636_v38  ;;  %v9162_v7 = vcombine.low %v628_v37, %v636_v38 }
  0x3f   :  { %6536 = vmatpush1.bf16.msra.mxu0 %v9064_v42  ;;  %6820 = vmatpush1.bf16.msra.mxu1 %v9066_v44  ;;  %v291_v42 = vmax.f32 %v235_v28, 0.0  ;;  %v145_v44 = vmul.f32 %v10416_v60, %v47_v30  ;;  %v683_v30 = vld [vmem:[#allocation2 + $0x9c0] sm:$0xff] }
  0x40   :  { %6537 = vmatprep.subr.bf16.mxu0 %v9081_v45  ;;  %6821 = vmatprep.subr.bf16.mxu1 %v9083_v46  ;;  %v153_v45 = vmul.f32 %v10416_v60, %v55_v31  ;;  %v64_v46 = vld [vmem:[%s11395_s0 + $0x108] sm:$0xff] }
  0x41   :  { %v162_v56 = vmul.f32 %v10401_v1, %v64_v46  ;;  %v10457_v58 = vpack.c.bf16 %v291_v42, %v283_v41  ;;  %v243_v0 = vadd.f32 %v10427_v13, %v145_v44  ;;  %v691_v42 = vld [vmem:[#allocation2 + $0xa00] sm:$0xff]  ;;  %v692_v46 = vld [vmem:[#allocation2 + $0xa08] sm:$0xff] }
  0x42   :  { %v251_v3 = vadd.f32 %v10427_v13, %v153_v45  ;;  %v699_v45 = vld [vmem:[#allocation2 + $0xa40] sm:$0xff] }
  0x43   :  { %6538 = vmatpush1.bf16.msra.mxu0 %v9080_v52  ;;  %6822 = vmatpush1.bf16.msra.mxu1 %v9082_v53  ;;  %v643_v52 = vld [vmem:[#allocation2 + $0x880] sm:$0xff]  ;;  %v260_v14 = vadd.f32 %v10404_v2, %v162_v56  ;;  %v9225_v57 = vcombine.high %v691_v42, %v699_v45 }
  0x44   :  { %6539 = vmatprep.subr.bf16.mxu0 %v9097_v54  ;;  %6823 = vmatprep.subr.bf16.mxu1 %v9099_v55  ;;  %v651_v53 = vld [vmem:[#allocation2 + $0x8c0] sm:$0xff]  ;;  %v300_v54 = vmax.f32 %v244_v39, 0.0  ;;  %v308_v55 = vmax.f32 %v252_v40, 0.0  ;;  %v9192_v39 = vcombine.low %v659_v10, %v667_v11  ;;  %v9224_v10 = vcombine.low %v691_v42, %v699_v45  ;;  %v756_v42 = vld [vmem:[#allocation2 + $0xc08] sm:$0xff] }
  0x45   :  { %v9177_v8 = vcombine.high %v643_v52, %v651_v53  ;;  %v9176_v23 = vcombine.low %v643_v52, %v651_v53  ;;  %v316_v31 = vmax.f32 %v260_v14, 0.0  ;;  %v79_v40 = vld [vmem:[%s11395_s0 + $0x180] sm:$0x1]  ;;  %v9226_v11 = vcombine.low %v692_v46, %v700_v47 }
  0x46   :  { %v10467_v12 = vpack.c.bf16 %v308_v55, %v300_v54  ;;  %v177_v53 = vmul.f32 %v10416_v60, %v79_v40  ;;  %v34_v54 = vld [vmem:[%s11395_s0 + $0x18] sm:$0xff]  ;;  %v755_v40 = vld [vmem:[#allocation2 + $0xc00] sm:$0xff] }
  0x47   :  { %6540 = vmatpush1.bf16.msra.mxu0 %v9096_v63  ;;  %6824 = vmatpush1.bf16.msra.mxu1 %v9098_v4  ;;  %v652_v63 = vld [vmem:[#allocation2 + $0x8c8] sm:$0xff]  ;;  %v9160_v4 = vcombine.low %v627_v34, %v635_v36  ;;  %v42_v55 = vld [vmem:[%s11395_s0 + $0x58] sm:$0xff] }
  0x48   :  { %6541 = vmatprep.subr.bf16.mxu0 %v9113_v5  ;;  %6825 = vmatprep.subr.bf16.mxu1 %v9115_v6  ;;  %v63_v5 = vld [vmem:[%s11395_s0 + $0x100] sm:$0xff]  ;;  %v9179_v9 = vcombine.high %v644_v59, %v652_v63  ;;  %v9178_v24 = vcombine.low %v644_v59, %v652_v63  ;;  %v676_v34 = vld [vmem:[#allocation2 + $0x988] sm:$0xff]  ;;  %v9227_v59 = vcombine.high %v692_v46, %v700_v47 }
  0x49   :  { %v71_v6 = vld [vmem:[%s11395_s0 + $0x140] sm:$0xff]  ;;  %v161_v20 = vmul.f32 %v10416_v60, %v63_v5  ;;  %v10508_v5 = vrot.slane %v10398_v62, %v103_v27 }
  0x4a   :  { %v169_v21 = vmul.f32 %v10416_v60, %v71_v6  ;;  %v707_v63 = vld [vmem:[#allocation2 + $0xa80] sm:$0xff]  ;;  %v708_v6 = vld [vmem:[#allocation2 + $0xa88] sm:$0xff] }
  0x4b   :  { %6542 = vmatpush1.bf16.msra.mxu0 %v9112_v16  ;;  %6826 = vmatpush1.bf16.msra.mxu1 %v9114_v17  ;;  %v660_v16 = vld [vmem:[#allocation2 + $0x908] sm:$0xff]  ;;  %v259_v37 = vadd.f32 %v10427_v13, %v161_v20  ;;  %v715_v60 = vld [vmem:[#allocation2 + $0xac0] sm:$0xff] }
  0x4c   :  { %6543 = vmatprep.subr.bf16.mxu0 %v9129_v18  ;;  %6827 = vmatprep.subr.bf16.mxu1 %v9131_v19  ;;  %v668_v17 = vld [vmem:[#allocation2 + $0x948] sm:$0xff]  ;;  %v299_v18 = vmax.f32 %v243_v0, 0.0  ;;  %v307_v19 = vmax.f32 %v251_v3, 0.0  ;;  %v267_v38 = vadd.f32 %v10427_v13, %v169_v21  ;;  %v9241_v14 = vcombine.high %v707_v63, %v715_v60 }
  0x4d   :  { %v9195_v28 = vcombine.high %v660_v16, %v668_v17  ;;  %v9194_v41 = vcombine.low %v660_v16, %v668_v17  ;;  %v723_v16 = vld [vmem:[#allocation2 + $0xb00] sm:$0xff]  ;;  %v724_v21 = vld [vmem:[#allocation2 + $0xb08] sm:$0xff] }
  0x4e   :  { %v10482_v36 = vpack.c.bf16 %v307_v19, %v299_v18  ;;  %v323_v52 = vmax.f32 %v267_v38, 0.0  ;;  %v731_v17 = vld [vmem:[#allocation2 + $0xb40] sm:$0xff] }
  0x4f   :  { %6544 = vmatpush1.bf16.msra.mxu0 %v9128_v29  ;;  %6828 = vmatpush1.bf16.msra.mxu1 %v9130_v32  ;;  %v675_v29 = vld [vmem:[#allocation2 + $0x980] sm:$0xff]  ;;  %v324_v32 = vmax.f32 %v268_v15, 0.0 }
  0x50   :  { %6545 = vmatprep.subr.bf16.mxu0 %v9145_v33  ;;  %6829 = vmatprep.subr.bf16.mxu1 %v9147_v35  ;;  %v178_v33 = vmul.f32 %v10401_v1, %v80_v22  ;;  %v684_v35 = vld [vmem:[#allocation2 + $0x9c8] sm:$0xff]  ;;  %v9209_v1 = vcombine.high %v675_v29, %v683_v30  ;;  %v9208_v56 = vcombine.low %v675_v29, %v683_v30  ;;  %v747_v29 = vld [vmem:[#allocation2 + $0xbc0] sm:$0xff] }
  0x51   :  { %v9211_v44 = vcombine.high %v676_v34, %v684_v35  ;;  %v732_v22 = vld [vmem:[#allocation2 + $0xb48] sm:$0xff] }
  0x53   :  { %6546 = vmatpush1.bf16.msra.mxu0 %v9144_v48  ;;  %6830 = vmatpush1.bf16.msra.mxu1 %v9146_v49  ;;  %v10489_v48 = vpack.c.bf16 %v324_v32, %v316_v31  ;;  %v276_v49 = vadd.f32 %v10404_v2, %v178_v33  ;;  %v9210_v2 = vcombine.low %v676_v34, %v684_v35  ;;  %v740_v32 = vld [vmem:[#allocation2 + $0xb88] sm:$0xff] }
  0x54   :  { %6586 = vmatprep.subr.bf16.mxu0 %v9161_v50  ;;  %6870 = vmatprep.subr.bf16.mxu1 %v9163_v51  ;;  %v10493_v50 = vrot.slane %v10393_v61, %v103_v27  ;;  %v315_v51 = vmax.f32 %v259_v37, 0.0  ;;  %v9259_v27 = vcombine.high %v724_v21, %v732_v22  ;;  %v748_v33 = vld [vmem:[#allocation2 + $0xbc8] sm:$0xff]  ;;  %v9256_v35 = vcombine.low %v723_v16, %v731_v17 }
  0x55   :  { %v332_v0 = vmax.f32 %v276_v49, 0.0  ;;  %v9258_v37 = vcombine.low %v724_v21, %v732_v22  ;;  %v9274_v46 = vcombine.low %v740_v32, %v748_v33  ;;  %v827_v21 = vld [vmem:[#allocation2 + $0xe40] sm:$0xff]  ;;  %v820_v22 = vld [vmem:[#allocation2 + $0xe08] sm:$0xff] }
  0x56   :  { %6548 = vmatmul.mubr.bf16.vlgmr.msra.gmra.mrb[0].mxu0 %v10457_v58  ;;  %6832 = vmatmul.mubr.bf16.vlgmr.msra.gmra.mrb[0].mxu1 %v10457_v58  ;;  %v132_v3 = vmul.f32 %v10493_v50, %v34_v54  ;;  %v780_v54 = vld [vmem:[#allocation2 + $0xcc8] sm:$0xff] }
  0x57   :  { %6587 = vmatpush1.bf16.msra.mxu0 %v9160_v4  ;;  %6871 = vmatpush1.bf16.msra.mxu1 %v9162_v7  ;;  %v140_v4 = vmul.f32 %v10493_v50, %v42_v55  ;;  %v716_v7 = vld [vmem:[#allocation2 + $0xac8] sm:$0xff]  ;;  %v10514_v18 = vpack.c.bf16 %v332_v0, %v332_v0 }
  0x58   :  { %6588 = vmatprep.subr.bf16.mxu0 %v9177_v8  ;;  %6872 = vmatprep.subr.bf16.mxu1 %v9179_v9  ;;  %v10511_v8 = vpack.c.bf16 %v323_v52, %v315_v51  ;;  %v275_v9 = vadd.f32 %v10427_v13, %v177_v53  ;;  %v9243_v15 = vcombine.high %v708_v6, %v716_v7  ;;  %v771_v51 = vld [vmem:[#allocation2 + $0xc80] sm:$0xff]  ;;  %v772_v53 = vld [vmem:[#allocation2 + $0xc88] sm:$0xff] }
  0x59   :  { %6557 = vmatprep.mubr.bf16.mxu0 %v10467_v12  ;;  %6841 = vmatprep.mubr.bf16.mxu1 %v10467_v12  ;;  %v230_v19 = vadd.f32 %v10508_v5, %v132_v3  ;;  %v238_v20 = vadd.f32 %v10508_v5, %v140_v4  ;;  %v779_v52 = vld [vmem:[#allocation2 + $0xcc0] sm:$0xff]  ;;  %v796_v0 = vld [vmem:[#allocation2 + $0xd48] sm:$0xff]  ;;  %v9306_v4 = vcombine.low %v772_v53, %v780_v54 }
  0x5a   :  { %v331_v13 = vmax.f32 %v275_v9, 0.0  ;;  %v9304_v3 = vcombine.low %v771_v51, %v779_v52  ;;  %v803_v9 = vld [vmem:[#allocation2 + $0xd80] sm:$0xff] }
  0x5b   :  { %6589 = vmatpush1.bf16.msra.mxu0 %v9176_v23  ;;  %6873 = vmatpush1.bf16.msra.mxu1 %v9178_v24  ;;  %v9240_v23 = vcombine.low %v707_v63, %v715_v60  ;;  %v9242_v24 = vcombine.low %v708_v6, %v716_v7  ;;  %v286_v30 = vmax.f32 %v230_v19, 0.0  ;;  %v294_v31 = vmax.f32 %v238_v20, 0.0  ;;  %v795_v63 = vld [vmem:[#allocation2 + $0xd40] sm:$0xff]  ;;  %v788_v60 = vld [vmem:[#allocation2 + $0xd08] sm:$0xff] }
  0x5c   :  { %6590 = vmatprep.subr.bf16.mxu0 %v9193_v26  ;;  %6874 = vmatprep.subr.bf16.mxu1 %v9195_v28  ;;  %v9257_v26 = vcombine.high %v723_v16, %v731_v17  ;;  %v739_v28 = vld [vmem:[#allocation2 + $0xb80] sm:$0xff]  ;;  %v10522_v34 = vpack.c.bf16 %v331_v13, %v331_v13  ;;  %v9323_v7 = vcombine.high %v788_v60, %v796_v0  ;;  %v828_v13 = vld [vmem:[#allocation2 + $0xe48] sm:$0xff] }
  0x5d   :  { %v9273_v38 = vcombine.high %v739_v28, %v747_v29  ;;  %v9272_v45 = vcombine.low %v739_v28, %v747_v29  ;;  %v9322_v16 = vcombine.low %v788_v60, %v796_v0  ;;  %v819_v20 = vld [vmem:[#allocation2 + $0xe00] sm:$0xff]  ;;  %v9355_v28 = vcombine.high %v820_v22, %v828_v13  ;;  %v868_v60 = vld [vmem:[#allocation2 + $0xf88] sm:$0xff] }
  0x5e   :  { %6558 = vmatmul.mubr.bf16.gmra.mrb[4].mxu0 %v10482_v36  ;;  %6842 = vmatmul.mubr.bf16.gmra.mrb[4].mxu1 %v10482_v36  ;;  %v835_v29 = vld [vmem:[#allocation2 + $0xe80] sm:$0xff]  ;;  %v876_v0 = vld [vmem:[#allocation2 + $0xfc8] sm:$0xff] }
  0x5f   :  { %6591 = vmatpush1.bf16.msra.mxu0 %v9192_v39  ;;  %6875 = vmatpush1.bf16.msra.mxu1 %v9194_v41  ;;  %v9275_v39 = vcombine.high %v740_v32, %v748_v33  ;;  %v763_v41 = vld [vmem:[#allocation2 + $0xc40] sm:$0xff]  ;;  %v844_v32 = vld [vmem:[#allocation2 + $0xec8] sm:$0xff] }
  0x60   :  { %6592 = vmatprep.subr.bf16.mxu0 %v9209_v1  ;;  %6876 = vmatprep.subr.bf16.mxu1 %v9211_v44  ;;  %v10524_v1 = vpack.c.bf16 %v294_v31, %v286_v30  ;;  %v764_v44 = vld [vmem:[#allocation2 + $0xc48] sm:$0xff]  ;;  %v9289_v47 = vcombine.high %v755_v40, %v763_v41  ;;  %v9288_v55 = vcombine.low %v755_v40, %v763_v41  ;;  %v843_v30 = vld [vmem:[#allocation2 + $0xec0] sm:$0xff] }
  0x61   :  { %6567 = vmatprep.mubr.bf16.mxu0 %v10489_v48  ;;  %6851 = vmatprep.mubr.bf16.mxu1 %v10489_v48  ;;  %v9291_v49 = vcombine.high %v756_v42, %v764_v44  ;;  %v836_v31 = vld [vmem:[#allocation2 + $0xe88] sm:$0xff]  ;;  %v9369_v40 = vcombine.high %v835_v29, %v843_v30 }
  0x62   :  { %v9371_v41 = vcombine.high %v836_v31, %v844_v32 }
  0x63   :  { %6593 = vmatpush1.bf16.msra.mxu0 %v9208_v56  ;;  %6877 = vmatpush1.bf16.msra.mxu1 %v9210_v2  ;;  %v9290_v56 = vcombine.low %v756_v42, %v764_v44  ;;  %v9305_v2 = vcombine.high %v771_v51, %v779_v52  ;;  %v851_v42 = vld [vmem:[#allocation2 + $0xf00] sm:$0xff]  ;;  %v50_v52 = vld [vmem:[%s11395_s0 + $0x98] sm:$0xff] }
  0x64   :  { %6594 = vmatprep.subr.bf16.mxu0 %v9225_v57  ;;  %6878 = vmatprep.subr.bf16.mxu1 %v9227_v59  ;;  %v9307_v57 = vcombine.high %v772_v53, %v780_v54  ;;  %v787_v59 = vld [vmem:[#allocation2 + $0xd00] sm:$0xff]  ;;  %v58_v53 = vld [vmem:[%s11395_s0 + $0xd8] sm:$0xff]  ;;  %v9368_v54 = vcombine.low %v835_v29, %v843_v30  ;;  %v9402_v29 = vcombine.low %v868_v60, %v876_v0 }
  0x65   :  { %v9321_v6 = vcombine.high %v787_v59, %v795_v63  ;;  %v859_v44 = vld [vmem:[#allocation2 + $0xf40] sm:$0xff] }
  0x66   :  { %6568 = vmatmul.mubr.bf16.gmra.mrb[8].mxu0 %v10511_v8  ;;  %6852 = vmatmul.mubr.bf16.gmra.mrb[8].mxu1 %v10511_v8 }
  0x67   :  { %6595 = vmatpush1.bf16.msra.mxu0 %v9224_v10  ;;  %6879 = vmatpush1.bf16.msra.mxu1 %v9226_v11  ;;  %v811_v10 = vld [vmem:[#allocation2 + $0xdc0] sm:$0xff]  ;;  %v804_v11 = vld [vmem:[#allocation2 + $0xd88] sm:$0xff] }
  0x68   :  { %6596 = vmatprep.subr.bf16.mxu0 %v9241_v14  ;;  %6880 = vmatprep.subr.bf16.mxu1 %v9243_v15  ;;  %v812_v14 = vld [vmem:[#allocation2 + $0xdc8] sm:$0xff]  ;;  %v9320_v15 = vcombine.low %v787_v59, %v795_v63  ;;  %v9337_v17 = vcombine.high %v803_v9, %v811_v10  ;;  %v875_v59 = vld [vmem:[#allocation2 + $0xfc0] sm:$0xff]  ;;  %v156_v63 = vmul.f32 %v10493_v50, %v58_v53 }
  0x69   :  { %6577 = vmatprep.mubr.bf16.mxu0 %v10514_v18  ;;  %6861 = vmatprep.mubr.bf16.mxu1 %v10514_v18  ;;  %v9339_v19 = vcombine.high %v804_v11, %v812_v14 }
  0x6b   :  { %6597 = vmatpush1.bf16.msra.mxu0 %v9240_v23  ;;  %6881 = vmatpush1.bf16.msra.mxu1 %v9242_v24  ;;  %v99_v23 = vsub.s32 2, %v10381_v43  ;;  %v9336_v24 = vcombine.low %v803_v9, %v811_v10  ;;  %v57_v9 = vld [vmem:[%s11395_s0 + $0xd0] sm:$0xff] }
  0x6c   :  { %6598 = vmatprep.subr.bf16.mxu0 %v9257_v26  ;;  %6882 = vmatprep.subr.bf16.mxu1 %v9259_v27  ;;  %v9338_v26 = vcombine.low %v804_v11, %v812_v14  ;;  %v9353_v27 = vcombine.high %v819_v20, %v827_v21  ;;  %v883_v14 = vld [vmem:[#allocation2 + $0x1000] sm:$0xff] }
  0x6d   :  { %v10532_v33 = vrot.slane %v10393_v61, %v99_v23  ;;  %v10543_v51 = vrot.slane %v10398_v62, %v99_v23  ;;  %v148_v62 = vmul.f32 %v10493_v50, %v50_v52  ;;  %v73_v52 = vld [vmem:[%s11395_s0 + $0x150] sm:$0xff] }
  0x6e   :  { %6578 = vmatmul.mubr.bf16.gmra.mrb[12].mxu0 %v10522_v34  ;;  %6862 = vmatmul.mubr.bf16.gmra.mrb[12].mxu1 %v10522_v34 }
  0x6f   :  { %6599 = vmatpush1.bf16.msra.mxu0 %v9256_v35  ;;  %6883 = vmatpush1.bf16.msra.mxu1 %v9258_v37  ;;  %v9352_v35 = vcombine.low %v819_v20, %v827_v21  ;;  %v33_v37 = vld [vmem:[%s11395_s0 + $0x10] sm:$0xff]  ;;  %v246_v20 = vadd.f32 %v10508_v5, %v148_v62  ;;  %v254_v21 = vadd.f32 %v10508_v5, %v156_v63  ;;  %v916_v63 = vld [vmem:[#allocation2 + $0x1108] sm:$0xff] }
  0x70   :  { %6600 = vmatprep.subr.bf16.mxu0 %v9273_v38  ;;  %6884 = vmatprep.subr.bf16.mxu1 %v9275_v39  ;;  %v41_v38 = vld [vmem:[%s11395_s0 + $0x50] sm:$0xff]  ;;  %v9354_v39 = vcombine.low %v820_v22, %v828_v13 }
  0x71   :  { %6618 = vmatprep.mubr.bf16.mxu0 %v10524_v1  ;;  %6902 = vmatprep.mubr.bf16.mxu1 %v10524_v1 }
  0x73   :  { %6601 = vmatpush1.bf16.msra.mxu0 %v9272_v45  ;;  %6885 = vmatpush1.bf16.msra.mxu1 %v9274_v46  ;;  %v852_v45 = vld [vmem:[#allocation2 + $0xf08] sm:$0xff] }
  0x74   :  { %6602 = vmatprep.subr.bf16.mxu0 %v9289_v47  ;;  %6886 = vmatprep.subr.bf16.mxu1 %v9291_v49  ;;  %v860_v46 = vld [vmem:[#allocation2 + $0xf48] sm:$0xff]  ;;  %v131_v47 = vmul.f32 %v10532_v33, %v33_v37  ;;  %v139_v49 = vmul.f32 %v10532_v33, %v41_v38  ;;  %v302_v37 = vmax.f32 %v246_v20, 0.0  ;;  %v310_v38 = vmax.f32 %v254_v21, 0.0 }
  0x75   :  { %v9386_v10 = vcombine.low %v852_v45, %v860_v46 }
  0x77   :  { %6603 = vmatpush1.bf16.msra.mxu0 %v9288_v55  ;;  %6887 = vmatpush1.bf16.msra.mxu1 %v9290_v56  ;;  %v9370_v55 = vcombine.low %v836_v31, %v844_v32  ;;  %v9385_v56 = vcombine.high %v851_v42, %v859_v44  ;;  %v899_v32 = vld [vmem:[#allocation2 + $0x1080] sm:$0xff] }
  0x78   :  { %6604 = vmatprep.subr.bf16.mxu0 %v9305_v2  ;;  %6888 = vmatprep.subr.bf16.mxu1 %v9307_v57  ;;  %v9387_v2 = vcombine.high %v852_v45, %v860_v46  ;;  %v867_v57 = vld [vmem:[#allocation2 + $0xf80] sm:$0xff] }
  0x79   :  { %v9401_v11 = vcombine.high %v867_v57, %v875_v59 }
  0x7b   :  { %6605 = vmatpush1.bf16.msra.mxu0 %v9304_v3  ;;  %6889 = vmatpush1.bf16.msra.mxu1 %v9306_v4  ;;  %v229_v3 = vadd.f32 %v10543_v51, %v131_v47  ;;  %v237_v4 = vadd.f32 %v10543_v51, %v139_v49  ;;  %v65_v49 = vld [vmem:[%s11395_s0 + $0x110] sm:$0xff] }
  0x7c   :  { %6606 = vmatprep.subr.bf16.mxu0 %v9321_v6  ;;  %6890 = vmatprep.subr.bf16.mxu1 %v9323_v7  ;;  %v9384_v6 = vcombine.low %v851_v42, %v859_v44  ;;  %v49_v7 = vld [vmem:[%s11395_s0 + $0x90] sm:$0xff]  ;;  %v900_v42 = vld [vmem:[#allocation2 + $0x1088] sm:$0xff] }
  0x7d   :  { %v285_v22 = vmax.f32 %v229_v3, 0.0  ;;  %v293_v13 = vmax.f32 %v237_v4, 0.0  ;;  %v147_v23 = vmul.f32 %v10532_v33, %v49_v7  ;;  %v908_v44 = vld [vmem:[#allocation2 + $0x10c8] sm:$0xff]  ;;  %v163_v4 = vmul.f32 %v10532_v33, %v65_v49  ;;  %v82_v7 = vld [vmem:[%s11395_s0 + $0x198] sm:$0x1] }
  0x7e   :  { %v180_v21 = vmul.f32 %v10493_v50, %v82_v7 }
  0x7f   :  { %6607 = vmatpush1.bf16.msra.mxu0 %v9320_v15  ;;  %6891 = vmatpush1.bf16.msra.mxu1 %v9322_v16  ;;  %v9403_v15 = vcombine.high %v868_v60, %v876_v0  ;;  %v891_v16 = vld [vmem:[#allocation2 + $0x1040] sm:$0xff]  ;;  %v245_v45 = vadd.f32 %v10543_v51, %v147_v23  ;;  %v924_v60 = vld [vmem:[#allocation2 + $0x1148] sm:$0xff] }
  0x80   :  { %6608 = vmatprep.subr.bf16.mxu0 %v9337_v17  ;;  %6892 = vmatprep.subr.bf16.mxu1 %v9339_v19  ;;  %v884_v17 = vld [vmem:[#allocation2 + $0x1008] sm:$0xff]  ;;  %v9417_v30 = vcombine.high %v883_v14, %v891_v16  ;;  %v9416_v47 = vcombine.low %v883_v14, %v891_v16  ;;  %v111_v14 = vsub.s32 5, %v10381_v43  ;;  %v931_v16 = vld [vmem:[#allocation2 + $0x1180] sm:$0xff] }
  0x81   :  { %v892_v19 = vld [vmem:[#allocation2 + $0x1048] sm:$0xff]  ;;  %v301_v0 = vmax.f32 %v245_v45, 0.0 }
  0x82   :  { %v9419_v31 = vcombine.high %v884_v17, %v892_v19  ;;  %v9418_v53 = vcombine.low %v884_v17, %v892_v19  ;;  %v939_v17 = vld [vmem:[#allocation2 + $0x11c0] sm:$0xff] }
  0x83   :  { %6609 = vmatpush1.bf16.msra.mxu0 %v9336_v24  ;;  %6893 = vmatpush1.bf16.msra.mxu1 %v9338_v26  ;;  %v155_v24 = vmul.f32 %v10532_v33, %v57_v9  ;;  %v66_v26 = vld [vmem:[%s11395_s0 + $0x118] sm:$0xff]  ;;  %v9464_v49 = vcombine.low %v931_v16, %v939_v17 }
  0x84   :  { %6610 = vmatprep.subr.bf16.mxu0 %v9353_v27  ;;  %6894 = vmatprep.subr.bf16.mxu1 %v9355_v28  ;;  %v74_v27 = vld [vmem:[%s11395_s0 + $0x158] sm:$0xff]  ;;  %v9400_v28 = vcombine.low %v867_v57, %v875_v59  ;;  %v10583_v57 = vpack.c.bf16 %v310_v38, %v302_v37  ;;  %v956_v37 = vld [vmem:[#allocation2 + $0x1248] sm:$0xff] }
  0x85   :  { %v253_v46 = vadd.f32 %v10543_v51, %v155_v24  ;;  %v261_v24 = vadd.f32 %v10543_v51, %v163_v4 }
  0x87   :  { %6611 = vmatpush1.bf16.msra.mxu0 %v9352_v35  ;;  %6895 = vmatpush1.bf16.msra.mxu1 %v9354_v39  ;;  %v907_v35 = vld [vmem:[#allocation2 + $0x10c0] sm:$0xff]  ;;  %v164_v39 = vmul.f32 %v10493_v50, %v66_v26  ;;  %v309_v3 = vmax.f32 %v253_v46, 0.0  ;;  %v36_v46 = vld [vmem:[%s11395_s0 + $0x28] sm:$0xff] }
  0x88   :  { %6612 = vmatprep.subr.bf16.mxu0 %v9369_v40  ;;  %6896 = vmatprep.subr.bf16.mxu1 %v9371_v41  ;;  %v172_v40 = vmul.f32 %v10493_v50, %v74_v27  ;;  %v10573_v41 = vpack.c.bf16 %v293_v13, %v285_v22  ;;  %v9432_v9 = vcombine.low %v899_v32, %v907_v35  ;;  %v932_v22 = vld [vmem:[#allocation2 + $0x1188] sm:$0xff] }
  0x89   :  { %v262_v59 = vadd.f32 %v10508_v5, %v164_v39  ;;  %v940_v13 = vld [vmem:[#allocation2 + $0x11c8] sm:$0xff]  ;;  %v10598_v23 = vpack.c.bf16 %v309_v3, %v301_v0  ;;  %v9465_v50 = vcombine.high %v931_v16, %v939_v17  ;;  %v278_v39 = vadd.f32 %v10508_v5, %v180_v21 }
  0x8a   :  { %v270_v62 = vadd.f32 %v10508_v5, %v172_v40  ;;  %v10609_v40 = vrot.slane %v10393_v61, %v111_v14  ;;  %v9466_v61 = vcombine.low %v932_v22, %v940_v13  ;;  %v980_v16 = vld [vmem:[#allocation2 + $0x1308] sm:$0xff] }
  0x8b   :  { %6613 = vmatpush1.bf16.msra.mxu0 %v9368_v54  ;;  %6897 = vmatpush1.bf16.msra.mxu1 %v9370_v55  ;;  %v9433_v54 = vcombine.high %v899_v32, %v907_v35  ;;  %v9435_v55 = vcombine.high %v900_v42, %v908_v44  ;;  %v318_v19 = vmax.f32 %v262_v59, 0.0  ;;  %v955_v32 = vld [vmem:[#allocation2 + $0x1240] sm:$0xff]  ;;  %v948_v35 = vld [vmem:[#allocation2 + $0x1208] sm:$0xff] }
  0x8c   :  { %6614 = vmatprep.subr.bf16.mxu0 %v9385_v56  ;;  %6898 = vmatprep.subr.bf16.mxu1 %v9387_v2  ;;  %v915_v56 = vld [vmem:[#allocation2 + $0x1100] sm:$0xff]  ;;  %v326_v20 = vmax.f32 %v270_v62, 0.0  ;;  %v964_v62 = vld [vmem:[#allocation2 + $0x1288] sm:$0xff]  ;;  %v9482_v4 = vcombine.low %v948_v35, %v956_v37 }
  0x8d   :  { %v923_v2 = vld [vmem:[#allocation2 + $0x1140] sm:$0xff]  ;;  %v988_v17 = vld [vmem:[#allocation2 + $0x1348] sm:$0xff] }
  0x8e   :  { %v9448_v27 = vcombine.low %v915_v56, %v923_v2  ;;  %v10605_v38 = vpack.c.bf16 %v326_v20, %v318_v19 }
  0x8f   :  { %6615 = vmatpush1.bf16.msra.mxu0 %v9384_v6  ;;  %6899 = vmatpush1.bf16.msra.mxu1 %v9386_v10  ;;  %v171_v6 = vmul.f32 %v10532_v33, %v73_v52  ;;  %v9434_v10 = vcombine.low %v900_v42, %v908_v44  ;;  %v317_v42 = vmax.f32 %v261_v24, 0.0  ;;  %v9483_v52 = vcombine.high %v948_v35, %v956_v37  ;;  %v1003_v24 = vld [vmem:[#allocation2 + $0x13c0] sm:$0xff] }
  0x90   :  { %6616 = vmatprep.subr.bf16.mxu0 %v9401_v11  ;;  %6900 = vmatprep.subr.bf16.mxu1 %v9403_v15  ;;  %v9449_v11 = vcombine.high %v915_v56, %v923_v2  ;;  %v9451_v15 = vcombine.high %v916_v63, %v924_v60  ;;  %v10626_v2 = vld [vmem:[%s11397_s2] sm:$0xff] }
  0x91   :  { %v269_v26 = vadd.f32 %v10543_v51, %v171_v6  ;;  %v10629_v59 = vrot.slane %v10626_v2, %v111_v14  ;;  %v1011_v37 = vld [vmem:[#allocation2 + $0x1400] sm:$0xff] }
  0x93   :  { %6617 = vmatpush1.bf16.msra.mxu0 %v9400_v28  ;;  %6901 = vmatpush1.bf16.msra.mxu1 %v9402_v29  ;;  %v81_v28 = vld [vmem:[%s11395_s0 + $0x190] sm:$0x1]  ;;  %v9450_v29 = vcombine.low %v916_v63, %v924_v60  ;;  %v325_v44 = vmax.f32 %v269_v26, 0.0  ;;  %v972_v63 = vld [vmem:[#allocation2 + $0x12c8] sm:$0xff] }
  0x94   :  { %6657 = vmatprep.subr.bf16.mxu0 %v9417_v30  ;;  %6941 = vmatprep.subr.bf16.mxu1 %v9419_v31  ;;  %v947_v30 = vld [vmem:[#allocation2 + $0x1200] sm:$0xff]  ;;  %v9467_v31 = vcombine.high %v932_v22, %v940_v13  ;;  %v179_v45 = vmul.f32 %v10532_v33, %v81_v28  ;;  %v9499_v7 = vcombine.high %v964_v62, %v972_v63  ;;  %v996_v28 = vld [vmem:[#allocation2 + $0x1388] sm:$0xff] }
  0x95   :  { %v9481_v5 = vcombine.high %v947_v30, %v955_v32  ;;  %v971_v33 = vld [vmem:[#allocation2 + $0x12c0] sm:$0xff]  ;;  %v10632_v60 = vpack.c.bf16 %v325_v44, %v317_v42  ;;  %v9480_v3 = vcombine.low %v947_v30, %v955_v32  ;;  %v9498_v20 = vcombine.low %v964_v62, %v972_v63  ;;  %v1012_v44 = vld [vmem:[#allocation2 + $0x1408] sm:$0xff] }
  0x96   :  { %6619 = vmatmul.mubr.bf16.vlgmr.msra.gmra.mrb[0].mxu0 %v10573_v41  ;;  %6903 = vmatmul.mubr.bf16.vlgmr.msra.gmra.mrb[0].mxu1 %v10573_v41  ;;  %v277_v0 = vadd.f32 %v10543_v51, %v179_v45  ;;  %v9515_v22 = vcombine.high %v980_v16, %v988_v17  ;;  %v995_v13 = vld [vmem:[#allocation2 + $0x1380] sm:$0xff]  ;;  %v1020_v45 = vld [vmem:[#allocation2 + $0x1448] sm:$0xff] }
  0x97   :  { %6658 = vmatpush1.bf16.msra.mxu0 %v9416_v47  ;;  %6942 = vmatpush1.bf16.msra.mxu1 %v9418_v53  ;;  %v44_v47 = vld [vmem:[%s11395_s0 + $0x68] sm:$0xff]  ;;  %v963_v53 = vld [vmem:[#allocation2 + $0x1280] sm:$0xff]  ;;  %v9529_v32 = vcombine.high %v995_v13, %v1003_v24 }
  0x98   :  { %6659 = vmatprep.subr.bf16.mxu0 %v9433_v54  ;;  %6943 = vmatprep.subr.bf16.mxu1 %v9435_v55  ;;  %v334_v54 = vmax.f32 %v278_v39, 0.0  ;;  %v134_v55 = vmul.f32 %v10609_v40, %v36_v46  ;;  %v142_v56 = vmul.f32 %v10609_v40, %v44_v47  ;;  %v9497_v6 = vcombine.high %v963_v53, %v971_v33  ;;  %v1019_v39 = vld [vmem:[#allocation2 + $0x1440] sm:$0xff] }
  0x99   :  { %6628 = vmatprep.mubr.bf16.mxu0 %v10583_v57  ;;  %6912 = vmatprep.mubr.bf16.mxu1 %v10583_v57  ;;  %v333_v51 = vmax.f32 %v277_v0, 0.0  ;;  %v9496_v19 = vcombine.low %v963_v53, %v971_v33  ;;  %v9528_v46 = vcombine.low %v995_v13, %v1003_v24  ;;  %v1028_v53 = vld [vmem:[#allocation2 + $0x1488] sm:$0xff]  ;;  %v1043_v63 = vld [vmem:[#allocation2 + $0x1500] sm:$0xff] }
  0x9a   :  { %v232_v14 = vadd.f32 %v10629_v59, %v134_v55  ;;  %v1036_v33 = vld [vmem:[#allocation2 + $0x14c8] sm:$0xff]  ;;  %v9546_v55 = vcombine.low %v1012_v44, %v1020_v45  ;;  %v1051_v0 = vld [vmem:[#allocation2 + $0x1540] sm:$0xff] }
  0x9b   :  { %6660 = vmatpush1.bf16.msra.mxu0 %v9432_v9  ;;  %6944 = vmatpush1.bf16.msra.mxu1 %v9434_v10  ;;  %v979_v9 = vld [vmem:[#allocation2 + $0x1300] sm:$0xff]  ;;  %v9563_v62 = vcombine.high %v1028_v53, %v1036_v33  ;;  %v1076_v24 = vld [vmem:[#allocation2 + $0x1608] sm:$0xff] }
  0x9c   :  { %6661 = vmatprep.subr.bf16.mxu0 %v9449_v11  ;;  %6945 = vmatprep.subr.bf16.mxu1 %v9451_v15  ;;  %v987_v10 = vld [vmem:[#allocation2 + $0x1340] sm:$0xff]  ;;  %v10635_v11 = vpack.c.bf16 %v334_v54, %v334_v54  ;;  %v240_v15 = vadd.f32 %v10629_v59, %v142_v56  ;;  %v288_v26 = vmax.f32 %v232_v14, 0.0  ;;  %v9544_v54 = vcombine.low %v1011_v37, %v1019_v39 }
  0x9d   :  { %v9513_v21 = vcombine.high %v979_v9, %v987_v10  ;;  %v9512_v30 = vcombine.low %v979_v9, %v987_v10  ;;  %v9577_v9 = vcombine.high %v1043_v63, %v1051_v0  ;;  %v1059_v14 = vld [vmem:[#allocation2 + $0x1580] sm:$0xff] }
  0x9e   :  { %6629 = vmatmul.mubr.bf16.gmra.mrb[4].mxu0 %v10598_v23  ;;  %6913 = vmatmul.mubr.bf16.gmra.mrb[4].mxu1 %v10598_v23  ;;  %v1083_v13 = vld [vmem:[#allocation2 + $0x1640] sm:$0xff] }
  0x9f   :  { %6662 = vmatpush1.bf16.msra.mxu0 %v9448_v27  ;;  %6946 = vmatpush1.bf16.msra.mxu1 %v9450_v29  ;;  %v296_v27 = vmax.f32 %v240_v15, 0.0  ;;  %v1004_v29 = vld [vmem:[#allocation2 + $0x13c8] sm:$0xff]  ;;  %v1067_v15 = vld [vmem:[#allocation2 + $0x15c0] sm:$0xff] }
  0xa0   :  { %6663 = vmatprep.subr.bf16.mxu0 %v9465_v50  ;;  %6947 = vmatprep.subr.bf16.mxu1 %v9467_v31  ;;  %v10643_v50 = vpack.c.bf16 %v333_v51, %v333_v51  ;;  %v9514_v31 = vcombine.low %v980_v16, %v988_v17  ;;  %v9531_v35 = vcombine.high %v996_v28, %v1004_v29  ;;  %v1060_v16 = vld [vmem:[#allocation2 + $0x1588] sm:$0xff] }
  0xa1   :  { %6638 = vmatprep.mubr.bf16.mxu0 %v10605_v38  ;;  %6922 = vmatprep.mubr.bf16.mxu1 %v10605_v38  ;;  %v10645_v42 = vpack.c.bf16 %v296_v27, %v288_v26  ;;  %v9530_v47 = vcombine.low %v996_v28, %v1004_v29  ;;  %v1068_v17 = vld [vmem:[#allocation2 + $0x15c8] sm:$0xff]  ;;  %v9576_v51 = vcombine.low %v1043_v63, %v1051_v0  ;;  %v107_v27 = vsub.s32 4, %v10381_v43 }
  0xa2   :  { %v1084_v26 = vld [vmem:[#allocation2 + $0x1648] sm:$0xff]  ;;  %v9592_v28 = vcombine.low %v1059_v14, %v1067_v15  ;;  %v9594_v29 = vcombine.low %v1060_v16, %v1068_v17 }
  0xa3   :  { %6664 = vmatpush1.bf16.msra.mxu0 %v9464_v49  ;;  %6948 = vmatpush1.bf16.msra.mxu1 %v9466_v61  ;;  %v9545_v49 = vcombine.high %v1011_v37, %v1019_v39  ;;  %v9547_v61 = vcombine.high %v1012_v44, %v1020_v45  ;;  %v1092_v37 = vld [vmem:[#allocation2 + $0x1688] sm:$0xff]  ;;  %v10655_v44 = vld [vmem:[%s11396_s1] sm:$0xff]  ;;  %v10669_v63 = vrot.slane %v10626_v2, %v107_v27 }
  0xa4   :  { %6665 = vmatprep.subr.bf16.mxu0 %v9481_v5  ;;  %6949 = vmatprep.subr.bf16.mxu1 %v9483_v52  ;;  %v1027_v5 = vld [vmem:[#allocation2 + $0x1480] sm:$0xff]  ;;  %v1100_v39 = vld [vmem:[#allocation2 + $0x16c8] sm:$0xff]  ;;  %v10658_v45 = vrot.slane %v10655_v44, %v107_v27 }
  0xa5   :  { %v1035_v52 = vld [vmem:[#allocation2 + $0x14c0] sm:$0xff]  ;;  %v52_v0 = vld [vmem:[%s11395_s0 + $0xa8] sm:$0xff] }
  0xa6   :  { %6639 = vmatmul.mubr.bf16.gmra.mrb[8].mxu0 %v10632_v60  ;;  %6923 = vmatmul.mubr.bf16.gmra.mrb[8].mxu1 %v10632_v60  ;;  %v9561_v56 = vcombine.high %v1027_v5, %v1035_v52  ;;  %v1139_v27 = vld [vmem:[#allocation2 + $0x1800] sm:$0xff] }
  0xa7   :  { %6666 = vmatpush1.bf16.msra.mxu0 %v9480_v3  ;;  %6950 = vmatpush1.bf16.msra.mxu1 %v9482_v4  ;;  %v1044_v3 = vld [vmem:[#allocation2 + $0x1508] sm:$0xff] }
  0xa8   :  { %6667 = vmatprep.subr.bf16.mxu0 %v9497_v6  ;;  %6951 = vmatprep.subr.bf16.mxu1 %v9499_v7  ;;  %v1052_v4 = vld [vmem:[#allocation2 + $0x1548] sm:$0xff]  ;;  %v9560_v6 = vcombine.low %v1027_v5, %v1035_v52  ;;  %v9562_v7 = vcombine.low %v1028_v53, %v1036_v33  ;;  %v9627_v52 = vcombine.high %v1092_v37, %v1100_v39  ;;  %v1107_v53 = vld [vmem:[#allocation2 + $0x1700] sm:$0xff] }
  0xa9   :  { %6648 = vmatprep.mubr.bf16.mxu0 %v10635_v11  ;;  %6932 = vmatprep.mubr.bf16.mxu1 %v10635_v11  ;;  %v9579_v10 = vcombine.high %v1044_v3, %v1052_v4  ;;  %v1115_v33 = vld [vmem:[#allocation2 + $0x1740] sm:$0xff] }
  0xab   :  { %6668 = vmatpush1.bf16.msra.mxu0 %v9496_v19  ;;  %6952 = vmatpush1.bf16.msra.mxu1 %v9498_v20  ;;  %v9578_v19 = vcombine.low %v1044_v3, %v1052_v4  ;;  %v9593_v20 = vcombine.high %v1059_v14, %v1067_v15  ;;  %v60_v3 = vld [vmem:[%s11395_s0 + $0xe8] sm:$0xff]  ;;  %v1131_v14 = vld [vmem:[#allocation2 + $0x17c0] sm:$0xff]  ;;  %v150_v15 = vmul.f32 %v10609_v40, %v52_v0 }
  0xac   :  { %6669 = vmatprep.subr.bf16.mxu0 %v9513_v21  ;;  %6953 = vmatprep.subr.bf16.mxu1 %v9515_v22  ;;  %v9595_v21 = vcombine.high %v1060_v16, %v1068_v17  ;;  %v1075_v22 = vld [vmem:[#allocation2 + $0x1600] sm:$0xff]  ;;  %v158_v16 = vmul.f32 %v10609_v40, %v60_v3  ;;  %v1124_v17 = vld [vmem:[#allocation2 + $0x1788] sm:$0xff] }
  0xae   :  { %6649 = vmatmul.mubr.bf16.gmra.mrb[12].mxu0 %v10643_v50  ;;  %6933 = vmatmul.mubr.bf16.gmra.mrb[12].mxu1 %v10643_v50 }
  0xaf   :  { %6670 = vmatpush1.bf16.msra.mxu0 %v9512_v30  ;;  %6954 = vmatpush1.bf16.msra.mxu1 %v9514_v31  ;;  %v9609_v30 = vcombine.high %v1075_v22, %v1083_v13  ;;  %v9611_v31 = vcombine.high %v1076_v24, %v1084_v26 }
  0xb0   :  { %6671 = vmatprep.subr.bf16.mxu0 %v9529_v32  ;;  %6955 = vmatprep.subr.bf16.mxu1 %v9531_v35  ;;  %v1091_v32 = vld [vmem:[#allocation2 + $0x1680] sm:$0xff] }
  0xb1   :  { %6689 = vmatprep.mubr.bf16.mxu0 %v10645_v42  ;;  %6973 = vmatprep.mubr.bf16.mxu1 %v10645_v42  ;;  %v1099_v35 = vld [vmem:[#allocation2 + $0x16c0] sm:$0xff] }
  0xb2   :  { %v9625_v5 = vcombine.high %v1091_v32, %v1099_v35  ;;  %v9624_v4 = vcombine.low %v1091_v32, %v1099_v35  ;;  %v248_v32 = vadd.f32 %v10629_v59, %v150_v15  ;;  %v256_v35 = vadd.f32 %v10629_v59, %v158_v16  ;;  %v67_v15 = vld [vmem:[%s11395_s0 + $0x120] sm:$0xff] }
  0xb3   :  { %6672 = vmatpush1.bf16.msra.mxu0 %v9528_v46  ;;  %6956 = vmatpush1.bf16.msra.mxu1 %v9530_v47  ;;  %v9608_v46 = vcombine.low %v1075_v22, %v1083_v13  ;;  %v35_v47 = vld [vmem:[%s11395_s0 + $0x20] sm:$0xff] }
  0xb4   :  { %6673 = vmatprep.subr.bf16.mxu0 %v9545_v49  ;;  %6957 = vmatprep.subr.bf16.mxu1 %v9547_v61  ;;  %v43_v49 = vld [vmem:[%s11395_s0 + $0x60] sm:$0xff]  ;;  %v9610_v61 = vcombine.low %v1076_v24, %v1084_v26 }
  0xb5   :  { %v51_v22 = vld [vmem:[%s11395_s0 + $0xa0] sm:$0xff] }
  0xb6   :  { %v59_v13 = vld [vmem:[%s11395_s0 + $0xe0] sm:$0xff] }
  0xb7   :  { %6674 = vmatpush1.bf16.msra.mxu0 %v9544_v54  ;;  %6958 = vmatpush1.bf16.msra.mxu1 %v9546_v55  ;;  %v1108_v54 = vld [vmem:[#allocation2 + $0x1708] sm:$0xff]  ;;  %v75_v16 = vld [vmem:[%s11395_s0 + $0x160] sm:$0xff] }
  0xb8   :  { %6675 = vmatprep.subr.bf16.mxu0 %v9561_v56  ;;  %6959 = vmatprep.subr.bf16.mxu1 %v9563_v62  ;;  %v1116_v55 = vld [vmem:[#allocation2 + $0x1748] sm:$0xff]  ;;  %v133_v56 = vmul.f32 %v10658_v45, %v35_v47  ;;  %v141_v62 = vmul.f32 %v10658_v45, %v43_v49  ;;  %v157_v47 = vmul.f32 %v10658_v45, %v59_v13 }
  0xb9   :  { %v9642_v24 = vcombine.low %v1108_v54, %v1116_v55  ;;  %v68_v49 = vld [vmem:[%s11395_s0 + $0x128] sm:$0xff] }
  0xba   :  { %v166_v0 = vmul.f32 %v10609_v40, %v68_v49  ;;  %v1180_v13 = vld [vmem:[#allocation2 + $0x1948] sm:$0xff]  ;;  %v1195_v49 = vld [vmem:[#allocation2 + $0x19c0] sm:$0xff] }
  0xbb   :  { %6676 = vmatpush1.bf16.msra.mxu0 %v9560_v6  ;;  %6960 = vmatpush1.bf16.msra.mxu1 %v9562_v7  ;;  %v9626_v6 = vcombine.low %v1092_v37, %v1100_v39  ;;  %v9641_v7 = vcombine.high %v1107_v53, %v1115_v33 }
  0xbc   :  { %6677 = vmatprep.subr.bf16.mxu0 %v9577_v9  ;;  %6961 = vmatprep.subr.bf16.mxu1 %v9579_v10  ;;  %v9643_v9 = vcombine.high %v1108_v54, %v1116_v55  ;;  %v1123_v10 = vld [vmem:[#allocation2 + $0x1780] sm:$0xff] }
  0xbd   :  { %v9657_v26 = vcombine.high %v1123_v10, %v1131_v14  ;;  %v1155_v54 = vld [vmem:[#allocation2 + $0x1880] sm:$0xff] }
  0xbe   :  { %v1163_v55 = vld [vmem:[#allocation2 + $0x18c0] sm:$0xff] }
  0xbf   :  { %6678 = vmatpush1.bf16.msra.mxu0 %v9576_v51  ;;  %6962 = vmatpush1.bf16.msra.mxu1 %v9578_v19  ;;  %v1132_v51 = vld [vmem:[#allocation2 + $0x17c8] sm:$0xff]  ;;  %v231_v19 = vadd.f32 %v10669_v63, %v133_v56  ;;  %v304_v56 = vmax.f32 %v248_v32, 0.0  ;;  %v165_v32 = vmul.f32 %v10658_v45, %v67_v15 }
  0xc0   :  { %6679 = vmatprep.subr.bf16.mxu0 %v9593_v20  ;;  %6963 = vmatprep.subr.bf16.mxu1 %v9595_v21  ;;  %v239_v20 = vadd.f32 %v10669_v63, %v141_v62  ;;  %v9640_v21 = vcombine.low %v1107_v53, %v1115_v33  ;;  %v312_v62 = vmax.f32 %v256_v35, 0.0  ;;  %v9688_v35 = vcombine.low %v1155_v54, %v1163_v55  ;;  %v1212_v15 = vld [vmem:[#allocation2 + $0x1a48] sm:$0xff] }
  0xc1   :  { %v287_v37 = vmax.f32 %v231_v19, 0.0  ;;  %v1171_v19 = vld [vmem:[#allocation2 + $0x1900] sm:$0xff] }
  0xc2   :  { %v295_v39 = vmax.f32 %v239_v20, 0.0 }
  0xc3   :  { %6680 = vmatpush1.bf16.msra.mxu0 %v9592_v28  ;;  %6964 = vmatpush1.bf16.msra.mxu1 %v9594_v29  ;;  %v9659_v28 = vcombine.high %v1124_v17, %v1132_v51  ;;  %v1147_v29 = vld [vmem:[#allocation2 + $0x1840] sm:$0xff] }
  0xc4   :  { %6681 = vmatprep.subr.bf16.mxu0 %v9609_v30  ;;  %6965 = vmatprep.subr.bf16.mxu1 %v9611_v31  ;;  %v1140_v30 = vld [vmem:[#allocation2 + $0x1808] sm:$0xff]  ;;  %v9673_v53 = vcombine.high %v1139_v27, %v1147_v29 }
  0xc5   :  { %v1148_v31 = vld [vmem:[#allocation2 + $0x1848] sm:$0xff] }
  0xc6   :  { %v9675_v33 = vcombine.high %v1140_v30, %v1148_v31 }
  0xc7   :  { %6682 = vmatpush1.bf16.msra.mxu0 %v9608_v46  ;;  %6966 = vmatpush1.bf16.msra.mxu1 %v9610_v61  ;;  %v149_v46 = vmul.f32 %v10658_v45, %v51_v22  ;;  %v76_v61 = vld [vmem:[%s11395_s0 + $0x168] sm:$0xff] }
  0xc8   :  { %6683 = vmatprep.subr.bf16.mxu0 %v9625_v5  ;;  %6967 = vmatprep.subr.bf16.mxu1 %v9627_v52  ;;  %v9656_v5 = vcombine.low %v1123_v10, %v1131_v14  ;;  %v9658_v52 = vcombine.low %v1124_v17, %v1132_v51  ;;  %v174_v3 = vmul.f32 %v10609_v40, %v76_v61  ;;  %v1172_v22 = vld [vmem:[#allocation2 + $0x1908] sm:$0xff] }
  0xc9   :  { %v255_v10 = vadd.f32 %v10669_v63, %v157_v47  ;;  %v9672_v14 = vcombine.low %v1139_v27, %v1147_v29  ;;  %v9674_v17 = vcombine.low %v1140_v30, %v1148_v31  ;;  %v9689_v51 = vcombine.high %v1155_v54, %v1163_v55  ;;  %v84_v31 = vld [vmem:[%s11395_s0 + $0x1a8] sm:$0x1]  ;;  %v1187_v47 = vld [vmem:[#allocation2 + $0x1980] sm:$0xff] }
  0xca   :  { %v272_v27 = vadd.f32 %v10629_v59, %v174_v3  ;;  %v173_v30 = vmul.f32 %v10658_v45, %v75_v16  ;;  %v263_v55 = vadd.f32 %v10669_v63, %v165_v32  ;;  %v83_v3 = vld [vmem:[%s11395_s0 + $0x1a0] sm:$0x1] }
  0xcb   :  { %6684 = vmatpush1.bf16.msra.mxu0 %v9624_v4  ;;  %6968 = vmatpush1.bf16.msra.mxu1 %v9626_v6  ;;  %v10699_v4 = vpack.c.bf16 %v295_v39, %v287_v37  ;;  %v1156_v6 = vld [vmem:[#allocation2 + $0x1888] sm:$0xff]  ;;  %v311_v29 = vmax.f32 %v255_v10, 0.0  ;;  %v1211_v10 = vld [vmem:[#allocation2 + $0x1a40] sm:$0xff] }
  0xcc   :  { %6685 = vmatprep.subr.bf16.mxu0 %v9641_v7  ;;  %6969 = vmatprep.subr.bf16.mxu1 %v9643_v9  ;;  %v1164_v7 = vld [vmem:[#allocation2 + $0x18c8] sm:$0xff]  ;;  %v247_v9 = vadd.f32 %v10669_v63, %v149_v46  ;;  %v9707_v46 = vcombine.high %v1172_v22, %v1180_v13 }
  0xcd   :  { %v9691_v20 = vcombine.high %v1156_v6, %v1164_v7  ;;  %v9690_v37 = vcombine.low %v1156_v6, %v1164_v7  ;;  %v9721_v6 = vcombine.high %v1187_v47, %v1195_v49  ;;  %v1203_v7 = vld [vmem:[#allocation2 + $0x1a00] sm:$0xff] }
  0xcf   :  { %6686 = vmatpush1.bf16.msra.mxu0 %v9640_v21  ;;  %6970 = vmatpush1.bf16.msra.mxu1 %v9642_v24  ;;  %v1179_v21 = vld [vmem:[#allocation2 + $0x1940] sm:$0xff]  ;;  %v10709_v24 = vpack.c.bf16 %v312_v62, %v304_v56  ;;  %v1196_v56 = vld [vmem:[#allocation2 + $0x19c8] sm:$0xff]  ;;  %v271_v62 = vadd.f32 %v10669_v63, %v173_v30 }
  0xd0   :  { %6687 = vmatprep.subr.bf16.mxu0 %v9657_v26  ;;  %6971 = vmatprep.subr.bf16.mxu1 %v9659_v28  ;;  %v264_v26 = vadd.f32 %v10629_v59, %v166_v0  ;;  %v303_v28 = vmax.f32 %v247_v9, 0.0  ;;  %v9705_v39 = vcombine.high %v1171_v19, %v1179_v21  ;;  %v9704_v0 = vcombine.low %v1171_v19, %v1179_v21 }
  0xd1   :  { %v319_v19 = vmax.f32 %v263_v55, 0.0  ;;  %v181_v21 = vmul.f32 %v10658_v45, %v83_v3  ;;  %v1227_v45 = vld [vmem:[#allocation2 + $0x1ac0] sm:$0xff]  ;;  %v1244_v3 = vld [vmem:[#allocation2 + $0x1b48] sm:$0xff] }
  0xd2   :  { %v320_v61 = vmax.f32 %v264_v26, 0.0  ;;  %v10724_v54 = vpack.c.bf16 %v311_v29, %v303_v28  ;;  %v9720_v26 = vcombine.low %v1187_v47, %v1195_v49  ;;  %v1219_v29 = vld [vmem:[#allocation2 + $0x1a80] sm:$0xff]  ;;  %v9736_v49 = vcombine.low %v1203_v7, %v1211_v10 }
  0xd3   :  { %6688 = vmatpush1.bf16.msra.mxu0 %v9656_v5  ;;  %6972 = vmatpush1.bf16.msra.mxu1 %v9658_v52  ;;  %v328_v5 = vmax.f32 %v272_v27, 0.0  ;;  %v182_v52 = vmul.f32 %v10609_v40, %v84_v31  ;;  %v9706_v40 = vcombine.low %v1172_v22, %v1180_v13  ;;  %v38_v22 = vld [vmem:[%s11395_s0 + $0x38] sm:$0xff]  ;;  %v9737_v27 = vcombine.high %v1203_v7, %v1211_v10  ;;  %v1251_v10 = vld [vmem:[#allocation2 + $0x1b80] sm:$0xff] }
  0xd4   :  { %6728 = vmatprep.subr.bf16.mxu0 %v9673_v53  ;;  %7012 = vmatprep.subr.bf16.mxu1 %v9675_v33  ;;  %v119_v53 = vsub.s32 7, %v10381_v43  ;;  %v1188_v33 = vld [vmem:[#allocation2 + $0x1988] sm:$0xff]  ;;  %v46_v13 = vld [vmem:[%s11395_s0 + $0x78] sm:$0xff]  ;;  %v279_v47 = vadd.f32 %v10669_v63, %v181_v21 }
  0xd5   :  { %v9723_v9 = vcombine.high %v1188_v33, %v1196_v56  ;;  %v10731_v16 = vpack.c.bf16 %v328_v5, %v320_v61  ;;  %v9753_v5 = vcombine.high %v1219_v29, %v1227_v45 }
  0xd6   :  { %6690 = vmatmul.mubr.bf16.vlgmr.msra.gmra.mrb[0].mxu0 %v10699_v4  ;;  %6974 = vmatmul.mubr.bf16.vlgmr.msra.gmra.mrb[0].mxu1 %v10699_v4  ;;  %v335_v63 = vmax.f32 %v279_v47, 0.0  ;;  %v1283_v47 = vld [vmem:[#allocation2 + $0x1c80] sm:$0xff] }
  0xd7   :  { %6729 = vmatpush1.bf16.msra.mxu0 %v9672_v14  ;;  %7013 = vmatpush1.bf16.msra.mxu1 %v9674_v17  ;;  %v1204_v14 = vld [vmem:[#allocation2 + $0x1a08] sm:$0xff]  ;;  %v280_v17 = vadd.f32 %v10629_v59, %v182_v52  ;;  %v9722_v59 = vcombine.low %v1188_v33, %v1196_v56  ;;  %v1235_v33 = vld [vmem:[#allocation2 + $0x1b00] sm:$0xff] }
  0xd8   :  { %6730 = vmatprep.subr.bf16.mxu0 %v9689_v51  ;;  %7014 = vmatprep.subr.bf16.mxu1 %v9691_v20  ;;  %v10735_v51 = vrot.slane %v10655_v44, %v119_v53  ;;  %v327_v20 = vmax.f32 %v271_v62, 0.0  ;;  %v9739_v28 = vcombine.high %v1204_v14, %v1212_v15  ;;  %v9738_v61 = vcombine.low %v1204_v14, %v1212_v15  ;;  %v1243_v56 = vld [vmem:[#allocation2 + $0x1b40] sm:$0xff] }
  0xd9   :  { %6699 = vmatprep.mubr.bf16.mxu0 %v10709_v24  ;;  %6983 = vmatprep.mubr.bf16.mxu1 %v10709_v24  ;;  %v336_v32 = vmax.f32 %v280_v17, 0.0  ;;  %v9769_v7 = vcombine.high %v1235_v33, %v1243_v56  ;;  %v1259_v14 = vld [vmem:[#allocation2 + $0x1bc0] sm:$0xff]  ;;  %v10764_v21 = vpack.c.bf16 %v335_v63, %v335_v63  ;;  %v1308_v63 = vld [vmem:[#allocation2 + $0x1d48] sm:$0xff] }
  0xda   :  { %v136_v30 = vmul.f32 %v10735_v51, %v38_v22  ;;  %v144_v31 = vmul.f32 %v10735_v51, %v46_v13  ;;  %v9768_v22 = vcombine.low %v1235_v33, %v1243_v56 }
  0xdb   :  { %6731 = vmatpush1.bf16.msra.mxu0 %v9688_v35  ;;  %7015 = vmatpush1.bf16.msra.mxu1 %v9690_v37  ;;  %v10750_v35 = vrot.slane %v10626_v2, %v119_v53  ;;  %v1220_v37 = vld [vmem:[#allocation2 + $0x1a88] sm:$0xff]  ;;  %v10756_v53 = vpack.c.bf16 %v336_v32, %v336_v32 }
  0xdc   :  { %6732 = vmatprep.subr.bf16.mxu0 %v9705_v39  ;;  %7016 = vmatprep.subr.bf16.mxu1 %v9707_v46  ;;  %v1228_v39 = vld [vmem:[#allocation2 + $0x1ac8] sm:$0xff]  ;;  %v10753_v46 = vpack.c.bf16 %v327_v20, %v319_v19 }
  0xdd   :  { %v9755_v52 = vcombine.high %v1220_v37, %v1228_v39  ;;  %v234_v55 = vadd.f32 %v10750_v35, %v136_v30  ;;  %v242_v62 = vadd.f32 %v10750_v35, %v144_v31  ;;  %v1252_v19 = vld [vmem:[#allocation2 + $0x1b88] sm:$0xff]  ;;  %v9784_v30 = vcombine.low %v1251_v10, %v1259_v14 }
  0xde   :  { %6700 = vmatmul.mubr.bf16.gmra.mrb[4].mxu0 %v10724_v54  ;;  %6984 = vmatmul.mubr.bf16.gmra.mrb[4].mxu1 %v10724_v54  ;;  %v1260_v20 = vld [vmem:[#allocation2 + $0x1bc8] sm:$0xff] }
  0xdf   :  { %6733 = vmatpush1.bf16.msra.mxu0 %v9704_v0  ;;  %7017 = vmatpush1.bf16.msra.mxu1 %v9706_v40  ;;  %v1236_v0 = vld [vmem:[#allocation2 + $0x1b08] sm:$0xff]  ;;  %v9752_v40 = vcombine.low %v1219_v29, %v1227_v45  ;;  %v290_v15 = vmax.f32 %v234_v55, 0.0  ;;  %v298_v17 = vmax.f32 %v242_v62, 0.0  ;;  %v9786_v31 = vcombine.low %v1252_v19, %v1260_v20  ;;  %v1299_v62 = vld [vmem:[#allocation2 + $0x1d00] sm:$0xff] }
  0xe0   :  { %6734 = vmatprep.subr.bf16.mxu0 %v9721_v6  ;;  %7018 = vmatprep.subr.bf16.mxu1 %v9723_v9  ;;  %v9754_v6 = vcombine.low %v1220_v37, %v1228_v39  ;;  %v9771_v9 = vcombine.high %v1236_v0, %v1244_v3  ;;  %v9770_v13 = vcombine.low %v1236_v0, %v1244_v3  ;;  %v1268_v45 = vld [vmem:[#allocation2 + $0x1c08] sm:$0xff]  ;;  %v1307_v0 = vld [vmem:[#allocation2 + $0x1d40] sm:$0xff] }
  0xe1   :  { %6709 = vmatprep.mubr.bf16.mxu0 %v10731_v16  ;;  %6993 = vmatprep.mubr.bf16.mxu1 %v10731_v16  ;;  %v10766_v29 = vpack.c.bf16 %v298_v17, %v290_v15  ;;  %v1276_v32 = vld [vmem:[#allocation2 + $0x1c48] sm:$0xff] }
  0xe2   :  { %v9803_v39 = vcombine.high %v1268_v45, %v1276_v32  ;;  %v9802_v33 = vcombine.low %v1268_v45, %v1276_v32  ;;  %v1300_v3 = vld [vmem:[#allocation2 + $0x1d08] sm:$0xff]  ;;  %v115_v45 = vsub.s32 6, %v10381_v43  ;;  %v37_v43 = vld [vmem:[%s11395_s0 + $0x30] sm:$0xff] }
  0xe3   :  { %6735 = vmatpush1.bf16.msra.mxu0 %v9720_v26  ;;  %7019 = vmatpush1.bf16.msra.mxu1 %v9722_v59  ;;  %v9785_v26 = vcombine.high %v1251_v10, %v1259_v14  ;;  %v9787_v59 = vcombine.high %v1252_v19, %v1260_v20  ;;  %v1315_v10 = vld [vmem:[#allocation2 + $0x1d80] sm:$0xff]  ;;  %v1316_v15 = vld [vmem:[#allocation2 + $0x1d88] sm:$0xff]  ;;  %v9832_v19 = vcombine.low %v1299_v62, %v1307_v0 }
  0xe4   :  { %6736 = vmatprep.subr.bf16.mxu0 %v9737_v27  ;;  %7020 = vmatprep.subr.bf16.mxu1 %v9739_v28  ;;  %v1267_v27 = vld [vmem:[#allocation2 + $0x1c00] sm:$0xff]  ;;  %v1324_v17 = vld [vmem:[#allocation2 + $0x1dc8] sm:$0xff]  ;;  %v9834_v20 = vcombine.low %v1300_v3, %v1308_v63 }
  0xe5   :  { %v1275_v28 = vld [vmem:[#allocation2 + $0x1c40] sm:$0xff] }
  0xe6   :  { %6710 = vmatmul.mubr.bf16.gmra.mrb[8].mxu0 %v10753_v46  ;;  %6994 = vmatmul.mubr.bf16.gmra.mrb[8].mxu1 %v10753_v46  ;;  %v9801_v37 = vcombine.high %v1267_v27, %v1275_v28  ;;  %v1323_v14 = vld [vmem:[#allocation2 + $0x1dc0] sm:$0xff] }
  0xe7   :  { %6737 = vmatpush1.bf16.msra.mxu0 %v9736_v49  ;;  %7021 = vmatpush1.bf16.msra.mxu1 %v9738_v61  ;;  %v1291_v49 = vld [vmem:[#allocation2 + $0x1cc0] sm:$0xff]  ;;  %v1284_v61 = vld [vmem:[#allocation2 + $0x1c88] sm:$0xff]  ;;  %v9848_v32 = vcombine.low %v1315_v10, %v1323_v14 }
  0xe8   :  { %6738 = vmatprep.subr.bf16.mxu0 %v9753_v5  ;;  %7022 = vmatprep.subr.bf16.mxu1 %v9755_v52  ;;  %v1292_v5 = vld [vmem:[#allocation2 + $0x1cc8] sm:$0xff]  ;;  %v9800_v52 = vcombine.low %v1267_v27, %v1275_v28  ;;  %v9817_v56 = vcombine.high %v1283_v47, %v1291_v49 }
  0xe9   :  { %6719 = vmatprep.mubr.bf16.mxu0 %v10756_v53  ;;  %7003 = vmatprep.mubr.bf16.mxu1 %v10756_v53  ;;  %v9819_v55 = vcombine.high %v1284_v61, %v1292_v5  ;;  %v1332_v27 = vld [vmem:[#allocation2 + $0x1e08] sm:$0xff] }
  0xea   :  { %v1340_v28 = vld [vmem:[#allocation2 + $0x1e48] sm:$0xff] }
  0xeb   :  { %6739 = vmatpush1.bf16.msra.mxu0 %v9752_v40  ;;  %7023 = vmatpush1.bf16.msra.mxu1 %v9754_v6  ;;  %v9816_v40 = vcombine.low %v1283_v47, %v1291_v49  ;;  %v9818_v6 = vcombine.low %v1284_v61, %v1292_v5  ;;  %v1355_v47 = vld [vmem:[#allocation2 + $0x1ec0] sm:$0xff]  ;;  %v1348_v49 = vld [vmem:[#allocation2 + $0x1e88] sm:$0xff]  ;;  %v10774_v5 = vrot.slane %v10655_v44, %v115_v45 }
  0xec   :  { %6740 = vmatprep.subr.bf16.mxu0 %v9769_v7  ;;  %7024 = vmatprep.subr.bf16.mxu1 %v9771_v9  ;;  %v9833_v7 = vcombine.high %v1299_v62, %v1307_v0  ;;  %v9835_v9 = vcombine.high %v1300_v3, %v1308_v63  ;;  %v1356_v61 = vld [vmem:[#allocation2 + $0x1ec8] sm:$0xff]  ;;  %v1363_v0 = vld [vmem:[#allocation2 + $0x1f00] sm:$0xff] }
  0xed   :  { %v9883_v62 = vcombine.high %v1348_v49, %v1356_v61  ;;  %v1371_v3 = vld [vmem:[#allocation2 + $0x1f40] sm:$0xff]  ;;  %v1364_v44 = vld [vmem:[#allocation2 + $0x1f08] sm:$0xff] }
  0xee   :  { %6720 = vmatmul.mubr.bf16.gmra.mrb[12].mxu0 %v10764_v21  ;;  %7004 = vmatmul.mubr.bf16.gmra.mrb[12].mxu1 %v10764_v21  ;;  %v1372_v63 = vld [vmem:[#allocation2 + $0x1f48] sm:$0xff] }
  0xef   :  { %6741 = vmatpush1.bf16.msra.mxu0 %v9768_v22  ;;  %7025 = vmatpush1.bf16.msra.mxu1 %v9770_v13  ;;  %v9849_v22 = vcombine.high %v1315_v10, %v1323_v14  ;;  %v9851_v13 = vcombine.high %v1316_v15, %v1324_v17  ;;  %v62_v10 = vld [vmem:[%s11395_s0 + $0xf8] sm:$0xff] }
  0xf0   :  { %6742 = vmatprep.subr.bf16.mxu0 %v9785_v26  ;;  %7026 = vmatprep.subr.bf16.mxu1 %v9787_v59  ;;  %v1331_v26 = vld [vmem:[#allocation2 + $0x1e00] sm:$0xff] }
  0xf1   :  { %6760 = vmatprep.mubr.bf16.mxu0 %v10766_v29  ;;  %7044 = vmatprep.mubr.bf16.mxu1 %v10766_v29  ;;  %v1339_v59 = vld [vmem:[#allocation2 + $0x1e40] sm:$0xff] }
  0xf3   :  { %6743 = vmatpush1.bf16.msra.mxu0 %v9784_v30  ;;  %7027 = vmatpush1.bf16.msra.mxu1 %v9786_v31  ;;  %v9850_v30 = vcombine.low %v1316_v15, %v1324_v17  ;;  %v9865_v31 = vcombine.high %v1331_v26, %v1339_v59  ;;  %v9882_v15 = vcombine.low %v1348_v49, %v1356_v61  ;;  %v381_v49 = vld [vmem:[#allocation2 + $0x50] sm:$0xff]  ;;  %v374_v61 = vld [vmem:[#allocation2 + $0x18] sm:$0xff] }
  0xf4   :  { %6744 = vmatprep.subr.bf16.mxu0 %v9801_v37  ;;  %7028 = vmatprep.subr.bf16.mxu1 %v9803_v39  ;;  %v9867_v37 = vcombine.high %v1332_v27, %v1340_v28  ;;  %v1347_v39 = vld [vmem:[#allocation2 + $0x1e80] sm:$0xff]  ;;  %v9897_v17 = vcombine.high %v1363_v0, %v1371_v3 }
  0xf5   :  { %v9880_v14 = vcombine.low %v1347_v39, %v1355_v47 }
  0xf7   :  { %6745 = vmatpush1.bf16.msra.mxu0 %v9800_v52  ;;  %7029 = vmatpush1.bf16.msra.mxu1 %v9802_v33  ;;  %v9864_v52 = vcombine.low %v1331_v26, %v1339_v59  ;;  %v45_v33 = vld [vmem:[%s11395_s0 + $0x70] sm:$0xff]  ;;  %v1380_v26 = vld [vmem:[#allocation2 + $0x1f88] sm:$0xff] }
  0xf8   :  { %6746 = vmatprep.subr.bf16.mxu0 %v9817_v56  ;;  %7030 = vmatprep.subr.bf16.mxu1 %v9819_v55  ;;  %v9866_v56 = vcombine.low %v1332_v27, %v1340_v28  ;;  %v9881_v55 = vcombine.high %v1347_v39, %v1355_v47  ;;  %v1388_v59 = vld [vmem:[#allocation2 + $0x1fc8] sm:$0xff]  ;;  %v373_v39 = vld [vmem:[#allocation2 + $0x10] sm:$0xff] }
  0xf9   :  { %v9915_v47 = vcombine.high %v1380_v26, %v1388_v59 }
  0xfb   :  { %6747 = vmatpush1.bf16.msra.mxu0 %v9816_v40  ;;  %7031 = vmatpush1.bf16.msra.mxu1 %v9818_v6  ;;  %v135_v40 = vmul.f32 %v10774_v5, %v37_v43  ;;  %v143_v6 = vmul.f32 %v10774_v5, %v45_v33 }
  0xfc   :  { %6748 = vmatprep.subr.bf16.mxu0 %v9833_v7  ;;  %7032 = vmatprep.subr.bf16.mxu1 %v9835_v9  ;;  %v10785_v7 = vrot.slane %v10626_v2, %v115_v45  ;;  %v54_v9 = vld [vmem:[%s11395_s0 + $0xb8] sm:$0xff]  ;;  %v9896_v45 = vcombine.low %v1363_v0, %v1371_v3 }
  0xfd   :  { %v152_v2 = vmul.f32 %v10735_v51, %v54_v9  ;;  %v70_v3 = vld [vmem:[%s11395_s0 + $0x138] sm:$0xff] }
  0xfe   :  { %v233_v27 = vadd.f32 %v10785_v7, %v135_v40  ;;  %v241_v28 = vadd.f32 %v10785_v7, %v143_v6  ;;  %v9914_v40 = vcombine.low %v1380_v26, %v1388_v59  ;;  %v8909_v6 = vcombine.high %v373_v39, %v381_v49  ;;  %v69_v59 = vld [vmem:[%s11395_s0 + $0x130] sm:$0xff] }
  0xff   :  { %6749 = vmatpush1.bf16.msra.mxu0 %v9832_v19  ;;  %7033 = vmatpush1.bf16.msra.mxu1 %v9834_v20  ;;  %v9899_v19 = vcombine.high %v1364_v44, %v1372_v63  ;;  %v1379_v20 = vld [vmem:[#allocation2 + $0x1f80] sm:$0xff]  ;;  %v250_v43 = vadd.f32 %v10750_v35, %v152_v2  ;;  %v8908_v26 = vcombine.low %v373_v39, %v381_v49 }
 0x100   :  { %6750 = vmatprep.subr.bf16.mxu0 %v9849_v22  ;;  %7034 = vmatprep.subr.bf16.mxu1 %v9851_v13  ;;  %v1387_v22 = vld [vmem:[#allocation2 + $0x1fc0] sm:$0xff]  ;;  %v160_v13 = vmul.f32 %v10735_v51, %v62_v10  ;;  %v389_v10 = vld [vmem:[#allocation2 + $0x90] sm:$0xff] }
 0x102   :  { %v258_v33 = vadd.f32 %v10750_v35, %v160_v13 }
 0x103   :  { %6751 = vmatpush1.bf16.msra.mxu0 %v9848_v32  ;;  %7035 = vmatpush1.bf16.msra.mxu1 %v9850_v30  ;;  %v53_v32 = vld [vmem:[%s11395_s0 + $0xb0] sm:$0xff] }
 0x104   :  { %6752 = vmatprep.subr.bf16.mxu0 %v9865_v31  ;;  %7036 = vmatprep.subr.bf16.mxu1 %v9867_v37  ;;  %v61_v30 = vld [vmem:[%s11395_s0 + $0xf0] sm:$0xff]  ;;  %v9898_v31 = vcombine.low %v1364_v44, %v1372_v63  ;;  %v9913_v37 = vcombine.high %v1379_v20, %v1387_v22  ;;  %v78_v44 = vld [vmem:[%s11395_s0 + $0x178] sm:$0xff]  ;;  %v9912_v63 = vcombine.low %v1379_v20, %v1387_v22 }
 0x105   :  { %v159_v0 = vmul.f32 %v10774_v5, %v61_v30  ;;  %v176_v2 = vmul.f32 %v10735_v51, %v78_v44 }
 0x107   :  { %6753 = vmatpush1.bf16.msra.mxu0 %v9864_v52  ;;  %7037 = vmatpush1.bf16.msra.mxu1 %v9866_v56  ;;  %v382_v52 = vld [vmem:[#allocation2 + $0x58] sm:$0xff]  ;;  %v289_v56 = vmax.f32 %v233_v27, 0.0  ;;  %v257_v22 = vadd.f32 %v10785_v7, %v159_v0  ;;  %v274_v49 = vadd.f32 %v10750_v35, %v176_v2  ;;  %v167_v0 = vmul.f32 %v10774_v5, %v69_v59 }
 0x108   :  { %6754 = vmatprep.subr.bf16.mxu0 %v9881_v55  ;;  %7038 = vmatprep.subr.bf16.mxu1 %v9883_v62  ;;  %v297_v55 = vmax.f32 %v241_v28, 0.0  ;;  %v151_v62 = vmul.f32 %v10774_v5, %v53_v32  ;;  %v8911_v9 = vcombine.high %v374_v61, %v382_v52  ;;  %v390_v27 = vld [vmem:[#allocation2 + $0x98] sm:$0xff]  ;;  %v8910_v32 = vcombine.low %v374_v61, %v382_v52 }
 0x109   :  { %v398_v28 = vld [vmem:[#allocation2 + $0xd8] sm:$0xff] }
 0x10a   :  { %v10815_v13 = vpack.c.bf16 %v297_v55, %v289_v56  ;;  %v249_v20 = vadd.f32 %v10785_v7, %v151_v62  ;;  %v313_v56 = vmax.f32 %v257_v22, 0.0  ;;  %v406_v55 = vld [vmem:[#allocation2 + $0x118] sm:$0xff]  ;;  %v8926_v44 = vcombine.low %v390_v27, %v398_v28  ;;  %v85_v22 = vld [vmem:[%s11395_s0 + $0x1b0] sm:$0x1] }
 0x10b   :  { %6755 = vmatpush1.bf16.msra.mxu0 %v9880_v14  ;;  %7039 = vmatpush1.bf16.msra.mxu1 %v9882_v15  ;;  %v397_v14 = vld [vmem:[#allocation2 + $0xd0] sm:$0xff]  ;;  %v306_v15 = vmax.f32 %v250_v43, 0.0  ;;  %v414_v62 = vld [vmem:[#allocation2 + $0x158] sm:$0xff] }
 0x10c   :  { %6756 = vmatprep.subr.bf16.mxu0 %v9897_v17  ;;  %7040 = vmatprep.subr.bf16.mxu1 %v9899_v19  ;;  %v314_v17 = vmax.f32 %v258_v33, 0.0  ;;  %v168_v19 = vmul.f32 %v10735_v51, %v70_v3  ;;  %v8925_v30 = vcombine.high %v389_v10, %v397_v14  ;;  %v413_v43 = vld [vmem:[#allocation2 + $0x150] sm:$0xff]  ;;  %v305_v33 = vmax.f32 %v249_v20, 0.0  ;;  %v86_v52 = vld [vmem:[%s11395_s0 + $0x1b8] sm:$0x1] }
 0x10d   :  { %v8924_v3 = vcombine.low %v389_v10, %v397_v14  ;;  %v422_v20 = vld [vmem:[#allocation2 + $0x198] sm:$0xff]  ;;  %v265_v14 = vadd.f32 %v10785_v7, %v167_v0  ;;  %v453_v0 = vld [vmem:[#allocation2 + $0x290] sm:$0xff] }
 0x10e   :  { %v266_v39 = vadd.f32 %v10750_v35, %v168_v19  ;;  %v184_v19 = vmul.f32 %v10735_v51, %v86_v52  ;;  %v10839_v2 = vpack.c.bf16 %v313_v56, %v305_v33  ;;  %v430_v10 = vld [vmem:[#allocation2 + $0x1d8] sm:$0xff]  ;;  %v183_v33 = vmul.f32 %v10774_v5, %v85_v22 }
 0x10f   :  { %6757 = vmatpush1.bf16.msra.mxu0 %v9896_v45  ;;  %7041 = vmatpush1.bf16.msra.mxu1 %v9898_v31  ;;  %v77_v45 = vld [vmem:[%s11395_s0 + $0x170] sm:$0xff]  ;;  %v8927_v31 = vcombine.high %v390_v27, %v398_v28  ;;  %v8959_v59 = vcombine.high %v422_v20, %v430_v10 }
 0x110   :  { %6758 = vmatprep.subr.bf16.mxu0 %v9913_v37  ;;  %7042 = vmatprep.subr.bf16.mxu1 %v9915_v47  ;;  %v10825_v37 = vpack.c.bf16 %v314_v17, %v306_v15  ;;  %v405_v47 = vld [vmem:[#allocation2 + $0x110] sm:$0xff]  ;;  %v175_v61 = vmul.f32 %v10774_v5, %v77_v45  ;;  %v322_v15 = vmax.f32 %v266_v39, 0.0  ;;  %v330_v17 = vmax.f32 %v274_v49, 0.0  ;;  %v446_v49 = vld [vmem:[#allocation2 + $0x258] sm:$0xff] }
 0x111   :  { %v8940_v28 = vcombine.low %v405_v47, %v413_v43  ;;  %v321_v39 = vmax.f32 %v265_v14, 0.0  ;;  %v454_v5 = vld [vmem:[#allocation2 + $0x298] sm:$0xff] }
 0x112   :  { %v273_v27 = vadd.f32 %v10785_v7, %v175_v61  ;;  %v10846_v45 = vpack.c.bf16 %v330_v17, %v322_v15  ;;  %v461_v61 = vld [vmem:[#allocation2 + $0x2d0] sm:$0xff]  ;;  %v470_v14 = vld [vmem:[#allocation2 + $0x318] sm:$0xff] }
 0x113   :  { %6759 = vmatpush1.bf16.msra.mxu0 %v9912_v63  ;;  %7043 = vmatpush1.bf16.msra.mxu1 %v9914_v40  ;;  %v8941_v63 = vcombine.high %v405_v47, %v413_v43  ;;  %v8943_v40 = vcombine.high %v406_v55, %v414_v62  ;;  %v438_v43 = vld [vmem:[#allocation2 + $0x218] sm:$0xff] }
 0x114   :  { %7083 = vmatprep.subr.bf16.mxu0 %v8909_v6  ;;  %7367 = vmatprep.subr.bf16.mxu1 %v8911_v9  ;;  %v421_v6 = vld [vmem:[#allocation2 + $0x190] sm:$0xff]  ;;  %v329_v47 = vmax.f32 %v273_v27, 0.0  ;;  %v478_v27 = vld [vmem:[#allocation2 + $0x358] sm:$0xff] }
 0x115   :  { %v429_v9 = vld [vmem:[#allocation2 + $0x1d0] sm:$0xff] }
 0x116   :  { %6761 = vmatmul.mubr.bf16.vlgmr.msra.gmra.mrb[0].mxu0 %v10815_v13  ;;  %7045 = vmatmul.mubr.bf16.vlgmr.msra.gmra.mrb[0].mxu1 %v10815_v13  ;;  %v8957_v51 = vcombine.high %v421_v6, %v429_v9  ;;  %v8956_v56 = vcombine.low %v421_v6, %v429_v9  ;;  %v8974_v6 = vcombine.low %v438_v43, %v446_v49 }
 0x117   :  { %7084 = vmatpush1.bf16.msra.mxu0 %v8908_v26  ;;  %7368 = vmatpush1.bf16.msra.mxu1 %v8910_v32  ;;  %v8942_v26 = vcombine.low %v406_v55, %v414_v62  ;;  %v437_v32 = vld [vmem:[#allocation2 + $0x210] sm:$0xff]  ;;  %v8958_v55 = vcombine.low %v422_v20, %v430_v10  ;;  %v8989_v9 = vcombine.high %v453_v0, %v461_v61 }
 0x118   :  { %7085 = vmatprep.subr.bf16.mxu0 %v8925_v30  ;;  %7369 = vmatprep.subr.bf16.mxu1 %v8927_v31  ;;  %v445_v30 = vld [vmem:[#allocation2 + $0x250] sm:$0xff]  ;;  %v282_v31 = vadd.f32 %v10750_v35, %v184_v19  ;;  %v8975_v35 = vcombine.high %v438_v43, %v446_v49 }
 0x119   :  { %6770 = vmatprep.mubr.bf16.mxu0 %v10825_v37  ;;  %7054 = vmatprep.mubr.bf16.mxu1 %v10825_v37  ;;  %v8973_v62 = vcombine.high %v437_v32, %v445_v30  ;;  %v469_v19 = vld [vmem:[#allocation2 + $0x310] sm:$0xff] }
 0x11a   :  { %v338_v52 = vmax.f32 %v282_v31, 0.0  ;;  %v477_v20 = vld [vmem:[#allocation2 + $0x350] sm:$0xff]  ;;  %v494_v31 = vld [vmem:[#allocation2 + $0x3d8] sm:$0xff] }
 0x11b   :  { %7086 = vmatpush1.bf16.msra.mxu0 %v8924_v3  ;;  %7370 = vmatpush1.bf16.msra.mxu1 %v8926_v44  ;;  %v10854_v3 = vpack.c.bf16 %v329_v47, %v321_v39  ;;  %v462_v44 = vld [vmem:[#allocation2 + $0x2d8] sm:$0xff]  ;;  %v9005_v22 = vcombine.high %v469_v19, %v477_v20  ;;  %v9004_v39 = vcombine.low %v469_v19, %v477_v20  ;;  %v533_v20 = vld [vmem:[#allocation2 + $0x510] sm:$0xff] }
 0x11c   :  { %7087 = vmatprep.subr.bf16.mxu0 %v8941_v63  ;;  %7371 = vmatprep.subr.bf16.mxu1 %v8943_v40  ;;  %v281_v63 = vadd.f32 %v10785_v7, %v183_v33  ;;  %v8972_v40 = vcombine.low %v437_v32, %v445_v30  ;;  %v8991_v15 = vcombine.high %v454_v5, %v462_v44  ;;  %v486_v30 = vld [vmem:[#allocation2 + $0x398] sm:$0xff]  ;;  %v501_v33 = vld [vmem:[#allocation2 + $0x410] sm:$0xff] }
 0x11d   :  { %v10857_v17 = vpack.c.bf16 %v338_v52, %v338_v52  ;;  %v8988_v7 = vcombine.low %v453_v0, %v461_v61  ;;  %v9006_v47 = vcombine.low %v470_v14, %v478_v27  ;;  %v9023_v49 = vcombine.high %v486_v30, %v494_v31 }
 0x11e   :  { %6771 = vmatmul.mubr.bf16.gmra.mrb[4].mxu0 %v10839_v2  ;;  %7055 = vmatmul.mubr.bf16.gmra.mrb[4].mxu1 %v10839_v2  ;;  %v337_v10 = vmax.f32 %v281_v63, 0.0  ;;  %v9022_v0 = vcombine.low %v486_v30, %v494_v31  ;;  %v518_v63 = vld [vmem:[#allocation2 + $0x498] sm:$0xff] }
 0x11f   :  { %7088 = vmatpush1.bf16.msra.mxu0 %v8940_v28  ;;  %7372 = vmatpush1.bf16.msra.mxu1 %v8942_v26  ;;  %v8990_v28 = vcombine.low %v454_v5, %v462_v44  ;;  %v9007_v26 = vcombine.high %v470_v14, %v478_v27  ;;  %v517_v5 = vld [vmem:[#allocation2 + $0x490] sm:$0xff]  ;;  %v534_v14 = vld [vmem:[#allocation2 + $0x518] sm:$0xff] }
 0x120   :  { %7089 = vmatprep.subr.bf16.mxu0 %v8957_v51  ;;  %7373 = vmatprep.subr.bf16.mxu1 %v8959_v59  ;;  %v485_v51 = vld [vmem:[#allocation2 + $0x390] sm:$0xff]  ;;  %v10863_v32 = vpack.c.bf16 %v337_v10, %v337_v10  ;;  %v542_v27 = vld [vmem:[#allocation2 + $0x558] sm:$0xff] }
 0x121   :  { %6780 = vmatprep.mubr.bf16.mxu0 %v10846_v45  ;;  %7064 = vmatprep.mubr.bf16.mxu1 %v10846_v45  ;;  %v493_v59 = vld [vmem:[#allocation2 + $0x3d0] sm:$0xff]  ;;  %v550_v30 = vld [vmem:[#allocation2 + $0x598] sm:$0xff] }
 0x122   :  { %v9021_v43 = vcombine.high %v485_v51, %v493_v59  ;;  %v525_v44 = vld [vmem:[#allocation2 + $0x4d0] sm:$0xff]  ;;  %v558_v31 = vld [vmem:[#allocation2 + $0x5d8] sm:$0xff] }
 0x123   :  { %7090 = vmatpush1.bf16.msra.mxu0 %v8956_v56  ;;  %7374 = vmatpush1.bf16.msra.mxu1 %v8958_v55  ;;  %v509_v56 = vld [vmem:[#allocation2 + $0x450] sm:$0xff]  ;;  %v502_v55 = vld [vmem:[#allocation2 + $0x418] sm:$0xff] }
 0x124   :  { %7091 = vmatprep.subr.bf16.mxu0 %v8973_v62  ;;  %7375 = vmatprep.subr.bf16.mxu1 %v8975_v35  ;;  %v510_v62 = vld [vmem:[#allocation2 + $0x458] sm:$0xff]  ;;  %v9020_v35 = vcombine.low %v485_v51, %v493_v59  ;;  %v9037_v61 = vcombine.high %v501_v33, %v509_v56  ;;  %v541_v10 = vld [vmem:[#allocation2 + $0x550] sm:$0xff] }
 0x125   :  { %v9039_v52 = vcombine.high %v502_v55, %v510_v62  ;;  %v549_v51 = vld [vmem:[#allocation2 + $0x590] sm:$0xff] }
 0x126   :  { %6781 = vmatmul.mubr.bf16.gmra.mrb[8].mxu0 %v10854_v3  ;;  %7065 = vmatmul.mubr.bf16.gmra.mrb[8].mxu1 %v10854_v3  ;;  %v557_v59 = vld [vmem:[#allocation2 + $0x5d0] sm:$0xff] }
 0x127   :  { %7092 = vmatpush1.bf16.msra.mxu0 %v8972_v40  ;;  %7376 = vmatpush1.bf16.msra.mxu1 %v8974_v6  ;;  %v526_v40 = vld [vmem:[#allocation2 + $0x4d8] sm:$0xff]  ;;  %v9036_v6 = vcombine.low %v501_v33, %v509_v56  ;;  %v565_v33 = vld [vmem:[#allocation2 + $0x610] sm:$0xff] }
 0x128   :  { %7093 = vmatprep.subr.bf16.mxu0 %v8989_v9  ;;  %7377 = vmatprep.subr.bf16.mxu1 %v8991_v15  ;;  %v9038_v9 = vcombine.low %v502_v55, %v510_v62  ;;  %v9053_v15 = vcombine.high %v517_v5, %v525_v44  ;;  %v9055_v19 = vcombine.high %v518_v63, %v526_v40  ;;  %v573_v56 = vld [vmem:[#allocation2 + $0x650] sm:$0xff]  ;;  %v566_v55 = vld [vmem:[#allocation2 + $0x618] sm:$0xff] }
 0x129   :  { %6790 = vmatprep.mubr.bf16.mxu0 %v10857_v17  ;;  %7074 = vmatprep.mubr.bf16.mxu1 %v10857_v17  ;;  %v574_v62 = vld [vmem:[#allocation2 + $0x658] sm:$0xff] }
 0x12b   :  { %7094 = vmatpush1.bf16.msra.mxu0 %v8988_v7  ;;  %7378 = vmatpush1.bf16.msra.mxu1 %v8990_v28  ;;  %v9052_v7 = vcombine.low %v517_v5, %v525_v44  ;;  %v9054_v28 = vcombine.low %v518_v63, %v526_v40  ;;  %v581_v5 = vld [vmem:[#allocation2 + $0x690] sm:$0xff]  ;;  %v582_v63 = vld [vmem:[#allocation2 + $0x698] sm:$0xff] }
 0x12c   :  { %7095 = vmatprep.subr.bf16.mxu0 %v9005_v22  ;;  %7379 = vmatprep.subr.bf16.mxu1 %v9007_v26  ;;  %v9069_v22 = vcombine.high %v533_v20, %v541_v10  ;;  %v9071_v26 = vcombine.high %v534_v14, %v542_v27  ;;  %v589_v44 = vld [vmem:[#allocation2 + $0x6d0] sm:$0xff]  ;;  %v590_v40 = vld [vmem:[#allocation2 + $0x6d8] sm:$0xff] }
 0x12e   :  { %6791 = vmatmul.mubr.bf16.gmra.mrb[12].mxu0 %v10863_v32  ;;  %7075 = vmatmul.mubr.bf16.gmra.mrb[12].mxu1 %v10863_v32 }
 0x12f   :  { %7096 = vmatpush1.bf16.msra.mxu0 %v9004_v39  ;;  %7380 = vmatpush1.bf16.msra.mxu1 %v9006_v47  ;;  %v9068_v39 = vcombine.low %v533_v20, %v541_v10  ;;  %v9070_v47 = vcombine.low %v534_v14, %v542_v27  ;;  %v597_v20 = vld [vmem:[#allocation2 + $0x710] sm:$0xff]  ;;  %v598_v14 = vld [vmem:[#allocation2 + $0x718] sm:$0xff] }
 0x130   :  { %7097 = vmatprep.subr.bf16.mxu0 %v9021_v43  ;;  %7381 = vmatprep.subr.bf16.mxu1 %v9023_v49  ;;  %v9085_v43 = vcombine.high %v549_v51, %v557_v59  ;;  %v9087_v49 = vcombine.high %v550_v30, %v558_v31  ;;  %v605_v10 = vld [vmem:[#allocation2 + $0x750] sm:$0xff]  ;;  %v606_v27 = vld [vmem:[#allocation2 + $0x758] sm:$0xff] }
 0x131   :  { %7115 = vmatprep.mubr.bf16.mxu0 %v10410_v25  ;;  %7399 = vmatprep.mubr.bf16.mxu1 %v10410_v25 }
 0x133   :  { %7098 = vmatpush1.bf16.msra.mxu0 %v9020_v35  ;;  %7382 = vmatpush1.bf16.msra.mxu1 %v9022_v0  ;;  %v9084_v35 = vcombine.low %v549_v51, %v557_v59  ;;  %v9086_v0 = vcombine.low %v550_v30, %v558_v31  ;;  %v613_v51 = vld [vmem:[#allocation2 + $0x790] sm:$0xff]  ;;  %v614_v30 = vld [vmem:[#allocation2 + $0x798] sm:$0xff] }
 0x134   :  { %7099 = vmatprep.subr.bf16.mxu0 %v9037_v61  ;;  %7383 = vmatprep.subr.bf16.mxu1 %v9039_v52  ;;  %v9101_v61 = vcombine.high %v565_v33, %v573_v56  ;;  %v9103_v52 = vcombine.high %v566_v55, %v574_v62  ;;  %v621_v59 = vld [vmem:[#allocation2 + $0x7d0] sm:$0xff]  ;;  %v622_v31 = vld [vmem:[#allocation2 + $0x7d8] sm:$0xff] }
 0x137   :  { %7100 = vmatpush1.bf16.msra.mxu0 %v9036_v6  ;;  %7384 = vmatpush1.bf16.msra.mxu1 %v9038_v9  ;;  %v9100_v6 = vcombine.low %v565_v33, %v573_v56  ;;  %v9102_v9 = vcombine.low %v566_v55, %v574_v62  ;;  %v629_v33 = vld [vmem:[#allocation2 + $0x810] sm:$0xff]  ;;  %v630_v55 = vld [vmem:[#allocation2 + $0x818] sm:$0xff] }
 0x138   :  { %7101 = vmatprep.subr.bf16.mxu0 %v9053_v15  ;;  %7385 = vmatprep.subr.bf16.mxu1 %v9055_v19  ;;  %v9117_v15 = vcombine.high %v581_v5, %v589_v44  ;;  %v9119_v19 = vcombine.high %v582_v63, %v590_v40  ;;  %v637_v56 = vld [vmem:[#allocation2 + $0x850] sm:$0xff]  ;;  %v638_v62 = vld [vmem:[#allocation2 + $0x858] sm:$0xff] }
 0x13b   :  { %7102 = vmatpush1.bf16.msra.mxu0 %v9052_v7  ;;  %7386 = vmatpush1.bf16.msra.mxu1 %v9054_v28  ;;  %v9116_v7 = vcombine.low %v581_v5, %v589_v44  ;;  %v9118_v28 = vcombine.low %v582_v63, %v590_v40  ;;  %v645_v5 = vld [vmem:[#allocation2 + $0x890] sm:$0xff]  ;;  %v646_v63 = vld [vmem:[#allocation2 + $0x898] sm:$0xff] }
 0x13c   :  { %7103 = vmatprep.subr.bf16.mxu0 %v9069_v22  ;;  %7387 = vmatprep.subr.bf16.mxu1 %v9071_v26  ;;  %v9133_v22 = vcombine.high %v597_v20, %v605_v10  ;;  %v9135_v26 = vcombine.high %v598_v14, %v606_v27  ;;  %v653_v44 = vld [vmem:[#allocation2 + $0x8d0] sm:$0xff]  ;;  %v654_v40 = vld [vmem:[#allocation2 + $0x8d8] sm:$0xff] }
 0x13f   :  { %7104 = vmatpush1.bf16.msra.mxu0 %v9068_v39  ;;  %7388 = vmatpush1.bf16.msra.mxu1 %v9070_v47  ;;  %v9132_v39 = vcombine.low %v597_v20, %v605_v10  ;;  %v9134_v47 = vcombine.low %v598_v14, %v606_v27  ;;  %v661_v20 = vld [vmem:[#allocation2 + $0x910] sm:$0xff]  ;;  %v662_v14 = vld [vmem:[#allocation2 + $0x918] sm:$0xff] }
 0x140   :  { %7105 = vmatprep.subr.bf16.mxu0 %v9085_v43  ;;  %7389 = vmatprep.subr.bf16.mxu1 %v9087_v49  ;;  %v9149_v43 = vcombine.high %v613_v51, %v621_v59  ;;  %v9151_v49 = vcombine.high %v614_v30, %v622_v31  ;;  %v669_v10 = vld [vmem:[#allocation2 + $0x950] sm:$0xff]  ;;  %v670_v27 = vld [vmem:[#allocation2 + $0x958] sm:$0xff] }
 0x143   :  { %7106 = vmatpush1.bf16.msra.mxu0 %v9084_v35  ;;  %7390 = vmatpush1.bf16.msra.mxu1 %v9086_v0  ;;  %v9148_v35 = vcombine.low %v613_v51, %v621_v59  ;;  %v9150_v0 = vcombine.low %v614_v30, %v622_v31  ;;  %v677_v51 = vld [vmem:[#allocation2 + $0x990] sm:$0xff]  ;;  %v678_v30 = vld [vmem:[#allocation2 + $0x998] sm:$0xff] }
 0x144   :  { %7107 = vmatprep.subr.bf16.mxu0 %v9101_v61  ;;  %7391 = vmatprep.subr.bf16.mxu1 %v9103_v52  ;;  %v9165_v61 = vcombine.high %v629_v33, %v637_v56  ;;  %v9167_v52 = vcombine.high %v630_v55, %v638_v62  ;;  %v685_v59 = vld [vmem:[#allocation2 + $0x9d0] sm:$0xff]  ;;  %v686_v31 = vld [vmem:[#allocation2 + $0x9d8] sm:$0xff] }
 0x147   :  { %7108 = vmatpush1.bf16.msra.mxu0 %v9100_v6  ;;  %7392 = vmatpush1.bf16.msra.mxu1 %v9102_v9  ;;  %v9164_v6 = vcombine.low %v629_v33, %v637_v56  ;;  %v9166_v9 = vcombine.low %v630_v55, %v638_v62  ;;  %v693_v33 = vld [vmem:[#allocation2 + $0xa10] sm:$0xff]  ;;  %v694_v55 = vld [vmem:[#allocation2 + $0xa18] sm:$0xff] }
 0x148   :  { %7109 = vmatprep.subr.bf16.mxu0 %v9117_v15  ;;  %7393 = vmatprep.subr.bf16.mxu1 %v9119_v19  ;;  %v9181_v15 = vcombine.high %v645_v5, %v653_v44  ;;  %v9183_v19 = vcombine.high %v646_v63, %v654_v40  ;;  %v701_v56 = vld [vmem:[#allocation2 + $0xa50] sm:$0xff]  ;;  %v702_v62 = vld [vmem:[#allocation2 + $0xa58] sm:$0xff] }
 0x14b   :  { %7110 = vmatpush1.bf16.msra.mxu0 %v9116_v7  ;;  %7394 = vmatpush1.bf16.msra.mxu1 %v9118_v28  ;;  %v9180_v7 = vcombine.low %v645_v5, %v653_v44  ;;  %v9182_v28 = vcombine.low %v646_v63, %v654_v40  ;;  %v709_v5 = vld [vmem:[#allocation2 + $0xa90] sm:$0xff]  ;;  %v710_v63 = vld [vmem:[#allocation2 + $0xa98] sm:$0xff] }
 0x14c   :  { %7111 = vmatprep.subr.bf16.mxu0 %v9133_v22  ;;  %7395 = vmatprep.subr.bf16.mxu1 %v9135_v26  ;;  %v9197_v22 = vcombine.high %v661_v20, %v669_v10  ;;  %v9199_v26 = vcombine.high %v662_v14, %v670_v27  ;;  %v717_v44 = vld [vmem:[#allocation2 + $0xad0] sm:$0xff]  ;;  %v718_v40 = vld [vmem:[#allocation2 + $0xad8] sm:$0xff] }
 0x14f   :  { %7112 = vmatpush1.bf16.msra.mxu0 %v9132_v39  ;;  %7396 = vmatpush1.bf16.msra.mxu1 %v9134_v47  ;;  %v9196_v39 = vcombine.low %v661_v20, %v669_v10  ;;  %v9198_v47 = vcombine.low %v662_v14, %v670_v27  ;;  %v725_v20 = vld [vmem:[#allocation2 + $0xb10] sm:$0xff]  ;;  %v726_v14 = vld [vmem:[#allocation2 + $0xb18] sm:$0xff] }
 0x150   :  { %7113 = vmatprep.subr.bf16.mxu0 %v9149_v43  ;;  %7397 = vmatprep.subr.bf16.mxu1 %v9151_v49  ;;  %v9213_v43 = vcombine.high %v677_v51, %v685_v59  ;;  %v9215_v49 = vcombine.high %v678_v30, %v686_v31  ;;  %v733_v10 = vld [vmem:[#allocation2 + $0xb50] sm:$0xff]  ;;  %v734_v27 = vld [vmem:[#allocation2 + $0xb58] sm:$0xff] }
 0x153   :  { %7114 = vmatpush1.bf16.msra.mxu0 %v9148_v35  ;;  %7398 = vmatpush1.bf16.msra.mxu1 %v9150_v0  ;;  %v9212_v35 = vcombine.low %v677_v51, %v685_v59  ;;  %v9214_v0 = vcombine.low %v678_v30, %v686_v31  ;;  %v741_v51 = vld [vmem:[#allocation2 + $0xb90] sm:$0xff]  ;;  %v742_v30 = vld [vmem:[#allocation2 + $0xb98] sm:$0xff] }
 0x154   :  { %7154 = vmatprep.subr.bf16.mxu0 %v9165_v61  ;;  %7438 = vmatprep.subr.bf16.mxu1 %v9167_v52  ;;  %v9229_v61 = vcombine.high %v693_v33, %v701_v56  ;;  %v9231_v52 = vcombine.high %v694_v55, %v702_v62  ;;  %v749_v59 = vld [vmem:[#allocation2 + $0xbd0] sm:$0xff]  ;;  %v750_v31 = vld [vmem:[#allocation2 + $0xbd8] sm:$0xff] }
 0x156   :  { %7116 = vmatmul.mubr.bf16.vlgmr.msra.gmra.mrb[16].mxu0 %v10457_v58  ;;  %7400 = vmatmul.mubr.bf16.vlgmr.msra.gmra.mrb[16].mxu1 %v10457_v58 }
 0x157   :  { %7155 = vmatpush1.bf16.msra.mxu0 %v9164_v6  ;;  %7439 = vmatpush1.bf16.msra.mxu1 %v9166_v9  ;;  %v9228_v6 = vcombine.low %v693_v33, %v701_v56  ;;  %v9230_v9 = vcombine.low %v694_v55, %v702_v62  ;;  %v757_v33 = vld [vmem:[#allocation2 + $0xc10] sm:$0xff]  ;;  %v758_v55 = vld [vmem:[#allocation2 + $0xc18] sm:$0xff] }
 0x158   :  { %7156 = vmatprep.subr.bf16.mxu0 %v9181_v15  ;;  %7440 = vmatprep.subr.bf16.mxu1 %v9183_v19  ;;  %v9245_v15 = vcombine.high %v709_v5, %v717_v44  ;;  %v9247_v19 = vcombine.high %v710_v63, %v718_v40  ;;  %v765_v56 = vld [vmem:[#allocation2 + $0xc50] sm:$0xff]  ;;  %v766_v62 = vld [vmem:[#allocation2 + $0xc58] sm:$0xff] }
 0x159   :  { %7125 = vmatprep.mubr.bf16.mxu0 %v10467_v12  ;;  %7409 = vmatprep.mubr.bf16.mxu1 %v10467_v12 }
 0x15b   :  { %7157 = vmatpush1.bf16.msra.mxu0 %v9180_v7  ;;  %7441 = vmatpush1.bf16.msra.mxu1 %v9182_v28  ;;  %v9244_v7 = vcombine.low %v709_v5, %v717_v44  ;;  %v9246_v28 = vcombine.low %v710_v63, %v718_v40  ;;  %v773_v5 = vld [vmem:[#allocation2 + $0xc90] sm:$0xff]  ;;  %v774_v63 = vld [vmem:[#allocation2 + $0xc98] sm:$0xff] }
 0x15c   :  { %7158 = vmatprep.subr.bf16.mxu0 %v9197_v22  ;;  %7442 = vmatprep.subr.bf16.mxu1 %v9199_v26  ;;  %v9261_v22 = vcombine.high %v725_v20, %v733_v10  ;;  %v9263_v26 = vcombine.high %v726_v14, %v734_v27  ;;  %v781_v44 = vld [vmem:[#allocation2 + $0xcd0] sm:$0xff]  ;;  %v782_v40 = vld [vmem:[#allocation2 + $0xcd8] sm:$0xff] }
 0x15e   :  { %7126 = vmatmul.mubr.bf16.gmra.mrb[20].mxu0 %v10482_v36  ;;  %7410 = vmatmul.mubr.bf16.gmra.mrb[20].mxu1 %v10482_v36 }
 0x15f   :  { %7159 = vmatpush1.bf16.msra.mxu0 %v9196_v39  ;;  %7443 = vmatpush1.bf16.msra.mxu1 %v9198_v47  ;;  %v9260_v39 = vcombine.low %v725_v20, %v733_v10  ;;  %v9262_v47 = vcombine.low %v726_v14, %v734_v27  ;;  %v789_v20 = vld [vmem:[#allocation2 + $0xd10] sm:$0xff]  ;;  %v790_v14 = vld [vmem:[#allocation2 + $0xd18] sm:$0xff] }
 0x160   :  { %7160 = vmatprep.subr.bf16.mxu0 %v9213_v43  ;;  %7444 = vmatprep.subr.bf16.mxu1 %v9215_v49  ;;  %v9277_v43 = vcombine.high %v741_v51, %v749_v59  ;;  %v9279_v49 = vcombine.high %v742_v30, %v750_v31  ;;  %v797_v10 = vld [vmem:[#allocation2 + $0xd50] sm:$0xff]  ;;  %v798_v27 = vld [vmem:[#allocation2 + $0xd58] sm:$0xff] }
 0x161   :  { %7135 = vmatprep.mubr.bf16.mxu0 %v10489_v48  ;;  %7419 = vmatprep.mubr.bf16.mxu1 %v10489_v48 }
 0x163   :  { %7161 = vmatpush1.bf16.msra.mxu0 %v9212_v35  ;;  %7445 = vmatpush1.bf16.msra.mxu1 %v9214_v0  ;;  %v9276_v35 = vcombine.low %v741_v51, %v749_v59  ;;  %v9278_v0 = vcombine.low %v742_v30, %v750_v31  ;;  %v805_v51 = vld [vmem:[#allocation2 + $0xd90] sm:$0xff]  ;;  %v806_v30 = vld [vmem:[#allocation2 + $0xd98] sm:$0xff] }
 0x164   :  { %7162 = vmatprep.subr.bf16.mxu0 %v9229_v61  ;;  %7446 = vmatprep.subr.bf16.mxu1 %v9231_v52  ;;  %v9293_v61 = vcombine.high %v757_v33, %v765_v56  ;;  %v9295_v52 = vcombine.high %v758_v55, %v766_v62  ;;  %v813_v59 = vld [vmem:[#allocation2 + $0xdd0] sm:$0xff]  ;;  %v814_v31 = vld [vmem:[#allocation2 + $0xdd8] sm:$0xff] }
 0x166   :  { %7136 = vmatmul.mubr.bf16.gmra.mrb[24].mxu0 %v10511_v8  ;;  %7420 = vmatmul.mubr.bf16.gmra.mrb[24].mxu1 %v10511_v8 }
 0x167   :  { %7163 = vmatpush1.bf16.msra.mxu0 %v9228_v6  ;;  %7447 = vmatpush1.bf16.msra.mxu1 %v9230_v9  ;;  %v9292_v6 = vcombine.low %v757_v33, %v765_v56  ;;  %v9294_v9 = vcombine.low %v758_v55, %v766_v62  ;;  %v821_v33 = vld [vmem:[#allocation2 + $0xe10] sm:$0xff]  ;;  %v822_v55 = vld [vmem:[#allocation2 + $0xe18] sm:$0xff] }
 0x168   :  { %7164 = vmatprep.subr.bf16.mxu0 %v9245_v15  ;;  %7448 = vmatprep.subr.bf16.mxu1 %v9247_v19  ;;  %v9309_v15 = vcombine.high %v773_v5, %v781_v44  ;;  %v9311_v19 = vcombine.high %v774_v63, %v782_v40  ;;  %v829_v56 = vld [vmem:[#allocation2 + $0xe50] sm:$0xff]  ;;  %v830_v62 = vld [vmem:[#allocation2 + $0xe58] sm:$0xff] }
 0x169   :  { %7145 = vmatprep.mubr.bf16.mxu0 %v10514_v18  ;;  %7429 = vmatprep.mubr.bf16.mxu1 %v10514_v18 }
 0x16b   :  { %7165 = vmatpush1.bf16.msra.mxu0 %v9244_v7  ;;  %7449 = vmatpush1.bf16.msra.mxu1 %v9246_v28  ;;  %v9308_v7 = vcombine.low %v773_v5, %v781_v44  ;;  %v9310_v28 = vcombine.low %v774_v63, %v782_v40  ;;  %v837_v5 = vld [vmem:[#allocation2 + $0xe90] sm:$0xff]  ;;  %v838_v63 = vld [vmem:[#allocation2 + $0xe98] sm:$0xff] }
 0x16c   :  { %7166 = vmatprep.subr.bf16.mxu0 %v9261_v22  ;;  %7450 = vmatprep.subr.bf16.mxu1 %v9263_v26  ;;  %v9325_v22 = vcombine.high %v789_v20, %v797_v10  ;;  %v9327_v26 = vcombine.high %v790_v14, %v798_v27  ;;  %v845_v44 = vld [vmem:[#allocation2 + $0xed0] sm:$0xff]  ;;  %v846_v40 = vld [vmem:[#allocation2 + $0xed8] sm:$0xff] }
 0x16e   :  { %7146 = vmatmul.mubr.bf16.gmra.mrb[28].mxu0 %v10522_v34  ;;  %7430 = vmatmul.mubr.bf16.gmra.mrb[28].mxu1 %v10522_v34 }
 0x16f   :  { %7167 = vmatpush1.bf16.msra.mxu0 %v9260_v39  ;;  %7451 = vmatpush1.bf16.msra.mxu1 %v9262_v47  ;;  %v9324_v39 = vcombine.low %v789_v20, %v797_v10  ;;  %v9326_v47 = vcombine.low %v790_v14, %v798_v27  ;;  %v853_v20 = vld [vmem:[#allocation2 + $0xf10] sm:$0xff]  ;;  %v854_v14 = vld [vmem:[#allocation2 + $0xf18] sm:$0xff] }
 0x170   :  { %7168 = vmatprep.subr.bf16.mxu0 %v9277_v43  ;;  %7452 = vmatprep.subr.bf16.mxu1 %v9279_v49  ;;  %v9341_v43 = vcombine.high %v805_v51, %v813_v59  ;;  %v9343_v49 = vcombine.high %v806_v30, %v814_v31  ;;  %v861_v10 = vld [vmem:[#allocation2 + $0xf50] sm:$0xff]  ;;  %v862_v27 = vld [vmem:[#allocation2 + $0xf58] sm:$0xff] }
 0x171   :  { %7186 = vmatprep.mubr.bf16.mxu0 %v10524_v1  ;;  %7470 = vmatprep.mubr.bf16.mxu1 %v10524_v1 }
 0x173   :  { %7169 = vmatpush1.bf16.msra.mxu0 %v9276_v35  ;;  %7453 = vmatpush1.bf16.msra.mxu1 %v9278_v0  ;;  %v9340_v35 = vcombine.low %v805_v51, %v813_v59  ;;  %v9342_v0 = vcombine.low %v806_v30, %v814_v31  ;;  %v869_v51 = vld [vmem:[#allocation2 + $0xf90] sm:$0xff]  ;;  %v870_v30 = vld [vmem:[#allocation2 + $0xf98] sm:$0xff] }
 0x174   :  { %7170 = vmatprep.subr.bf16.mxu0 %v9293_v61  ;;  %7454 = vmatprep.subr.bf16.mxu1 %v9295_v52  ;;  %v9357_v61 = vcombine.high %v821_v33, %v829_v56  ;;  %v9359_v52 = vcombine.high %v822_v55, %v830_v62  ;;  %v877_v59 = vld [vmem:[#allocation2 + $0xfd0] sm:$0xff]  ;;  %v878_v31 = vld [vmem:[#allocation2 + $0xfd8] sm:$0xff] }
 0x177   :  { %7171 = vmatpush1.bf16.msra.mxu0 %v9292_v6  ;;  %7455 = vmatpush1.bf16.msra.mxu1 %v9294_v9  ;;  %v9356_v6 = vcombine.low %v821_v33, %v829_v56  ;;  %v9358_v9 = vcombine.low %v822_v55, %v830_v62  ;;  %v885_v33 = vld [vmem:[#allocation2 + $0x1010] sm:$0xff]  ;;  %v886_v55 = vld [vmem:[#allocation2 + $0x1018] sm:$0xff] }
 0x178   :  { %7172 = vmatprep.subr.bf16.mxu0 %v9309_v15  ;;  %7456 = vmatprep.subr.bf16.mxu1 %v9311_v19  ;;  %v9373_v15 = vcombine.high %v837_v5, %v845_v44  ;;  %v9375_v19 = vcombine.high %v838_v63, %v846_v40  ;;  %v893_v56 = vld [vmem:[#allocation2 + $0x1050] sm:$0xff]  ;;  %v894_v62 = vld [vmem:[#allocation2 + $0x1058] sm:$0xff] }
 0x17b   :  { %7173 = vmatpush1.bf16.msra.mxu0 %v9308_v7  ;;  %7457 = vmatpush1.bf16.msra.mxu1 %v9310_v28  ;;  %v9372_v7 = vcombine.low %v837_v5, %v845_v44  ;;  %v9374_v28 = vcombine.low %v838_v63, %v846_v40  ;;  %v901_v5 = vld [vmem:[#allocation2 + $0x1090] sm:$0xff]  ;;  %v902_v63 = vld [vmem:[#allocation2 + $0x1098] sm:$0xff] }
 0x17c   :  { %7174 = vmatprep.subr.bf16.mxu0 %v9325_v22  ;;  %7458 = vmatprep.subr.bf16.mxu1 %v9327_v26  ;;  %v9389_v22 = vcombine.high %v853_v20, %v861_v10  ;;  %v9391_v26 = vcombine.high %v854_v14, %v862_v27  ;;  %v909_v44 = vld [vmem:[#allocation2 + $0x10d0] sm:$0xff]  ;;  %v910_v40 = vld [vmem:[#allocation2 + $0x10d8] sm:$0xff] }
 0x17f   :  { %7175 = vmatpush1.bf16.msra.mxu0 %v9324_v39  ;;  %7459 = vmatpush1.bf16.msra.mxu1 %v9326_v47  ;;  %v9388_v39 = vcombine.low %v853_v20, %v861_v10  ;;  %v9390_v47 = vcombine.low %v854_v14, %v862_v27  ;;  %v917_v20 = vld [vmem:[#allocation2 + $0x1110] sm:$0xff]  ;;  %v918_v14 = vld [vmem:[#allocation2 + $0x1118] sm:$0xff] }
 0x180   :  { %7176 = vmatprep.subr.bf16.mxu0 %v9341_v43  ;;  %7460 = vmatprep.subr.bf16.mxu1 %v9343_v49  ;;  %v9405_v43 = vcombine.high %v869_v51, %v877_v59  ;;  %v9407_v49 = vcombine.high %v870_v30, %v878_v31  ;;  %v925_v10 = vld [vmem:[#allocation2 + $0x1150] sm:$0xff]  ;;  %v926_v27 = vld [vmem:[#allocation2 + $0x1158] sm:$0xff] }
 0x183   :  { %7177 = vmatpush1.bf16.msra.mxu0 %v9340_v35  ;;  %7461 = vmatpush1.bf16.msra.mxu1 %v9342_v0  ;;  %v9404_v35 = vcombine.low %v869_v51, %v877_v59  ;;  %v9406_v0 = vcombine.low %v870_v30, %v878_v31  ;;  %v933_v51 = vld [vmem:[#allocation2 + $0x1190] sm:$0xff]  ;;  %v934_v30 = vld [vmem:[#allocation2 + $0x1198] sm:$0xff] }
 0x184   :  { %7178 = vmatprep.subr.bf16.mxu0 %v9357_v61  ;;  %7462 = vmatprep.subr.bf16.mxu1 %v9359_v52  ;;  %v9421_v61 = vcombine.high %v885_v33, %v893_v56  ;;  %v9423_v52 = vcombine.high %v886_v55, %v894_v62  ;;  %v941_v59 = vld [vmem:[#allocation2 + $0x11d0] sm:$0xff]  ;;  %v942_v31 = vld [vmem:[#allocation2 + $0x11d8] sm:$0xff] }
 0x187   :  { %7179 = vmatpush1.bf16.msra.mxu0 %v9356_v6  ;;  %7463 = vmatpush1.bf16.msra.mxu1 %v9358_v9  ;;  %v9420_v6 = vcombine.low %v885_v33, %v893_v56  ;;  %v9422_v9 = vcombine.low %v886_v55, %v894_v62  ;;  %v949_v33 = vld [vmem:[#allocation2 + $0x1210] sm:$0xff]  ;;  %v950_v55 = vld [vmem:[#allocation2 + $0x1218] sm:$0xff] }
 0x188   :  { %7180 = vmatprep.subr.bf16.mxu0 %v9373_v15  ;;  %7464 = vmatprep.subr.bf16.mxu1 %v9375_v19  ;;  %v9437_v15 = vcombine.high %v901_v5, %v909_v44  ;;  %v9439_v19 = vcombine.high %v902_v63, %v910_v40  ;;  %v957_v56 = vld [vmem:[#allocation2 + $0x1250] sm:$0xff]  ;;  %v958_v62 = vld [vmem:[#allocation2 + $0x1258] sm:$0xff] }
 0x18b   :  { %7181 = vmatpush1.bf16.msra.mxu0 %v9372_v7  ;;  %7465 = vmatpush1.bf16.msra.mxu1 %v9374_v28  ;;  %v9436_v7 = vcombine.low %v901_v5, %v909_v44  ;;  %v9438_v28 = vcombine.low %v902_v63, %v910_v40  ;;  %v965_v5 = vld [vmem:[#allocation2 + $0x1290] sm:$0xff]  ;;  %v966_v63 = vld [vmem:[#allocation2 + $0x1298] sm:$0xff] }
 0x18c   :  { %7182 = vmatprep.subr.bf16.mxu0 %v9389_v22  ;;  %7466 = vmatprep.subr.bf16.mxu1 %v9391_v26  ;;  %v9453_v22 = vcombine.high %v917_v20, %v925_v10  ;;  %v9455_v26 = vcombine.high %v918_v14, %v926_v27  ;;  %v973_v44 = vld [vmem:[#allocation2 + $0x12d0] sm:$0xff]  ;;  %v974_v40 = vld [vmem:[#allocation2 + $0x12d8] sm:$0xff] }
 0x18f   :  { %7183 = vmatpush1.bf16.msra.mxu0 %v9388_v39  ;;  %7467 = vmatpush1.bf16.msra.mxu1 %v9390_v47  ;;  %v9452_v39 = vcombine.low %v917_v20, %v925_v10  ;;  %v9454_v47 = vcombine.low %v918_v14, %v926_v27  ;;  %v981_v20 = vld [vmem:[#allocation2 + $0x1310] sm:$0xff]  ;;  %v982_v14 = vld [vmem:[#allocation2 + $0x1318] sm:$0xff] }
 0x190   :  { %7184 = vmatprep.subr.bf16.mxu0 %v9405_v43  ;;  %7468 = vmatprep.subr.bf16.mxu1 %v9407_v49  ;;  %v9469_v43 = vcombine.high %v933_v51, %v941_v59  ;;  %v9471_v49 = vcombine.high %v934_v30, %v942_v31  ;;  %v989_v10 = vld [vmem:[#allocation2 + $0x1350] sm:$0xff]  ;;  %v990_v27 = vld [vmem:[#allocation2 + $0x1358] sm:$0xff] }
 0x193   :  { %7185 = vmatpush1.bf16.msra.mxu0 %v9404_v35  ;;  %7469 = vmatpush1.bf16.msra.mxu1 %v9406_v0  ;;  %v9468_v35 = vcombine.low %v933_v51, %v941_v59  ;;  %v9470_v0 = vcombine.low %v934_v30, %v942_v31  ;;  %v997_v51 = vld [vmem:[#allocation2 + $0x1390] sm:$0xff]  ;;  %v998_v30 = vld [vmem:[#allocation2 + $0x1398] sm:$0xff] }
 0x194   :  { %7225 = vmatprep.subr.bf16.mxu0 %v9421_v61  ;;  %7509 = vmatprep.subr.bf16.mxu1 %v9423_v52  ;;  %v9485_v61 = vcombine.high %v949_v33, %v957_v56  ;;  %v9487_v52 = vcombine.high %v950_v55, %v958_v62  ;;  %v1005_v59 = vld [vmem:[#allocation2 + $0x13d0] sm:$0xff]  ;;  %v1006_v31 = vld [vmem:[#allocation2 + $0x13d8] sm:$0xff] }
 0x196   :  { %7187 = vmatmul.mubr.bf16.vlgmr.msra.gmra.mrb[16].mxu0 %v10573_v41  ;;  %7471 = vmatmul.mubr.bf16.vlgmr.msra.gmra.mrb[16].mxu1 %v10573_v41 }
 0x197   :  { %7226 = vmatpush1.bf16.msra.mxu0 %v9420_v6  ;;  %7510 = vmatpush1.bf16.msra.mxu1 %v9422_v9  ;;  %v9484_v6 = vcombine.low %v949_v33, %v957_v56  ;;  %v9486_v9 = vcombine.low %v950_v55, %v958_v62  ;;  %v1013_v33 = vld [vmem:[#allocation2 + $0x1410] sm:$0xff]  ;;  %v1014_v55 = vld [vmem:[#allocation2 + $0x1418] sm:$0xff] }
 0x198   :  { %7227 = vmatprep.subr.bf16.mxu0 %v9437_v15  ;;  %7511 = vmatprep.subr.bf16.mxu1 %v9439_v19  ;;  %v9501_v15 = vcombine.high %v965_v5, %v973_v44  ;;  %v9503_v19 = vcombine.high %v966_v63, %v974_v40  ;;  %v1021_v56 = vld [vmem:[#allocation2 + $0x1450] sm:$0xff]  ;;  %v1022_v62 = vld [vmem:[#allocation2 + $0x1458] sm:$0xff] }
 0x199   :  { %7196 = vmatprep.mubr.bf16.mxu0 %v10583_v57  ;;  %7480 = vmatprep.mubr.bf16.mxu1 %v10583_v57 }
 0x19b   :  { %7228 = vmatpush1.bf16.msra.mxu0 %v9436_v7  ;;  %7512 = vmatpush1.bf16.msra.mxu1 %v9438_v28  ;;  %v9500_v7 = vcombine.low %v965_v5, %v973_v44  ;;  %v9502_v28 = vcombine.low %v966_v63, %v974_v40  ;;  %v1029_v5 = vld [vmem:[#allocation2 + $0x1490] sm:$0xff]  ;;  %v1030_v63 = vld [vmem:[#allocation2 + $0x1498] sm:$0xff] }
 0x19c   :  { %7229 = vmatprep.subr.bf16.mxu0 %v9453_v22  ;;  %7513 = vmatprep.subr.bf16.mxu1 %v9455_v26  ;;  %v9517_v22 = vcombine.high %v981_v20, %v989_v10  ;;  %v9519_v26 = vcombine.high %v982_v14, %v990_v27  ;;  %v1037_v44 = vld [vmem:[#allocation2 + $0x14d0] sm:$0xff]  ;;  %v1038_v40 = vld [vmem:[#allocation2 + $0x14d8] sm:$0xff] }
 0x19e   :  { %7197 = vmatmul.mubr.bf16.gmra.mrb[20].mxu0 %v10598_v23  ;;  %7481 = vmatmul.mubr.bf16.gmra.mrb[20].mxu1 %v10598_v23 }
 0x19f   :  { %7230 = vmatpush1.bf16.msra.mxu0 %v9452_v39  ;;  %7514 = vmatpush1.bf16.msra.mxu1 %v9454_v47  ;;  %v9516_v39 = vcombine.low %v981_v20, %v989_v10  ;;  %v9518_v47 = vcombine.low %v982_v14, %v990_v27  ;;  %v1045_v20 = vld [vmem:[#allocation2 + $0x1510] sm:$0xff]  ;;  %v1046_v14 = vld [vmem:[#allocation2 + $0x1518] sm:$0xff] }
 0x1a0   :  { %7231 = vmatprep.subr.bf16.mxu0 %v9469_v43  ;;  %7515 = vmatprep.subr.bf16.mxu1 %v9471_v49  ;;  %v9533_v43 = vcombine.high %v997_v51, %v1005_v59  ;;  %v9535_v49 = vcombine.high %v998_v30, %v1006_v31  ;;  %v1053_v10 = vld [vmem:[#allocation2 + $0x1550] sm:$0xff]  ;;  %v1054_v27 = vld [vmem:[#allocation2 + $0x1558] sm:$0xff] }
 0x1a1   :  { %7206 = vmatprep.mubr.bf16.mxu0 %v10605_v38  ;;  %7490 = vmatprep.mubr.bf16.mxu1 %v10605_v38 }
 0x1a3   :  { %7232 = vmatpush1.bf16.msra.mxu0 %v9468_v35  ;;  %7516 = vmatpush1.bf16.msra.mxu1 %v9470_v0  ;;  %v9532_v35 = vcombine.low %v997_v51, %v1005_v59  ;;  %v9534_v0 = vcombine.low %v998_v30, %v1006_v31  ;;  %v1061_v51 = vld [vmem:[#allocation2 + $0x1590] sm:$0xff]  ;;  %v1062_v30 = vld [vmem:[#allocation2 + $0x1598] sm:$0xff] }
 0x1a4   :  { %7233 = vmatprep.subr.bf16.mxu0 %v9485_v61  ;;  %7517 = vmatprep.subr.bf16.mxu1 %v9487_v52  ;;  %v9549_v61 = vcombine.high %v1013_v33, %v1021_v56  ;;  %v9551_v52 = vcombine.high %v1014_v55, %v1022_v62  ;;  %v1069_v59 = vld [vmem:[#allocation2 + $0x15d0] sm:$0xff]  ;;  %v1070_v31 = vld [vmem:[#allocation2 + $0x15d8] sm:$0xff] }
 0x1a6   :  { %7207 = vmatmul.mubr.bf16.gmra.mrb[24].mxu0 %v10632_v60  ;;  %7491 = vmatmul.mubr.bf16.gmra.mrb[24].mxu1 %v10632_v60 }
 0x1a7   :  { %7234 = vmatpush1.bf16.msra.mxu0 %v9484_v6  ;;  %7518 = vmatpush1.bf16.msra.mxu1 %v9486_v9  ;;  %v9548_v6 = vcombine.low %v1013_v33, %v1021_v56  ;;  %v9550_v9 = vcombine.low %v1014_v55, %v1022_v62  ;;  %v1077_v33 = vld [vmem:[#allocation2 + $0x1610] sm:$0xff]  ;;  %v1078_v55 = vld [vmem:[#allocation2 + $0x1618] sm:$0xff] }
 0x1a8   :  { %7235 = vmatprep.subr.bf16.mxu0 %v9501_v15  ;;  %7519 = vmatprep.subr.bf16.mxu1 %v9503_v19  ;;  %v9565_v15 = vcombine.high %v1029_v5, %v1037_v44  ;;  %v9567_v19 = vcombine.high %v1030_v63, %v1038_v40  ;;  %v1085_v56 = vld [vmem:[#allocation2 + $0x1650] sm:$0xff]  ;;  %v1086_v62 = vld [vmem:[#allocation2 + $0x1658] sm:$0xff] }
 0x1a9   :  { %7216 = vmatprep.mubr.bf16.mxu0 %v10635_v11  ;;  %7500 = vmatprep.mubr.bf16.mxu1 %v10635_v11 }
 0x1ab   :  { %7236 = vmatpush1.bf16.msra.mxu0 %v9500_v7  ;;  %7520 = vmatpush1.bf16.msra.mxu1 %v9502_v28  ;;  %v9564_v7 = vcombine.low %v1029_v5, %v1037_v44  ;;  %v9566_v28 = vcombine.low %v1030_v63, %v1038_v40  ;;  %v1093_v5 = vld [vmem:[#allocation2 + $0x1690] sm:$0xff]  ;;  %v1094_v63 = vld [vmem:[#allocation2 + $0x1698] sm:$0xff] }
 0x1ac   :  { %7237 = vmatprep.subr.bf16.mxu0 %v9517_v22  ;;  %7521 = vmatprep.subr.bf16.mxu1 %v9519_v26  ;;  %v9581_v22 = vcombine.high %v1045_v20, %v1053_v10  ;;  %v9583_v26 = vcombine.high %v1046_v14, %v1054_v27  ;;  %v1101_v44 = vld [vmem:[#allocation2 + $0x16d0] sm:$0xff]  ;;  %v1102_v40 = vld [vmem:[#allocation2 + $0x16d8] sm:$0xff] }
 0x1ae   :  { %7217 = vmatmul.mubr.bf16.gmra.mrb[28].mxu0 %v10643_v50  ;;  %7501 = vmatmul.mubr.bf16.gmra.mrb[28].mxu1 %v10643_v50 }
 0x1af   :  { %7238 = vmatpush1.bf16.msra.mxu0 %v9516_v39  ;;  %7522 = vmatpush1.bf16.msra.mxu1 %v9518_v47  ;;  %v9580_v39 = vcombine.low %v1045_v20, %v1053_v10  ;;  %v9582_v47 = vcombine.low %v1046_v14, %v1054_v27  ;;  %v1109_v20 = vld [vmem:[#allocation2 + $0x1710] sm:$0xff]  ;;  %v1110_v14 = vld [vmem:[#allocation2 + $0x1718] sm:$0xff] }
 0x1b0   :  { %7239 = vmatprep.subr.bf16.mxu0 %v9533_v43  ;;  %7523 = vmatprep.subr.bf16.mxu1 %v9535_v49  ;;  %v9597_v43 = vcombine.high %v1061_v51, %v1069_v59  ;;  %v9599_v49 = vcombine.high %v1062_v30, %v1070_v31  ;;  %v1117_v10 = vld [vmem:[#allocation2 + $0x1750] sm:$0xff]  ;;  %v1118_v27 = vld [vmem:[#allocation2 + $0x1758] sm:$0xff] }
 0x1b1   :  { %7257 = vmatprep.mubr.bf16.mxu0 %v10645_v42  ;;  %7541 = vmatprep.mubr.bf16.mxu1 %v10645_v42 }
 0x1b3   :  { %7240 = vmatpush1.bf16.msra.mxu0 %v9532_v35  ;;  %7524 = vmatpush1.bf16.msra.mxu1 %v9534_v0  ;;  %v9596_v35 = vcombine.low %v1061_v51, %v1069_v59  ;;  %v9598_v0 = vcombine.low %v1062_v30, %v1070_v31  ;;  %v1125_v51 = vld [vmem:[#allocation2 + $0x1790] sm:$0xff]  ;;  %v1126_v30 = vld [vmem:[#allocation2 + $0x1798] sm:$0xff] }
 0x1b4   :  { %7241 = vmatprep.subr.bf16.mxu0 %v9549_v61  ;;  %7525 = vmatprep.subr.bf16.mxu1 %v9551_v52  ;;  %v9613_v61 = vcombine.high %v1077_v33, %v1085_v56  ;;  %v9615_v52 = vcombine.high %v1078_v55, %v1086_v62  ;;  %v1133_v59 = vld [vmem:[#allocation2 + $0x17d0] sm:$0xff]  ;;  %v1134_v31 = vld [vmem:[#allocation2 + $0x17d8] sm:$0xff] }
 0x1b7   :  { %7242 = vmatpush1.bf16.msra.mxu0 %v9548_v6  ;;  %7526 = vmatpush1.bf16.msra.mxu1 %v9550_v9  ;;  %v9612_v6 = vcombine.low %v1077_v33, %v1085_v56  ;;  %v9614_v9 = vcombine.low %v1078_v55, %v1086_v62  ;;  %v1141_v33 = vld [vmem:[#allocation2 + $0x1810] sm:$0xff]  ;;  %v1142_v55 = vld [vmem:[#allocation2 + $0x1818] sm:$0xff] }
 0x1b8   :  { %7243 = vmatprep.subr.bf16.mxu0 %v9565_v15  ;;  %7527 = vmatprep.subr.bf16.mxu1 %v9567_v19  ;;  %v9629_v15 = vcombine.high %v1093_v5, %v1101_v44  ;;  %v9631_v19 = vcombine.high %v1094_v63, %v1102_v40  ;;  %v1149_v56 = vld [vmem:[#allocation2 + $0x1850] sm:$0xff]  ;;  %v1150_v62 = vld [vmem:[#allocation2 + $0x1858] sm:$0xff] }
 0x1bb   :  { %7244 = vmatpush1.bf16.msra.mxu0 %v9564_v7  ;;  %7528 = vmatpush1.bf16.msra.mxu1 %v9566_v28  ;;  %v9628_v7 = vcombine.low %v1093_v5, %v1101_v44  ;;  %v9630_v28 = vcombine.low %v1094_v63, %v1102_v40  ;;  %v1157_v5 = vld [vmem:[#allocation2 + $0x1890] sm:$0xff]  ;;  %v1158_v63 = vld [vmem:[#allocation2 + $0x1898] sm:$0xff] }
 0x1bc   :  { %7245 = vmatprep.subr.bf16.mxu0 %v9581_v22  ;;  %7529 = vmatprep.subr.bf16.mxu1 %v9583_v26  ;;  %v9645_v22 = vcombine.high %v1109_v20, %v1117_v10  ;;  %v9647_v26 = vcombine.high %v1110_v14, %v1118_v27  ;;  %v1165_v44 = vld [vmem:[#allocation2 + $0x18d0] sm:$0xff]  ;;  %v1166_v40 = vld [vmem:[#allocation2 + $0x18d8] sm:$0xff] }
 0x1bf   :  { %7246 = vmatpush1.bf16.msra.mxu0 %v9580_v39  ;;  %7530 = vmatpush1.bf16.msra.mxu1 %v9582_v47  ;;  %v9644_v39 = vcombine.low %v1109_v20, %v1117_v10  ;;  %v9646_v47 = vcombine.low %v1110_v14, %v1118_v27  ;;  %v1173_v20 = vld [vmem:[#allocation2 + $0x1910] sm:$0xff]  ;;  %v1174_v14 = vld [vmem:[#allocation2 + $0x1918] sm:$0xff] }
 0x1c0   :  { %7247 = vmatprep.subr.bf16.mxu0 %v9597_v43  ;;  %7531 = vmatprep.subr.bf16.mxu1 %v9599_v49  ;;  %v9661_v43 = vcombine.high %v1125_v51, %v1133_v59  ;;  %v9663_v49 = vcombine.high %v1126_v30, %v1134_v31  ;;  %v1181_v10 = vld [vmem:[#allocation2 + $0x1950] sm:$0xff]  ;;  %v1182_v27 = vld [vmem:[#allocation2 + $0x1958] sm:$0xff] }
 0x1c3   :  { %7248 = vmatpush1.bf16.msra.mxu0 %v9596_v35  ;;  %7532 = vmatpush1.bf16.msra.mxu1 %v9598_v0  ;;  %v9660_v35 = vcombine.low %v1125_v51, %v1133_v59  ;;  %v9662_v0 = vcombine.low %v1126_v30, %v1134_v31  ;;  %v1189_v51 = vld [vmem:[#allocation2 + $0x1990] sm:$0xff]  ;;  %v1190_v30 = vld [vmem:[#allocation2 + $0x1998] sm:$0xff] }
 0x1c4   :  { %7249 = vmatprep.subr.bf16.mxu0 %v9613_v61  ;;  %7533 = vmatprep.subr.bf16.mxu1 %v9615_v52  ;;  %v9677_v61 = vcombine.high %v1141_v33, %v1149_v56  ;;  %v9679_v52 = vcombine.high %v1142_v55, %v1150_v62  ;;  %v1197_v59 = vld [vmem:[#allocation2 + $0x19d0] sm:$0xff]  ;;  %v1198_v31 = vld [vmem:[#allocation2 + $0x19d8] sm:$0xff] }
 0x1c7   :  { %7250 = vmatpush1.bf16.msra.mxu0 %v9612_v6  ;;  %7534 = vmatpush1.bf16.msra.mxu1 %v9614_v9  ;;  %v9676_v6 = vcombine.low %v1141_v33, %v1149_v56  ;;  %v9678_v9 = vcombine.low %v1142_v55, %v1150_v62  ;;  %v1205_v33 = vld [vmem:[#allocation2 + $0x1a10] sm:$0xff]  ;;  %v1206_v55 = vld [vmem:[#allocation2 + $0x1a18] sm:$0xff] }
 0x1c8   :  { %7251 = vmatprep.subr.bf16.mxu0 %v9629_v15  ;;  %7535 = vmatprep.subr.bf16.mxu1 %v9631_v19  ;;  %v9693_v15 = vcombine.high %v1157_v5, %v1165_v44  ;;  %v9695_v19 = vcombine.high %v1158_v63, %v1166_v40  ;;  %v1213_v56 = vld [vmem:[#allocation2 + $0x1a50] sm:$0xff]  ;;  %v1214_v62 = vld [vmem:[#allocation2 + $0x1a58] sm:$0xff] }
 0x1cb   :  { %7252 = vmatpush1.bf16.msra.mxu0 %v9628_v7  ;;  %7536 = vmatpush1.bf16.msra.mxu1 %v9630_v28  ;;  %v9692_v7 = vcombine.low %v1157_v5, %v1165_v44  ;;  %v9694_v28 = vcombine.low %v1158_v63, %v1166_v40  ;;  %v1221_v5 = vld [vmem:[#allocation2 + $0x1a90] sm:$0xff]  ;;  %v1222_v63 = vld [vmem:[#allocation2 + $0x1a98] sm:$0xff] }
 0x1cc   :  { %7253 = vmatprep.subr.bf16.mxu0 %v9645_v22  ;;  %7537 = vmatprep.subr.bf16.mxu1 %v9647_v26  ;;  %v9709_v22 = vcombine.high %v1173_v20, %v1181_v10  ;;  %v9711_v26 = vcombine.high %v1174_v14, %v1182_v27  ;;  %v1229_v44 = vld [vmem:[#allocation2 + $0x1ad0] sm:$0xff]  ;;  %v1230_v40 = vld [vmem:[#allocation2 + $0x1ad8] sm:$0xff] }
 0x1cf   :  { %7254 = vmatpush1.bf16.msra.mxu0 %v9644_v39  ;;  %7538 = vmatpush1.bf16.msra.mxu1 %v9646_v47  ;;  %v9708_v39 = vcombine.low %v1173_v20, %v1181_v10  ;;  %v9710_v47 = vcombine.low %v1174_v14, %v1182_v27  ;;  %v1237_v20 = vld [vmem:[#allocation2 + $0x1b10] sm:$0xff]  ;;  %v1238_v14 = vld [vmem:[#allocation2 + $0x1b18] sm:$0xff] }
 0x1d0   :  { %7255 = vmatprep.subr.bf16.mxu0 %v9661_v43  ;;  %7539 = vmatprep.subr.bf16.mxu1 %v9663_v49  ;;  %v9725_v43 = vcombine.high %v1189_v51, %v1197_v59  ;;  %v9727_v49 = vcombine.high %v1190_v30, %v1198_v31  ;;  %v1245_v10 = vld [vmem:[#allocation2 + $0x1b50] sm:$0xff]  ;;  %v1246_v27 = vld [vmem:[#allocation2 + $0x1b58] sm:$0xff] }
 0x1d3   :  { %7256 = vmatpush1.bf16.msra.mxu0 %v9660_v35  ;;  %7540 = vmatpush1.bf16.msra.mxu1 %v9662_v0  ;;  %v9724_v35 = vcombine.low %v1189_v51, %v1197_v59  ;;  %v9726_v0 = vcombine.low %v1190_v30, %v1198_v31  ;;  %v9775_v51 = vcombine.high %v1238_v14, %v1246_v27  ;;  %v1253_v59 = vld [vmem:[#allocation2 + $0x1b90] sm:$0xff] }
 0x1d4   :  { %7296 = vmatprep.subr.bf16.mxu0 %v9677_v61  ;;  %7580 = vmatprep.subr.bf16.mxu1 %v9679_v52  ;;  %v9741_v61 = vcombine.high %v1205_v33, %v1213_v56  ;;  %v9743_v52 = vcombine.high %v1206_v55, %v1214_v62  ;;  %v1261_v30 = vld [vmem:[#allocation2 + $0x1bd0] sm:$0xff] }
 0x1d6   :  { %7258 = vmatmul.mubr.bf16.vlgmr.msra.gmra.mrb[16].mxu0 %v10699_v4  ;;  %7542 = vmatmul.mubr.bf16.vlgmr.msra.gmra.mrb[16].mxu1 %v10699_v4 }
 0x1d7   :  { %7297 = vmatpush1.bf16.msra.mxu0 %v9676_v6  ;;  %7581 = vmatpush1.bf16.msra.mxu1 %v9678_v9  ;;  %v9740_v6 = vcombine.low %v1205_v33, %v1213_v56  ;;  %v9742_v9 = vcombine.low %v1206_v55, %v1214_v62  ;;  %v9772_v56 = vcombine.low %v1237_v20, %v1245_v10 }
 0x1d8   :  { %7298 = vmatprep.subr.bf16.mxu0 %v9693_v15  ;;  %7582 = vmatprep.subr.bf16.mxu1 %v9695_v19  ;;  %v9757_v15 = vcombine.high %v1221_v5, %v1229_v44  ;;  %v9759_v19 = vcombine.high %v1222_v63, %v1230_v40 }
 0x1d9   :  { %7267 = vmatprep.mubr.bf16.mxu0 %v10709_v24  ;;  %7551 = vmatprep.mubr.bf16.mxu1 %v10709_v24 }
 0x1db   :  { %7299 = vmatpush1.bf16.msra.mxu0 %v9692_v7  ;;  %7583 = vmatpush1.bf16.msra.mxu1 %v9694_v28  ;;  %v9756_v7 = vcombine.low %v1221_v5, %v1229_v44  ;;  %v9758_v28 = vcombine.low %v1222_v63, %v1230_v40  ;;  %v1269_v5 = vld [vmem:[#allocation2 + $0x1c10] sm:$0xff]  ;;  %v1270_v63 = vld [vmem:[#allocation2 + $0x1c18] sm:$0xff] }
 0x1dc   :  { %7300 = vmatprep.subr.bf16.mxu0 %v9709_v22  ;;  %7584 = vmatprep.subr.bf16.mxu1 %v9711_v26  ;;  %v9773_v22 = vcombine.high %v1237_v20, %v1245_v10  ;;  %v1277_v44 = vld [vmem:[#allocation2 + $0x1c50] sm:$0xff]  ;;  %v1278_v40 = vld [vmem:[#allocation2 + $0x1c58] sm:$0xff] }
 0x1dd   :  { %v9807_v20 = vcombine.high %v1270_v63, %v1278_v40  ;;  %v1285_v10 = vld [vmem:[#allocation2 + $0x1c90] sm:$0xff] }
 0x1de   :  { %7268 = vmatmul.mubr.bf16.gmra.mrb[20].mxu0 %v10724_v54  ;;  %7552 = vmatmul.mubr.bf16.gmra.mrb[20].mxu1 %v10724_v54 }
 0x1df   :  { %7301 = vmatpush1.bf16.msra.mxu0 %v9708_v39  ;;  %7585 = vmatpush1.bf16.msra.mxu1 %v9710_v47  ;;  %v1254_v47 = vld [vmem:[#allocation2 + $0x1b98] sm:$0xff] }
 0x1e0   :  { %7302 = vmatprep.subr.bf16.mxu0 %v9725_v43  ;;  %7586 = vmatprep.subr.bf16.mxu1 %v9727_v49  ;;  %v1262_v43 = vld [vmem:[#allocation2 + $0x1bd8] sm:$0xff] }
 0x1e1   :  { %7277 = vmatprep.mubr.bf16.mxu0 %v10731_v16  ;;  %7561 = vmatprep.mubr.bf16.mxu1 %v10731_v16 }
 0x1e3   :  { %7303 = vmatpush1.bf16.msra.mxu0 %v9724_v35  ;;  %7587 = vmatpush1.bf16.msra.mxu1 %v9726_v0  ;;  %v9774_v35 = vcombine.low %v1238_v14, %v1246_v27  ;;  %v9789_v0 = vcombine.high %v1253_v59, %v1261_v30  ;;  %v1293_v14 = vld [vmem:[#allocation2 + $0x1cd0] sm:$0xff] }
 0x1e4   :  { %7304 = vmatprep.subr.bf16.mxu0 %v9741_v61  ;;  %7588 = vmatprep.subr.bf16.mxu1 %v9743_v52  ;;  %v9791_v52 = vcombine.high %v1254_v47, %v1262_v43 }
 0x1e6   :  { %7278 = vmatmul.mubr.bf16.gmra.mrb[24].mxu0 %v10753_v46  ;;  %7562 = vmatmul.mubr.bf16.gmra.mrb[24].mxu1 %v10753_v46 }
 0x1e7   :  { %7305 = vmatpush1.bf16.msra.mxu0 %v9740_v6  ;;  %7589 = vmatpush1.bf16.msra.mxu1 %v9742_v9  ;;  %v9788_v6 = vcombine.low %v1253_v59, %v1261_v30  ;;  %v9790_v9 = vcombine.low %v1254_v47, %v1262_v43  ;;  %v9804_v59 = vcombine.low %v1269_v5, %v1277_v44 }
 0x1e8   :  { %7306 = vmatprep.subr.bf16.mxu0 %v9757_v15  ;;  %7590 = vmatprep.subr.bf16.mxu1 %v9759_v19  ;;  %v9805_v15 = vcombine.high %v1269_v5, %v1277_v44  ;;  %v9821_v47 = vcombine.high %v1285_v10, %v1293_v14  ;;  %v1317_v44 = vld [vmem:[#allocation2 + $0x1d90] sm:$0xff] }
 0x1e9   :  { %v6762_v26 = vpop.f32.mrb[0].mxu0  ;;  %7287 = vmatprep.mubr.bf16.mxu0 %v10756_v53  ;;  %v7046_v31 = vpop.f32.mrb[0].mxu1  ;;  %7571 = vmatprep.mubr.bf16.mxu1 %v10756_v53 }
 0x1ea   :  { %8787 = vst [vmem:[%s11399_s4] sm:$0xff] %v6762_v26  ;;  %v6764_v39 = vpop.f32.mrb[1].mxu0  ;;  %8789 = vst [vmem:[%s11399_s4 + $0x10] sm:$0xff] %v7046_v31  ;;  %v7048_v49 = vpop.f32.mrb[1].mxu1 }
 0x1eb   :  { %8788 = vst [vmem:[%s11399_s4 + $0x8] sm:$0xff] %v6764_v39  ;;  %v6766_v33 = vpop.f32.mrb[2].mxu0  ;;  %7307 = vmatpush1.bf16.msra.mxu0 %v9756_v7  ;;  %8790 = vst [vmem:[%s11399_s4 + $0x18] sm:$0xff] %v7048_v49  ;;  %v7050_v55 = vpop.f32.mrb[2].mxu1  ;;  %7591 = vmatpush1.bf16.msra.mxu1 %v9758_v28  ;;  %v1286_v28 = vld [vmem:[#allocation2 + $0x1c98] sm:$0xff]  ;;  %v9806_v39 = vcombine.low %v1270_v63, %v1278_v40  ;;  %v1325_v63 = vld [vmem:[#allocation2 + $0x1dd0] sm:$0xff] }
 0x1ec   :  { %8803 = vst [vmem:[%s11399_s4 + $0x80] sm:$0xff] %v6766_v33  ;;  %v6768_v62 = vpop.f32.mrb[3].mxu0  ;;  %7308 = vmatprep.subr.bf16.mxu0 %v9773_v22  ;;  %8805 = vst [vmem:[%s11399_s4 + $0x90] sm:$0xff] %v7050_v55  ;;  %v7052_v61 = vpop.f32.mrb[3].mxu1  ;;  %7592 = vmatprep.subr.bf16.mxu1 %v9775_v51  ;;  %v1294_v22 = vld [vmem:[#allocation2 + $0x1cd8] sm:$0xff]  ;;  %v1301_v33 = vld [vmem:[#allocation2 + $0x1d10] sm:$0xff] }
 0x1ed   :  { %8804 = vst [vmem:[%s11399_s4 + $0x88] sm:$0xff] %v6768_v62  ;;  %8806 = vst [vmem:[%s11399_s4 + $0x98] sm:$0xff] %v7052_v61  ;;  %v9823_v49 = vcombine.high %v1286_v28, %v1294_v22  ;;  %v1302_v55 = vld [vmem:[#allocation2 + $0x1d18] sm:$0xff] }
 0x1ee   :  { %7288 = vmatmul.mubr.bf16.gmra.mrb[28].mxu0 %v10764_v21  ;;  %7572 = vmatmul.mubr.bf16.gmra.mrb[28].mxu1 %v10764_v21  ;;  %v1310_v62 = vld [vmem:[#allocation2 + $0x1d58] sm:$0xff] }
 0x1ef   :  { %7309 = vmatpush1.bf16.msra.mxu0 %v9772_v56  ;;  %7593 = vmatpush1.bf16.msra.mxu1 %v9774_v35  ;;  %v1309_v56 = vld [vmem:[#allocation2 + $0x1d50] sm:$0xff]  ;;  %v9820_v35 = vcombine.low %v1285_v10, %v1293_v14  ;;  %v9839_v5 = vcombine.high %v1302_v55, %v1310_v62 }
 0x1f0   :  { %7310 = vmatprep.subr.bf16.mxu0 %v9789_v0  ;;  %7594 = vmatprep.subr.bf16.mxu1 %v9791_v52  ;;  %v9822_v0 = vcombine.low %v1286_v28, %v1294_v22  ;;  %v9837_v61 = vcombine.high %v1301_v33, %v1309_v56  ;;  %v9836_v10 = vcombine.low %v1301_v33, %v1309_v56  ;;  %v1349_v56 = vld [vmem:[#allocation2 + $0x1e90] sm:$0xff] }
 0x1f1   :  { %v6772_v19 = vpop.f32.mrb[4].mxu0  ;;  %7328 = vmatprep.mubr.bf16.mxu0 %v10766_v29  ;;  %v7056_v27 = vpop.f32.mrb[4].mxu1  ;;  %7612 = vmatprep.mubr.bf16.mxu1 %v10766_v29  ;;  %v9853_v28 = vcombine.high %v1317_v44, %v1325_v63 }
 0x1f2   :  { %8819 = vst [vmem:[%s11399_s4 + $0x100] sm:$0xff] %v6772_v19  ;;  %v6774_v7 = vpop.f32.mrb[5].mxu0  ;;  %8821 = vst [vmem:[%s11399_s4 + $0x110] sm:$0xff] %v7056_v27  ;;  %v7058_v26 = vpop.f32.mrb[5].mxu1 }
 0x1f3   :  { %8820 = vst [vmem:[%s11399_s4 + $0x108] sm:$0xff] %v6774_v7  ;;  %v6776_v51 = vpop.f32.mrb[6].mxu0  ;;  %7311 = vmatpush1.bf16.msra.mxu0 %v9788_v6  ;;  %8822 = vst [vmem:[%s11399_s4 + $0x118] sm:$0xff] %v7058_v26  ;;  %v7060_v30 = vpop.f32.mrb[6].mxu1  ;;  %7595 = vmatpush1.bf16.msra.mxu1 %v9790_v9  ;;  %v1318_v9 = vld [vmem:[#allocation2 + $0x1d98] sm:$0xff]  ;;  %v9838_v7 = vcombine.low %v1302_v55, %v1310_v62  ;;  %v1357_v55 = vld [vmem:[#allocation2 + $0x1ed0] sm:$0xff] }
 0x1f4   :  { %8835 = vst [vmem:[%s11399_s4 + $0x180] sm:$0xff] %v6776_v51  ;;  %v6778_v31 = vpop.f32.mrb[7].mxu0  ;;  %7312 = vmatprep.subr.bf16.mxu0 %v9805_v15  ;;  %8837 = vst [vmem:[%s11399_s4 + $0x190] sm:$0xff] %v7060_v30  ;;  %v7062_v43 = vpop.f32.mrb[7].mxu1  ;;  %7596 = vmatprep.subr.bf16.mxu1 %v9807_v20  ;;  %v1326_v15 = vld [vmem:[#allocation2 + $0x1dd8] sm:$0xff]  ;;  %v1333_v51 = vld [vmem:[#allocation2 + $0x1e10] sm:$0xff] }
 0x1f5   :  { %8836 = vst [vmem:[%s11399_s4 + $0x188] sm:$0xff] %v6778_v31  ;;  %8838 = vst [vmem:[%s11399_s4 + $0x198] sm:$0xff] %v7062_v43  ;;  %v9855_v26 = vcombine.high %v1318_v9, %v1326_v15  ;;  %v1334_v30 = vld [vmem:[#allocation2 + $0x1e18] sm:$0xff] }
 0x1f6   :  { %v1342_v31 = vld [vmem:[#allocation2 + $0x1e58] sm:$0xff] }
 0x1f7   :  { %7313 = vmatpush1.bf16.msra.mxu0 %v9804_v59  ;;  %7597 = vmatpush1.bf16.msra.mxu1 %v9806_v39  ;;  %v1341_v59 = vld [vmem:[#allocation2 + $0x1e50] sm:$0xff]  ;;  %v9852_v39 = vcombine.low %v1317_v44, %v1325_v63  ;;  %v9871_v33 = vcombine.high %v1334_v30, %v1342_v31 }
 0x1f8   :  { %7314 = vmatprep.subr.bf16.mxu0 %v9821_v47  ;;  %7598 = vmatprep.subr.bf16.mxu1 %v9823_v49  ;;  %v9854_v47 = vcombine.low %v1318_v9, %v1326_v15  ;;  %v9869_v43 = vcombine.high %v1333_v51, %v1341_v59  ;;  %v9868_v44 = vcombine.low %v1333_v51, %v1341_v59  ;;  %v1381_v51 = vld [vmem:[#allocation2 + $0x1f90] sm:$0xff] }
 0x1f9   :  { %v6782_v52 = vpop.f32.mrb[8].mxu0  ;;  %v7066_v40 = vpop.f32.mrb[8].mxu1  ;;  %v9885_v9 = vcombine.high %v1349_v56, %v1357_v55  ;;  %v1389_v59 = vld [vmem:[#allocation2 + $0x1fd0] sm:$0xff] }
 0x1fa   :  { %8851 = vst [vmem:[%s11399_s4 + $0x200] sm:$0xff] %v6782_v52  ;;  %v6784_v6 = vpop.f32.mrb[9].mxu0  ;;  %8853 = vst [vmem:[%s11399_s4 + $0x210] sm:$0xff] %v7066_v40  ;;  %v7068_v19 = vpop.f32.mrb[9].mxu1 }
 0x1fb   :  { %8852 = vst [vmem:[%s11399_s4 + $0x208] sm:$0xff] %v6784_v6  ;;  %v6786_v20 = vpop.f32.mrb[10].mxu0  ;;  %7315 = vmatpush1.bf16.msra.mxu0 %v9820_v35  ;;  %8854 = vst [vmem:[%s11399_s4 + $0x218] sm:$0xff] %v7068_v19  ;;  %v7070_v14 = vpop.f32.mrb[10].mxu1  ;;  %7599 = vmatpush1.bf16.msra.mxu1 %v9822_v0  ;;  %v1350_v0 = vld [vmem:[#allocation2 + $0x1e98] sm:$0xff]  ;;  %v9870_v6 = vcombine.low %v1334_v30, %v1342_v31 }
 0x1fc   :  { %8867 = vst [vmem:[%s11399_s4 + $0x280] sm:$0xff] %v6786_v20  ;;  %v6788_v27 = vpop.f32.mrb[11].mxu0  ;;  %7316 = vmatprep.subr.bf16.mxu0 %v9837_v61  ;;  %8869 = vst [vmem:[%s11399_s4 + $0x290] sm:$0xff] %v7070_v14  ;;  %v7072_v22 = vpop.f32.mrb[11].mxu1  ;;  %7600 = vmatprep.subr.bf16.mxu1 %v9839_v5  ;;  %v1358_v61 = vld [vmem:[#allocation2 + $0x1ed8] sm:$0xff]  ;;  %v1365_v20 = vld [vmem:[#allocation2 + $0x1f10] sm:$0xff] }
 0x1fd   :  { %8868 = vst [vmem:[%s11399_s4 + $0x288] sm:$0xff] %v6788_v27  ;;  %8870 = vst [vmem:[%s11399_s4 + $0x298] sm:$0xff] %v7072_v22  ;;  %v9887_v19 = vcombine.high %v1350_v0, %v1358_v61  ;;  %v1366_v14 = vld [vmem:[#allocation2 + $0x1f18] sm:$0xff] }
 0x1fe   :  { %v1374_v27 = vld [vmem:[#allocation2 + $0x1f58] sm:$0xff] }
 0x1ff   :  { %7317 = vmatpush1.bf16.msra.mxu0 %v9836_v10  ;;  %7601 = vmatpush1.bf16.msra.mxu1 %v9838_v7  ;;  %v1373_v10 = vld [vmem:[#allocation2 + $0x1f50] sm:$0xff]  ;;  %v9884_v7 = vcombine.low %v1349_v56, %v1357_v55  ;;  %v1390_v30 = vld [vmem:[#allocation2 + $0x1fd8] sm:$0xff]  ;;  %v383_v56 = vld [vmem:[#allocation2 + $0x60] sm:$0xff] }
 0x200   :  { %7318 = vmatprep.subr.bf16.mxu0 %v9853_v28  ;;  %7602 = vmatprep.subr.bf16.mxu1 %v9855_v26  ;;  %v9886_v28 = vcombine.low %v1350_v0, %v1358_v61  ;;  %v9901_v22 = vcombine.high %v1365_v20, %v1373_v10  ;;  %v9903_v26 = vcombine.high %v1366_v14, %v1374_v27  ;;  %v376_v55 = vld [vmem:[#allocation2 + $0x28] sm:$0xff] }
 0x201   :  { %v6792_v49 = vpop.f32.mrb[12].mxu0  ;;  %v7076_v62 = vpop.f32.mrb[12].mxu1  ;;  %v9900_v31 = vcombine.low %v1365_v20, %v1373_v10  ;;  %v407_v20 = vld [vmem:[#allocation2 + $0x120] sm:$0xff] }
 0x202   :  { %8883 = vst [vmem:[%s11399_s4 + $0x300] sm:$0x1] %v6792_v49  ;;  %v6794_v35 = vpop.f32.mrb[13].mxu0  ;;  %8885 = vst [vmem:[%s11399_s4 + $0x310] sm:$0x1] %v7076_v62  ;;  %v7078_v52 = vpop.f32.mrb[13].mxu1 }
 0x203   :  { %8884 = vst [vmem:[%s11399_s4 + $0x308] sm:$0x1] %v6794_v35  ;;  %v6796_v5 = vpop.f32.mrb[14].mxu0  ;;  %7319 = vmatpush1.bf16.msra.mxu0 %v9852_v39  ;;  %8886 = vst [vmem:[%s11399_s4 + $0x318] sm:$0x1] %v7078_v52  ;;  %v7080_v63 = vpop.f32.mrb[14].mxu1  ;;  %7603 = vmatpush1.bf16.msra.mxu1 %v9854_v47  ;;  %v9902_v47 = vcombine.low %v1366_v14, %v1374_v27  ;;  %v9916_v35 = vcombine.low %v1381_v51, %v1389_v59 }
 0x204   :  { %v6797_v40 = vpop.f32.mrb[15].mxu0  ;;  %7320 = vmatprep.subr.bf16.mxu0 %v9869_v43  ;;  %v7081_v15 = vpop.f32.mrb[15].mxu1  ;;  %7604 = vmatprep.subr.bf16.mxu1 %v9871_v33  ;;  %v1382_v39 = vld [vmem:[#allocation2 + $0x1f98] sm:$0xff]  ;;  %v9917_v43 = vcombine.high %v1381_v51, %v1389_v59  ;;  %v375_v33 = vld [vmem:[#allocation2 + $0x20] sm:$0xff]  ;;  %v384_v62 = vld [vmem:[#allocation2 + $0x68] sm:$0xff] }
 0x205   :  { %v9919_v49 = vcombine.high %v1382_v39, %v1390_v30  ;;  %v9918_v0 = vcombine.low %v1382_v39, %v1390_v30  ;;  %v8913_v61 = vcombine.high %v375_v33, %v383_v56  ;;  %v8915_v52 = vcombine.high %v376_v55, %v384_v62  ;;  %v391_v5 = vld [vmem:[#allocation2 + $0xa0] sm:$0xff]  ;;  %v392_v63 = vld [vmem:[#allocation2 + $0xa8] sm:$0xff] }
 0x206   :  { %v400_v40 = vld [vmem:[#allocation2 + $0xe8] sm:$0xff]  ;;  %v415_v10 = vld [vmem:[#allocation2 + $0x160] sm:$0xff] }
 0x207   :  { %7321 = vmatpush1.bf16.msra.mxu0 %v9868_v44  ;;  %7605 = vmatpush1.bf16.msra.mxu1 %v9870_v6  ;;  %v399_v44 = vld [vmem:[#allocation2 + $0xe0] sm:$0xff]  ;;  %v8912_v6 = vcombine.low %v375_v33, %v383_v56  ;;  %v408_v14 = vld [vmem:[#allocation2 + $0x128] sm:$0xff] }
 0x208   :  { %7322 = vmatprep.subr.bf16.mxu0 %v9885_v9  ;;  %7606 = vmatprep.subr.bf16.mxu1 %v9887_v19  ;;  %v8914_v9 = vcombine.low %v376_v55, %v384_v62  ;;  %v8929_v15 = vcombine.high %v391_v5, %v399_v44  ;;  %v8931_v19 = vcombine.high %v392_v63, %v400_v40  ;;  %v416_v27 = vld [vmem:[#allocation2 + $0x168] sm:$0xff]  ;;  %v423_v51 = vld [vmem:[#allocation2 + $0x1a0] sm:$0xff] }
 0x209   :  { %v431_v59 = vld [vmem:[#allocation2 + $0x1e0] sm:$0xff]  ;;  %v424_v39 = vld [vmem:[#allocation2 + $0x1a8] sm:$0xff] }
 0x20a   :  { %v432_v30 = vld [vmem:[#allocation2 + $0x1e8] sm:$0xff]  ;;  %v439_v33 = vld [vmem:[#allocation2 + $0x220] sm:$0xff] }
 0x20b   :  { %7323 = vmatpush1.bf16.msra.mxu0 %v9884_v7  ;;  %7607 = vmatpush1.bf16.msra.mxu1 %v9886_v28  ;;  %v8928_v7 = vcombine.low %v391_v5, %v399_v44  ;;  %v8930_v28 = vcombine.low %v392_v63, %v400_v40  ;;  %v447_v56 = vld [vmem:[#allocation2 + $0x260] sm:$0xff]  ;;  %v440_v55 = vld [vmem:[#allocation2 + $0x228] sm:$0xff] }
 0x20c   :  { %7324 = vmatprep.subr.bf16.mxu0 %v9901_v22  ;;  %7608 = vmatprep.subr.bf16.mxu1 %v9903_v26  ;;  %v8945_v22 = vcombine.high %v407_v20, %v415_v10  ;;  %v8947_v26 = vcombine.high %v408_v14, %v416_v27  ;;  %v448_v62 = vld [vmem:[#allocation2 + $0x268] sm:$0xff]  ;;  %v455_v5 = vld [vmem:[#allocation2 + $0x2a0] sm:$0xff] }
 0x20d   :  { %v463_v44 = vld [vmem:[#allocation2 + $0x2e0] sm:$0xff]  ;;  %v456_v63 = vld [vmem:[#allocation2 + $0x2a8] sm:$0xff] }
 0x20e   :  { %v464_v40 = vld [vmem:[#allocation2 + $0x2e8] sm:$0xff] }
 0x20f   :  { %7325 = vmatpush1.bf16.msra.mxu0 %v9900_v31  ;;  %7609 = vmatpush1.bf16.msra.mxu1 %v9902_v47  ;;  %v8944_v31 = vcombine.low %v407_v20, %v415_v10  ;;  %v8946_v47 = vcombine.low %v408_v14, %v416_v27  ;;  %v471_v20 = vld [vmem:[#allocation2 + $0x320] sm:$0xff]  ;;  %v472_v14 = vld [vmem:[#allocation2 + $0x328] sm:$0xff] }
 0x210   :  { %7326 = vmatprep.subr.bf16.mxu0 %v9917_v43  ;;  %7610 = vmatprep.subr.bf16.mxu1 %v9919_v49  ;;  %v8961_v43 = vcombine.high %v423_v51, %v431_v59  ;;  %v8963_v49 = vcombine.high %v424_v39, %v432_v30  ;;  %v479_v10 = vld [vmem:[#allocation2 + $0x360] sm:$0xff]  ;;  %v480_v27 = vld [vmem:[#allocation2 + $0x368] sm:$0xff] }
 0x213   :  { %7327 = vmatpush1.bf16.msra.mxu0 %v9916_v35  ;;  %7611 = vmatpush1.bf16.msra.mxu1 %v9918_v0  ;;  %v8960_v35 = vcombine.low %v423_v51, %v431_v59  ;;  %v8962_v0 = vcombine.low %v424_v39, %v432_v30  ;;  %v487_v51 = vld [vmem:[#allocation2 + $0x3a0] sm:$0xff]  ;;  %v488_v39 = vld [vmem:[#allocation2 + $0x3a8] sm:$0xff] }
 0x214   :  { %7651 = vmatprep.subr.bf16.mxu0 %v8913_v61  ;;  %7935 = vmatprep.subr.bf16.mxu1 %v8915_v52  ;;  %v8977_v61 = vcombine.high %v439_v33, %v447_v56  ;;  %v8979_v52 = vcombine.high %v440_v55, %v448_v62  ;;  %v495_v59 = vld [vmem:[#allocation2 + $0x3e0] sm:$0xff]  ;;  %v496_v30 = vld [vmem:[#allocation2 + $0x3e8] sm:$0xff] }
 0x216   :  { %7329 = vmatmul.mubr.bf16.vlgmr.msra.gmra.mrb[16].mxu0 %v10815_v13  ;;  %7613 = vmatmul.mubr.bf16.vlgmr.msra.gmra.mrb[16].mxu1 %v10815_v13 }
 0x217   :  { %7652 = vmatpush1.bf16.msra.mxu0 %v8912_v6  ;;  %7936 = vmatpush1.bf16.msra.mxu1 %v8914_v9  ;;  %v8976_v6 = vcombine.low %v439_v33, %v447_v56  ;;  %v8978_v9 = vcombine.low %v440_v55, %v448_v62  ;;  %v503_v33 = vld [vmem:[#allocation2 + $0x420] sm:$0xff]  ;;  %v504_v55 = vld [vmem:[#allocation2 + $0x428] sm:$0xff] }
 0x218   :  { %7653 = vmatprep.subr.bf16.mxu0 %v8929_v15  ;;  %7937 = vmatprep.subr.bf16.mxu1 %v8931_v19  ;;  %v8993_v15 = vcombine.high %v455_v5, %v463_v44  ;;  %v8995_v19 = vcombine.high %v456_v63, %v464_v40  ;;  %v511_v56 = vld [vmem:[#allocation2 + $0x460] sm:$0xff]  ;;  %v512_v62 = vld [vmem:[#allocation2 + $0x468] sm:$0xff] }
 0x219   :  { %7338 = vmatprep.mubr.bf16.mxu0 %v10825_v37  ;;  %7622 = vmatprep.mubr.bf16.mxu1 %v10825_v37 }
 0x21b   :  { %7654 = vmatpush1.bf16.msra.mxu0 %v8928_v7  ;;  %7938 = vmatpush1.bf16.msra.mxu1 %v8930_v28  ;;  %v8992_v7 = vcombine.low %v455_v5, %v463_v44  ;;  %v8994_v28 = vcombine.low %v456_v63, %v464_v40  ;;  %v519_v5 = vld [vmem:[#allocation2 + $0x4a0] sm:$0xff]  ;;  %v520_v63 = vld [vmem:[#allocation2 + $0x4a8] sm:$0xff] }
 0x21c   :  { %7655 = vmatprep.subr.bf16.mxu0 %v8945_v22  ;;  %7939 = vmatprep.subr.bf16.mxu1 %v8947_v26  ;;  %v9009_v22 = vcombine.high %v471_v20, %v479_v10  ;;  %v9011_v26 = vcombine.high %v472_v14, %v480_v27  ;;  %v527_v44 = vld [vmem:[#allocation2 + $0x4e0] sm:$0xff]  ;;  %v528_v40 = vld [vmem:[#allocation2 + $0x4e8] sm:$0xff] }
 0x21e   :  { %7339 = vmatmul.mubr.bf16.gmra.mrb[20].mxu0 %v10839_v2  ;;  %7623 = vmatmul.mubr.bf16.gmra.mrb[20].mxu1 %v10839_v2 }
 0x21f   :  { %7656 = vmatpush1.bf16.msra.mxu0 %v8944_v31  ;;  %7940 = vmatpush1.bf16.msra.mxu1 %v8946_v47  ;;  %v9008_v31 = vcombine.low %v471_v20, %v479_v10  ;;  %v9010_v47 = vcombine.low %v472_v14, %v480_v27  ;;  %v535_v20 = vld [vmem:[#allocation2 + $0x520] sm:$0xff]  ;;  %v536_v14 = vld [vmem:[#allocation2 + $0x528] sm:$0xff] }
 0x220   :  { %7657 = vmatprep.subr.bf16.mxu0 %v8961_v43  ;;  %7941 = vmatprep.subr.bf16.mxu1 %v8963_v49  ;;  %v9025_v43 = vcombine.high %v487_v51, %v495_v59  ;;  %v9027_v49 = vcombine.high %v488_v39, %v496_v30  ;;  %v543_v10 = vld [vmem:[#allocation2 + $0x560] sm:$0xff]  ;;  %v544_v27 = vld [vmem:[#allocation2 + $0x568] sm:$0xff] }
 0x221   :  { %7348 = vmatprep.mubr.bf16.mxu0 %v10846_v45  ;;  %7632 = vmatprep.mubr.bf16.mxu1 %v10846_v45 }
 0x223   :  { %7658 = vmatpush1.bf16.msra.mxu0 %v8960_v35  ;;  %7942 = vmatpush1.bf16.msra.mxu1 %v8962_v0  ;;  %v9024_v35 = vcombine.low %v487_v51, %v495_v59  ;;  %v9026_v0 = vcombine.low %v488_v39, %v496_v30  ;;  %v551_v51 = vld [vmem:[#allocation2 + $0x5a0] sm:$0xff]  ;;  %v552_v39 = vld [vmem:[#allocation2 + $0x5a8] sm:$0xff] }
 0x224   :  { %7659 = vmatprep.subr.bf16.mxu0 %v8977_v61  ;;  %7943 = vmatprep.subr.bf16.mxu1 %v8979_v52  ;;  %v9041_v61 = vcombine.high %v503_v33, %v511_v56  ;;  %v9043_v52 = vcombine.high %v504_v55, %v512_v62  ;;  %v559_v59 = vld [vmem:[#allocation2 + $0x5e0] sm:$0xff]  ;;  %v560_v30 = vld [vmem:[#allocation2 + $0x5e8] sm:$0xff] }
 0x226   :  { %7349 = vmatmul.mubr.bf16.gmra.mrb[24].mxu0 %v10854_v3  ;;  %7633 = vmatmul.mubr.bf16.gmra.mrb[24].mxu1 %v10854_v3 }
 0x227   :  { %7660 = vmatpush1.bf16.msra.mxu0 %v8976_v6  ;;  %7944 = vmatpush1.bf16.msra.mxu1 %v8978_v9  ;;  %v9040_v6 = vcombine.low %v503_v33, %v511_v56  ;;  %v9042_v9 = vcombine.low %v504_v55, %v512_v62  ;;  %v567_v33 = vld [vmem:[#allocation2 + $0x620] sm:$0xff]  ;;  %v568_v55 = vld [vmem:[#allocation2 + $0x628] sm:$0xff] }
 0x228   :  { %7661 = vmatprep.subr.bf16.mxu0 %v8993_v15  ;;  %7945 = vmatprep.subr.bf16.mxu1 %v8995_v19  ;;  %v9057_v15 = vcombine.high %v519_v5, %v527_v44  ;;  %v9059_v19 = vcombine.high %v520_v63, %v528_v40  ;;  %v575_v56 = vld [vmem:[#allocation2 + $0x660] sm:$0xff]  ;;  %v576_v62 = vld [vmem:[#allocation2 + $0x668] sm:$0xff] }
 0x229   :  { %7358 = vmatprep.mubr.bf16.mxu0 %v10857_v17  ;;  %7642 = vmatprep.mubr.bf16.mxu1 %v10857_v17 }
 0x22b   :  { %7662 = vmatpush1.bf16.msra.mxu0 %v8992_v7  ;;  %7946 = vmatpush1.bf16.msra.mxu1 %v8994_v28  ;;  %v9056_v7 = vcombine.low %v519_v5, %v527_v44  ;;  %v9058_v28 = vcombine.low %v520_v63, %v528_v40  ;;  %v583_v5 = vld [vmem:[#allocation2 + $0x6a0] sm:$0xff]  ;;  %v584_v63 = vld [vmem:[#allocation2 + $0x6a8] sm:$0xff] }
 0x22c   :  { %7663 = vmatprep.subr.bf16.mxu0 %v9009_v22  ;;  %7947 = vmatprep.subr.bf16.mxu1 %v9011_v26  ;;  %v9073_v22 = vcombine.high %v535_v20, %v543_v10  ;;  %v9075_v26 = vcombine.high %v536_v14, %v544_v27  ;;  %v591_v44 = vld [vmem:[#allocation2 + $0x6e0] sm:$0xff]  ;;  %v592_v40 = vld [vmem:[#allocation2 + $0x6e8] sm:$0xff] }
 0x22e   :  { %7359 = vmatmul.mubr.bf16.gmra.mrb[28].mxu0 %v10863_v32  ;;  %7643 = vmatmul.mubr.bf16.gmra.mrb[28].mxu1 %v10863_v32 }
 0x22f   :  { %7664 = vmatpush1.bf16.msra.mxu0 %v9008_v31  ;;  %7948 = vmatpush1.bf16.msra.mxu1 %v9010_v47  ;;  %v9072_v31 = vcombine.low %v535_v20, %v543_v10  ;;  %v9074_v47 = vcombine.low %v536_v14, %v544_v27  ;;  %v599_v20 = vld [vmem:[#allocation2 + $0x720] sm:$0xff]  ;;  %v600_v14 = vld [vmem:[#allocation2 + $0x728] sm:$0xff] }
 0x230   :  { %7665 = vmatprep.subr.bf16.mxu0 %v9025_v43  ;;  %7949 = vmatprep.subr.bf16.mxu1 %v9027_v49  ;;  %v9089_v43 = vcombine.high %v551_v51, %v559_v59  ;;  %v9091_v49 = vcombine.high %v552_v39, %v560_v30  ;;  %v607_v10 = vld [vmem:[#allocation2 + $0x760] sm:$0xff]  ;;  %v608_v27 = vld [vmem:[#allocation2 + $0x768] sm:$0xff] }
 0x231   :  { %7683 = vmatprep.mubr.bf16.mxu0 %v10410_v25  ;;  %7967 = vmatprep.mubr.bf16.mxu1 %v10410_v25 }
 0x233   :  { %7666 = vmatpush1.bf16.msra.mxu0 %v9024_v35  ;;  %7950 = vmatpush1.bf16.msra.mxu1 %v9026_v0  ;;  %v9088_v35 = vcombine.low %v551_v51, %v559_v59  ;;  %v9090_v0 = vcombine.low %v552_v39, %v560_v30  ;;  %v615_v51 = vld [vmem:[#allocation2 + $0x7a0] sm:$0xff]  ;;  %v616_v39 = vld [vmem:[#allocation2 + $0x7a8] sm:$0xff] }
 0x234   :  { %7667 = vmatprep.subr.bf16.mxu0 %v9041_v61  ;;  %7951 = vmatprep.subr.bf16.mxu1 %v9043_v52  ;;  %v9105_v61 = vcombine.high %v567_v33, %v575_v56  ;;  %v9107_v52 = vcombine.high %v568_v55, %v576_v62  ;;  %v623_v59 = vld [vmem:[#allocation2 + $0x7e0] sm:$0xff]  ;;  %v624_v30 = vld [vmem:[#allocation2 + $0x7e8] sm:$0xff] }
 0x237   :  { %7668 = vmatpush1.bf16.msra.mxu0 %v9040_v6  ;;  %7952 = vmatpush1.bf16.msra.mxu1 %v9042_v9  ;;  %v9104_v6 = vcombine.low %v567_v33, %v575_v56  ;;  %v9106_v9 = vcombine.low %v568_v55, %v576_v62  ;;  %v631_v33 = vld [vmem:[#allocation2 + $0x820] sm:$0xff]  ;;  %v632_v55 = vld [vmem:[#allocation2 + $0x828] sm:$0xff] }
 0x238   :  { %7669 = vmatprep.subr.bf16.mxu0 %v9057_v15  ;;  %7953 = vmatprep.subr.bf16.mxu1 %v9059_v19  ;;  %v9121_v15 = vcombine.high %v583_v5, %v591_v44  ;;  %v9123_v19 = vcombine.high %v584_v63, %v592_v40  ;;  %v639_v56 = vld [vmem:[#allocation2 + $0x860] sm:$0xff]  ;;  %v640_v62 = vld [vmem:[#allocation2 + $0x868] sm:$0xff] }
 0x23b   :  { %7670 = vmatpush1.bf16.msra.mxu0 %v9056_v7  ;;  %7954 = vmatpush1.bf16.msra.mxu1 %v9058_v28  ;;  %v9120_v7 = vcombine.low %v583_v5, %v591_v44  ;;  %v9122_v28 = vcombine.low %v584_v63, %v592_v40  ;;  %v647_v5 = vld [vmem:[#allocation2 + $0x8a0] sm:$0xff]  ;;  %v648_v63 = vld [vmem:[#allocation2 + $0x8a8] sm:$0xff] }
 0x23c   :  { %7671 = vmatprep.subr.bf16.mxu0 %v9073_v22  ;;  %7955 = vmatprep.subr.bf16.mxu1 %v9075_v26  ;;  %v9137_v22 = vcombine.high %v599_v20, %v607_v10  ;;  %v9139_v26 = vcombine.high %v600_v14, %v608_v27  ;;  %v655_v44 = vld [vmem:[#allocation2 + $0x8e0] sm:$0xff]  ;;  %v656_v40 = vld [vmem:[#allocation2 + $0x8e8] sm:$0xff] }
 0x23f   :  { %7672 = vmatpush1.bf16.msra.mxu0 %v9072_v31  ;;  %7956 = vmatpush1.bf16.msra.mxu1 %v9074_v47  ;;  %v9136_v31 = vcombine.low %v599_v20, %v607_v10  ;;  %v9138_v47 = vcombine.low %v600_v14, %v608_v27  ;;  %v663_v20 = vld [vmem:[#allocation2 + $0x920] sm:$0xff]  ;;  %v664_v14 = vld [vmem:[#allocation2 + $0x928] sm:$0xff] }
 0x240   :  { %7673 = vmatprep.subr.bf16.mxu0 %v9089_v43  ;;  %7957 = vmatprep.subr.bf16.mxu1 %v9091_v49  ;;  %v9153_v43 = vcombine.high %v615_v51, %v623_v59  ;;  %v9155_v49 = vcombine.high %v616_v39, %v624_v30  ;;  %v671_v10 = vld [vmem:[#allocation2 + $0x960] sm:$0xff]  ;;  %v672_v27 = vld [vmem:[#allocation2 + $0x968] sm:$0xff] }
 0x243   :  { %7674 = vmatpush1.bf16.msra.mxu0 %v9088_v35  ;;  %7958 = vmatpush1.bf16.msra.mxu1 %v9090_v0  ;;  %v9152_v35 = vcombine.low %v615_v51, %v623_v59  ;;  %v9154_v0 = vcombine.low %v616_v39, %v624_v30  ;;  %v679_v51 = vld [vmem:[#allocation2 + $0x9a0] sm:$0xff]  ;;  %v680_v39 = vld [vmem:[#allocation2 + $0x9a8] sm:$0xff] }
 0x244   :  { %7675 = vmatprep.subr.bf16.mxu0 %v9105_v61  ;;  %7959 = vmatprep.subr.bf16.mxu1 %v9107_v52  ;;  %v9169_v61 = vcombine.high %v631_v33, %v639_v56  ;;  %v9171_v52 = vcombine.high %v632_v55, %v640_v62  ;;  %v687_v59 = vld [vmem:[#allocation2 + $0x9e0] sm:$0xff]  ;;  %v688_v30 = vld [vmem:[#allocation2 + $0x9e8] sm:$0xff] }
 0x247   :  { %7676 = vmatpush1.bf16.msra.mxu0 %v9104_v6  ;;  %7960 = vmatpush1.bf16.msra.mxu1 %v9106_v9  ;;  %v9168_v6 = vcombine.low %v631_v33, %v639_v56  ;;  %v9170_v9 = vcombine.low %v632_v55, %v640_v62  ;;  %v695_v33 = vld [vmem:[#allocation2 + $0xa20] sm:$0xff]  ;;  %v696_v55 = vld [vmem:[#allocation2 + $0xa28] sm:$0xff] }
 0x248   :  { %7677 = vmatprep.subr.bf16.mxu0 %v9121_v15  ;;  %7961 = vmatprep.subr.bf16.mxu1 %v9123_v19  ;;  %v9185_v15 = vcombine.high %v647_v5, %v655_v44  ;;  %v9187_v19 = vcombine.high %v648_v63, %v656_v40  ;;  %v703_v56 = vld [vmem:[#allocation2 + $0xa60] sm:$0xff]  ;;  %v704_v62 = vld [vmem:[#allocation2 + $0xa68] sm:$0xff] }
 0x24b   :  { %7678 = vmatpush1.bf16.msra.mxu0 %v9120_v7  ;;  %7962 = vmatpush1.bf16.msra.mxu1 %v9122_v28  ;;  %v9184_v7 = vcombine.low %v647_v5, %v655_v44  ;;  %v9186_v28 = vcombine.low %v648_v63, %v656_v40  ;;  %v711_v5 = vld [vmem:[#allocation2 + $0xaa0] sm:$0xff]  ;;  %v712_v63 = vld [vmem:[#allocation2 + $0xaa8] sm:$0xff] }
 0x24c   :  { %7679 = vmatprep.subr.bf16.mxu0 %v9137_v22  ;;  %7963 = vmatprep.subr.bf16.mxu1 %v9139_v26  ;;  %v9201_v22 = vcombine.high %v663_v20, %v671_v10  ;;  %v9203_v26 = vcombine.high %v664_v14, %v672_v27  ;;  %v719_v44 = vld [vmem:[#allocation2 + $0xae0] sm:$0xff]  ;;  %v720_v40 = vld [vmem:[#allocation2 + $0xae8] sm:$0xff] }
 0x24f   :  { %7680 = vmatpush1.bf16.msra.mxu0 %v9136_v31  ;;  %7964 = vmatpush1.bf16.msra.mxu1 %v9138_v47  ;;  %v9200_v31 = vcombine.low %v663_v20, %v671_v10  ;;  %v9202_v47 = vcombine.low %v664_v14, %v672_v27  ;;  %v727_v20 = vld [vmem:[#allocation2 + $0xb20] sm:$0xff]  ;;  %v728_v14 = vld [vmem:[#allocation2 + $0xb28] sm:$0xff] }
 0x250   :  { %7681 = vmatprep.subr.bf16.mxu0 %v9153_v43  ;;  %7965 = vmatprep.subr.bf16.mxu1 %v9155_v49  ;;  %v9217_v43 = vcombine.high %v679_v51, %v687_v59  ;;  %v9219_v49 = vcombine.high %v680_v39, %v688_v30  ;;  %v735_v10 = vld [vmem:[#allocation2 + $0xb60] sm:$0xff]  ;;  %v736_v27 = vld [vmem:[#allocation2 + $0xb68] sm:$0xff] }
 0x253   :  { %7682 = vmatpush1.bf16.msra.mxu0 %v9152_v35  ;;  %7966 = vmatpush1.bf16.msra.mxu1 %v9154_v0  ;;  %v9216_v35 = vcombine.low %v679_v51, %v687_v59  ;;  %v9218_v0 = vcombine.low %v680_v39, %v688_v30  ;;  %v743_v51 = vld [vmem:[#allocation2 + $0xba0] sm:$0xff]  ;;  %v744_v39 = vld [vmem:[#allocation2 + $0xba8] sm:$0xff] }
 0x254   :  { %7722 = vmatprep.subr.bf16.mxu0 %v9169_v61  ;;  %8006 = vmatprep.subr.bf16.mxu1 %v9171_v52  ;;  %v9233_v61 = vcombine.high %v695_v33, %v703_v56  ;;  %v9235_v52 = vcombine.high %v696_v55, %v704_v62  ;;  %v751_v59 = vld [vmem:[#allocation2 + $0xbe0] sm:$0xff]  ;;  %v752_v30 = vld [vmem:[#allocation2 + $0xbe8] sm:$0xff] }
 0x256   :  { %7684 = vmatmul.mubr.bf16.vlgmr.msra.gmra.mrb[32].mxu0 %v10457_v58  ;;  %7968 = vmatmul.mubr.bf16.vlgmr.msra.gmra.mrb[32].mxu1 %v10457_v58 }
 0x257   :  { %7723 = vmatpush1.bf16.msra.mxu0 %v9168_v6  ;;  %8007 = vmatpush1.bf16.msra.mxu1 %v9170_v9  ;;  %v9232_v6 = vcombine.low %v695_v33, %v703_v56  ;;  %v9234_v9 = vcombine.low %v696_v55, %v704_v62  ;;  %v759_v33 = vld [vmem:[#allocation2 + $0xc20] sm:$0xff]  ;;  %v760_v55 = vld [vmem:[#allocation2 + $0xc28] sm:$0xff] }
 0x258   :  { %7724 = vmatprep.subr.bf16.mxu0 %v9185_v15  ;;  %8008 = vmatprep.subr.bf16.mxu1 %v9187_v19  ;;  %v9249_v15 = vcombine.high %v711_v5, %v719_v44  ;;  %v9251_v19 = vcombine.high %v712_v63, %v720_v40  ;;  %v767_v56 = vld [vmem:[#allocation2 + $0xc60] sm:$0xff]  ;;  %v768_v62 = vld [vmem:[#allocation2 + $0xc68] sm:$0xff] }
 0x259   :  { %7693 = vmatprep.mubr.bf16.mxu0 %v10467_v12  ;;  %7977 = vmatprep.mubr.bf16.mxu1 %v10467_v12 }
 0x25b   :  { %7725 = vmatpush1.bf16.msra.mxu0 %v9184_v7  ;;  %8009 = vmatpush1.bf16.msra.mxu1 %v9186_v28  ;;  %v9248_v7 = vcombine.low %v711_v5, %v719_v44  ;;  %v9250_v28 = vcombine.low %v712_v63, %v720_v40  ;;  %v775_v5 = vld [vmem:[#allocation2 + $0xca0] sm:$0xff]  ;;  %v776_v63 = vld [vmem:[#allocation2 + $0xca8] sm:$0xff] }
 0x25c   :  { %7726 = vmatprep.subr.bf16.mxu0 %v9201_v22  ;;  %8010 = vmatprep.subr.bf16.mxu1 %v9203_v26  ;;  %v9265_v22 = vcombine.high %v727_v20, %v735_v10  ;;  %v9267_v26 = vcombine.high %v728_v14, %v736_v27  ;;  %v783_v44 = vld [vmem:[#allocation2 + $0xce0] sm:$0xff]  ;;  %v784_v40 = vld [vmem:[#allocation2 + $0xce8] sm:$0xff] }
 0x25e   :  { %7694 = vmatmul.mubr.bf16.gmra.mrb[36].mxu0 %v10482_v36  ;;  %7978 = vmatmul.mubr.bf16.gmra.mrb[36].mxu1 %v10482_v36 }
 0x25f   :  { %7727 = vmatpush1.bf16.msra.mxu0 %v9200_v31  ;;  %8011 = vmatpush1.bf16.msra.mxu1 %v9202_v47  ;;  %v9264_v31 = vcombine.low %v727_v20, %v735_v10  ;;  %v9266_v47 = vcombine.low %v728_v14, %v736_v27  ;;  %v791_v20 = vld [vmem:[#allocation2 + $0xd20] sm:$0xff]  ;;  %v792_v14 = vld [vmem:[#allocation2 + $0xd28] sm:$0xff] }
 0x260   :  { %7728 = vmatprep.subr.bf16.mxu0 %v9217_v43  ;;  %8012 = vmatprep.subr.bf16.mxu1 %v9219_v49  ;;  %v9281_v43 = vcombine.high %v743_v51, %v751_v59  ;;  %v9283_v49 = vcombine.high %v744_v39, %v752_v30  ;;  %v799_v10 = vld [vmem:[#allocation2 + $0xd60] sm:$0xff]  ;;  %v800_v27 = vld [vmem:[#allocation2 + $0xd68] sm:$0xff] }
 0x261   :  { %7703 = vmatprep.mubr.bf16.mxu0 %v10489_v48  ;;  %7987 = vmatprep.mubr.bf16.mxu1 %v10489_v48 }
 0x263   :  { %7729 = vmatpush1.bf16.msra.mxu0 %v9216_v35  ;;  %8013 = vmatpush1.bf16.msra.mxu1 %v9218_v0  ;;  %v9280_v35 = vcombine.low %v743_v51, %v751_v59  ;;  %v9282_v0 = vcombine.low %v744_v39, %v752_v30  ;;  %v807_v51 = vld [vmem:[#allocation2 + $0xda0] sm:$0xff]  ;;  %v808_v39 = vld [vmem:[#allocation2 + $0xda8] sm:$0xff] }
 0x264   :  { %7730 = vmatprep.subr.bf16.mxu0 %v9233_v61  ;;  %8014 = vmatprep.subr.bf16.mxu1 %v9235_v52  ;;  %v9297_v61 = vcombine.high %v759_v33, %v767_v56  ;;  %v9299_v52 = vcombine.high %v760_v55, %v768_v62  ;;  %v815_v59 = vld [vmem:[#allocation2 + $0xde0] sm:$0xff]  ;;  %v816_v30 = vld [vmem:[#allocation2 + $0xde8] sm:$0xff] }
 0x266   :  { %7704 = vmatmul.mubr.bf16.gmra.mrb[40].mxu0 %v10511_v8  ;;  %7988 = vmatmul.mubr.bf16.gmra.mrb[40].mxu1 %v10511_v8 }
 0x267   :  { %7731 = vmatpush1.bf16.msra.mxu0 %v9232_v6  ;;  %8015 = vmatpush1.bf16.msra.mxu1 %v9234_v9  ;;  %v9296_v6 = vcombine.low %v759_v33, %v767_v56  ;;  %v9298_v9 = vcombine.low %v760_v55, %v768_v62  ;;  %v823_v33 = vld [vmem:[#allocation2 + $0xe20] sm:$0xff]  ;;  %v824_v55 = vld [vmem:[#allocation2 + $0xe28] sm:$0xff] }
 0x268   :  { %7732 = vmatprep.subr.bf16.mxu0 %v9249_v15  ;;  %8016 = vmatprep.subr.bf16.mxu1 %v9251_v19  ;;  %v9313_v15 = vcombine.high %v775_v5, %v783_v44  ;;  %v9315_v19 = vcombine.high %v776_v63, %v784_v40  ;;  %v831_v56 = vld [vmem:[#allocation2 + $0xe60] sm:$0xff]  ;;  %v832_v62 = vld [vmem:[#allocation2 + $0xe68] sm:$0xff] }
 0x269   :  { %7713 = vmatprep.mubr.bf16.mxu0 %v10514_v18  ;;  %7997 = vmatprep.mubr.bf16.mxu1 %v10514_v18 }
 0x26b   :  { %7733 = vmatpush1.bf16.msra.mxu0 %v9248_v7  ;;  %8017 = vmatpush1.bf16.msra.mxu1 %v9250_v28  ;;  %v9312_v7 = vcombine.low %v775_v5, %v783_v44  ;;  %v9314_v28 = vcombine.low %v776_v63, %v784_v40  ;;  %v839_v5 = vld [vmem:[#allocation2 + $0xea0] sm:$0xff]  ;;  %v840_v63 = vld [vmem:[#allocation2 + $0xea8] sm:$0xff] }
 0x26c   :  { %7734 = vmatprep.subr.bf16.mxu0 %v9265_v22  ;;  %8018 = vmatprep.subr.bf16.mxu1 %v9267_v26  ;;  %v9329_v22 = vcombine.high %v791_v20, %v799_v10  ;;  %v9331_v26 = vcombine.high %v792_v14, %v800_v27  ;;  %v847_v44 = vld [vmem:[#allocation2 + $0xee0] sm:$0xff]  ;;  %v848_v40 = vld [vmem:[#allocation2 + $0xee8] sm:$0xff] }
 0x26e   :  { %7714 = vmatmul.mubr.bf16.gmra.mrb[44].mxu0 %v10522_v34  ;;  %7998 = vmatmul.mubr.bf16.gmra.mrb[44].mxu1 %v10522_v34 }
 0x26f   :  { %7735 = vmatpush1.bf16.msra.mxu0 %v9264_v31  ;;  %8019 = vmatpush1.bf16.msra.mxu1 %v9266_v47  ;;  %v9328_v31 = vcombine.low %v791_v20, %v799_v10  ;;  %v9330_v47 = vcombine.low %v792_v14, %v800_v27  ;;  %v855_v20 = vld [vmem:[#allocation2 + $0xf20] sm:$0xff]  ;;  %v856_v14 = vld [vmem:[#allocation2 + $0xf28] sm:$0xff] }
 0x270   :  { %7736 = vmatprep.subr.bf16.mxu0 %v9281_v43  ;;  %8020 = vmatprep.subr.bf16.mxu1 %v9283_v49  ;;  %v9345_v43 = vcombine.high %v807_v51, %v815_v59  ;;  %v9347_v49 = vcombine.high %v808_v39, %v816_v30  ;;  %v863_v10 = vld [vmem:[#allocation2 + $0xf60] sm:$0xff]  ;;  %v864_v27 = vld [vmem:[#allocation2 + $0xf68] sm:$0xff] }
 0x271   :  { %7754 = vmatprep.mubr.bf16.mxu0 %v10524_v1  ;;  %8038 = vmatprep.mubr.bf16.mxu1 %v10524_v1 }
 0x273   :  { %7737 = vmatpush1.bf16.msra.mxu0 %v9280_v35  ;;  %8021 = vmatpush1.bf16.msra.mxu1 %v9282_v0  ;;  %v9344_v35 = vcombine.low %v807_v51, %v815_v59  ;;  %v9346_v0 = vcombine.low %v808_v39, %v816_v30  ;;  %v871_v51 = vld [vmem:[#allocation2 + $0xfa0] sm:$0xff]  ;;  %v872_v39 = vld [vmem:[#allocation2 + $0xfa8] sm:$0xff] }
 0x274   :  { %7738 = vmatprep.subr.bf16.mxu0 %v9297_v61  ;;  %8022 = vmatprep.subr.bf16.mxu1 %v9299_v52  ;;  %v9361_v61 = vcombine.high %v823_v33, %v831_v56  ;;  %v9363_v52 = vcombine.high %v824_v55, %v832_v62  ;;  %v879_v59 = vld [vmem:[#allocation2 + $0xfe0] sm:$0xff]  ;;  %v880_v30 = vld [vmem:[#allocation2 + $0xfe8] sm:$0xff] }
 0x277   :  { %7739 = vmatpush1.bf16.msra.mxu0 %v9296_v6  ;;  %8023 = vmatpush1.bf16.msra.mxu1 %v9298_v9  ;;  %v9360_v6 = vcombine.low %v823_v33, %v831_v56  ;;  %v9362_v9 = vcombine.low %v824_v55, %v832_v62  ;;  %v887_v33 = vld [vmem:[#allocation2 + $0x1020] sm:$0xff]  ;;  %v888_v55 = vld [vmem:[#allocation2 + $0x1028] sm:$0xff] }
 0x278   :  { %7740 = vmatprep.subr.bf16.mxu0 %v9313_v15  ;;  %8024 = vmatprep.subr.bf16.mxu1 %v9315_v19  ;;  %v9377_v15 = vcombine.high %v839_v5, %v847_v44  ;;  %v9379_v19 = vcombine.high %v840_v63, %v848_v40  ;;  %v895_v56 = vld [vmem:[#allocation2 + $0x1060] sm:$0xff]  ;;  %v896_v62 = vld [vmem:[#allocation2 + $0x1068] sm:$0xff] }
 0x27b   :  { %7741 = vmatpush1.bf16.msra.mxu0 %v9312_v7  ;;  %8025 = vmatpush1.bf16.msra.mxu1 %v9314_v28  ;;  %v9376_v7 = vcombine.low %v839_v5, %v847_v44  ;;  %v9378_v28 = vcombine.low %v840_v63, %v848_v40  ;;  %v903_v5 = vld [vmem:[#allocation2 + $0x10a0] sm:$0xff]  ;;  %v904_v63 = vld [vmem:[#allocation2 + $0x10a8] sm:$0xff] }
 0x27c   :  { %7742 = vmatprep.subr.bf16.mxu0 %v9329_v22  ;;  %8026 = vmatprep.subr.bf16.mxu1 %v9331_v26  ;;  %v9393_v22 = vcombine.high %v855_v20, %v863_v10  ;;  %v9395_v26 = vcombine.high %v856_v14, %v864_v27  ;;  %v911_v44 = vld [vmem:[#allocation2 + $0x10e0] sm:$0xff]  ;;  %v912_v40 = vld [vmem:[#allocation2 + $0x10e8] sm:$0xff] }
 0x27f   :  { %7743 = vmatpush1.bf16.msra.mxu0 %v9328_v31  ;;  %8027 = vmatpush1.bf16.msra.mxu1 %v9330_v47  ;;  %v9392_v31 = vcombine.low %v855_v20, %v863_v10  ;;  %v9394_v47 = vcombine.low %v856_v14, %v864_v27  ;;  %v919_v20 = vld [vmem:[#allocation2 + $0x1120] sm:$0xff]  ;;  %v920_v14 = vld [vmem:[#allocation2 + $0x1128] sm:$0xff] }
 0x280   :  { %7744 = vmatprep.subr.bf16.mxu0 %v9345_v43  ;;  %8028 = vmatprep.subr.bf16.mxu1 %v9347_v49  ;;  %v9409_v43 = vcombine.high %v871_v51, %v879_v59  ;;  %v9411_v49 = vcombine.high %v872_v39, %v880_v30  ;;  %v927_v10 = vld [vmem:[#allocation2 + $0x1160] sm:$0xff]  ;;  %v928_v27 = vld [vmem:[#allocation2 + $0x1168] sm:$0xff] }
 0x283   :  { %7745 = vmatpush1.bf16.msra.mxu0 %v9344_v35  ;;  %8029 = vmatpush1.bf16.msra.mxu1 %v9346_v0  ;;  %v9408_v35 = vcombine.low %v871_v51, %v879_v59  ;;  %v9410_v0 = vcombine.low %v872_v39, %v880_v30  ;;  %v935_v51 = vld [vmem:[#allocation2 + $0x11a0] sm:$0xff]  ;;  %v936_v39 = vld [vmem:[#allocation2 + $0x11a8] sm:$0xff] }
 0x284   :  { %7746 = vmatprep.subr.bf16.mxu0 %v9361_v61  ;;  %8030 = vmatprep.subr.bf16.mxu1 %v9363_v52  ;;  %v9425_v61 = vcombine.high %v887_v33, %v895_v56  ;;  %v9427_v52 = vcombine.high %v888_v55, %v896_v62  ;;  %v943_v59 = vld [vmem:[#allocation2 + $0x11e0] sm:$0xff]  ;;  %v944_v30 = vld [vmem:[#allocation2 + $0x11e8] sm:$0xff] }
 0x287   :  { %7747 = vmatpush1.bf16.msra.mxu0 %v9360_v6  ;;  %8031 = vmatpush1.bf16.msra.mxu1 %v9362_v9  ;;  %v9424_v6 = vcombine.low %v887_v33, %v895_v56  ;;  %v9426_v9 = vcombine.low %v888_v55, %v896_v62  ;;  %v951_v33 = vld [vmem:[#allocation2 + $0x1220] sm:$0xff]  ;;  %v952_v55 = vld [vmem:[#allocation2 + $0x1228] sm:$0xff] }
 0x288   :  { %7748 = vmatprep.subr.bf16.mxu0 %v9377_v15  ;;  %8032 = vmatprep.subr.bf16.mxu1 %v9379_v19  ;;  %v9441_v15 = vcombine.high %v903_v5, %v911_v44  ;;  %v9443_v19 = vcombine.high %v904_v63, %v912_v40  ;;  %v959_v56 = vld [vmem:[#allocation2 + $0x1260] sm:$0xff]  ;;  %v960_v62 = vld [vmem:[#allocation2 + $0x1268] sm:$0xff] }
 0x28b   :  { %7749 = vmatpush1.bf16.msra.mxu0 %v9376_v7  ;;  %8033 = vmatpush1.bf16.msra.mxu1 %v9378_v28  ;;  %v9440_v7 = vcombine.low %v903_v5, %v911_v44  ;;  %v9442_v28 = vcombine.low %v904_v63, %v912_v40  ;;  %v967_v5 = vld [vmem:[#allocation2 + $0x12a0] sm:$0xff]  ;;  %v968_v63 = vld [vmem:[#allocation2 + $0x12a8] sm:$0xff] }
 0x28c   :  { %7750 = vmatprep.subr.bf16.mxu0 %v9393_v22  ;;  %8034 = vmatprep.subr.bf16.mxu1 %v9395_v26  ;;  %v9457_v22 = vcombine.high %v919_v20, %v927_v10  ;;  %v9459_v26 = vcombine.high %v920_v14, %v928_v27  ;;  %v975_v44 = vld [vmem:[#allocation2 + $0x12e0] sm:$0xff]  ;;  %v976_v40 = vld [vmem:[#allocation2 + $0x12e8] sm:$0xff] }
 0x28f   :  { %7751 = vmatpush1.bf16.msra.mxu0 %v9392_v31  ;;  %8035 = vmatpush1.bf16.msra.mxu1 %v9394_v47  ;;  %v9456_v31 = vcombine.low %v919_v20, %v927_v10  ;;  %v9458_v47 = vcombine.low %v920_v14, %v928_v27  ;;  %v983_v20 = vld [vmem:[#allocation2 + $0x1320] sm:$0xff]  ;;  %v984_v14 = vld [vmem:[#allocation2 + $0x1328] sm:$0xff] }
 0x290   :  { %7752 = vmatprep.subr.bf16.mxu0 %v9409_v43  ;;  %8036 = vmatprep.subr.bf16.mxu1 %v9411_v49  ;;  %v9473_v43 = vcombine.high %v935_v51, %v943_v59  ;;  %v9475_v49 = vcombine.high %v936_v39, %v944_v30  ;;  %v991_v10 = vld [vmem:[#allocation2 + $0x1360] sm:$0xff]  ;;  %v992_v27 = vld [vmem:[#allocation2 + $0x1368] sm:$0xff] }
 0x293   :  { %7753 = vmatpush1.bf16.msra.mxu0 %v9408_v35  ;;  %8037 = vmatpush1.bf16.msra.mxu1 %v9410_v0  ;;  %v9472_v35 = vcombine.low %v935_v51, %v943_v59  ;;  %v9474_v0 = vcombine.low %v936_v39, %v944_v30  ;;  %v999_v51 = vld [vmem:[#allocation2 + $0x13a0] sm:$0xff]  ;;  %v1000_v39 = vld [vmem:[#allocation2 + $0x13a8] sm:$0xff] }
 0x294   :  { %7793 = vmatprep.subr.bf16.mxu0 %v9425_v61  ;;  %8077 = vmatprep.subr.bf16.mxu1 %v9427_v52  ;;  %v9489_v61 = vcombine.high %v951_v33, %v959_v56  ;;  %v9491_v52 = vcombine.high %v952_v55, %v960_v62  ;;  %v1007_v59 = vld [vmem:[#allocation2 + $0x13e0] sm:$0xff]  ;;  %v1008_v30 = vld [vmem:[#allocation2 + $0x13e8] sm:$0xff] }
 0x296   :  { %7755 = vmatmul.mubr.bf16.vlgmr.msra.gmra.mrb[32].mxu0 %v10573_v41  ;;  %8039 = vmatmul.mubr.bf16.vlgmr.msra.gmra.mrb[32].mxu1 %v10573_v41 }
 0x297   :  { %7794 = vmatpush1.bf16.msra.mxu0 %v9424_v6  ;;  %8078 = vmatpush1.bf16.msra.mxu1 %v9426_v9  ;;  %v9488_v6 = vcombine.low %v951_v33, %v959_v56  ;;  %v9490_v9 = vcombine.low %v952_v55, %v960_v62  ;;  %v1015_v33 = vld [vmem:[#allocation2 + $0x1420] sm:$0xff]  ;;  %v1016_v55 = vld [vmem:[#allocation2 + $0x1428] sm:$0xff] }
 0x298   :  { %7795 = vmatprep.subr.bf16.mxu0 %v9441_v15  ;;  %8079 = vmatprep.subr.bf16.mxu1 %v9443_v19  ;;  %v9505_v15 = vcombine.high %v967_v5, %v975_v44  ;;  %v9507_v19 = vcombine.high %v968_v63, %v976_v40  ;;  %v1023_v56 = vld [vmem:[#allocation2 + $0x1460] sm:$0xff]  ;;  %v1024_v62 = vld [vmem:[#allocation2 + $0x1468] sm:$0xff] }
 0x299   :  { %7764 = vmatprep.mubr.bf16.mxu0 %v10583_v57  ;;  %8048 = vmatprep.mubr.bf16.mxu1 %v10583_v57 }
 0x29b   :  { %7796 = vmatpush1.bf16.msra.mxu0 %v9440_v7  ;;  %8080 = vmatpush1.bf16.msra.mxu1 %v9442_v28  ;;  %v9504_v7 = vcombine.low %v967_v5, %v975_v44  ;;  %v9506_v28 = vcombine.low %v968_v63, %v976_v40  ;;  %v1031_v5 = vld [vmem:[#allocation2 + $0x14a0] sm:$0xff]  ;;  %v1032_v63 = vld [vmem:[#allocation2 + $0x14a8] sm:$0xff] }
 0x29c   :  { %7797 = vmatprep.subr.bf16.mxu0 %v9457_v22  ;;  %8081 = vmatprep.subr.bf16.mxu1 %v9459_v26  ;;  %v9521_v22 = vcombine.high %v983_v20, %v991_v10  ;;  %v9523_v26 = vcombine.high %v984_v14, %v992_v27  ;;  %v1039_v44 = vld [vmem:[#allocation2 + $0x14e0] sm:$0xff]  ;;  %v1040_v40 = vld [vmem:[#allocation2 + $0x14e8] sm:$0xff] }
 0x29e   :  { %7765 = vmatmul.mubr.bf16.gmra.mrb[36].mxu0 %v10598_v23  ;;  %8049 = vmatmul.mubr.bf16.gmra.mrb[36].mxu1 %v10598_v23 }
 0x29f   :  { %7798 = vmatpush1.bf16.msra.mxu0 %v9456_v31  ;;  %8082 = vmatpush1.bf16.msra.mxu1 %v9458_v47  ;;  %v9520_v31 = vcombine.low %v983_v20, %v991_v10  ;;  %v9522_v47 = vcombine.low %v984_v14, %v992_v27  ;;  %v1047_v20 = vld [vmem:[#allocation2 + $0x1520] sm:$0xff]  ;;  %v1048_v14 = vld [vmem:[#allocation2 + $0x1528] sm:$0xff] }
 0x2a0   :  { %7799 = vmatprep.subr.bf16.mxu0 %v9473_v43  ;;  %8083 = vmatprep.subr.bf16.mxu1 %v9475_v49  ;;  %v9537_v43 = vcombine.high %v999_v51, %v1007_v59  ;;  %v9539_v49 = vcombine.high %v1000_v39, %v1008_v30  ;;  %v1055_v10 = vld [vmem:[#allocation2 + $0x1560] sm:$0xff]  ;;  %v1056_v27 = vld [vmem:[#allocation2 + $0x1568] sm:$0xff] }
 0x2a1   :  { %7774 = vmatprep.mubr.bf16.mxu0 %v10605_v38  ;;  %8058 = vmatprep.mubr.bf16.mxu1 %v10605_v38 }
 0x2a3   :  { %7800 = vmatpush1.bf16.msra.mxu0 %v9472_v35  ;;  %8084 = vmatpush1.bf16.msra.mxu1 %v9474_v0  ;;  %v9536_v35 = vcombine.low %v999_v51, %v1007_v59  ;;  %v9538_v0 = vcombine.low %v1000_v39, %v1008_v30  ;;  %v1063_v51 = vld [vmem:[#allocation2 + $0x15a0] sm:$0xff]  ;;  %v1064_v39 = vld [vmem:[#allocation2 + $0x15a8] sm:$0xff] }
 0x2a4   :  { %7801 = vmatprep.subr.bf16.mxu0 %v9489_v61  ;;  %8085 = vmatprep.subr.bf16.mxu1 %v9491_v52  ;;  %v9553_v61 = vcombine.high %v1015_v33, %v1023_v56  ;;  %v9555_v52 = vcombine.high %v1016_v55, %v1024_v62  ;;  %v1071_v59 = vld [vmem:[#allocation2 + $0x15e0] sm:$0xff]  ;;  %v1072_v30 = vld [vmem:[#allocation2 + $0x15e8] sm:$0xff] }
 0x2a6   :  { %7775 = vmatmul.mubr.bf16.gmra.mrb[40].mxu0 %v10632_v60  ;;  %8059 = vmatmul.mubr.bf16.gmra.mrb[40].mxu1 %v10632_v60 }
 0x2a7   :  { %7802 = vmatpush1.bf16.msra.mxu0 %v9488_v6  ;;  %8086 = vmatpush1.bf16.msra.mxu1 %v9490_v9  ;;  %v9552_v6 = vcombine.low %v1015_v33, %v1023_v56  ;;  %v9554_v9 = vcombine.low %v1016_v55, %v1024_v62  ;;  %v1079_v33 = vld [vmem:[#allocation2 + $0x1620] sm:$0xff]  ;;  %v1080_v55 = vld [vmem:[#allocation2 + $0x1628] sm:$0xff] }
 0x2a8   :  { %7803 = vmatprep.subr.bf16.mxu0 %v9505_v15  ;;  %8087 = vmatprep.subr.bf16.mxu1 %v9507_v19  ;;  %v9569_v15 = vcombine.high %v1031_v5, %v1039_v44  ;;  %v9571_v19 = vcombine.high %v1032_v63, %v1040_v40  ;;  %v1087_v56 = vld [vmem:[#allocation2 + $0x1660] sm:$0xff]  ;;  %v1088_v62 = vld [vmem:[#allocation2 + $0x1668] sm:$0xff] }
 0x2a9   :  { %7784 = vmatprep.mubr.bf16.mxu0 %v10635_v11  ;;  %8068 = vmatprep.mubr.bf16.mxu1 %v10635_v11 }
 0x2ab   :  { %7804 = vmatpush1.bf16.msra.mxu0 %v9504_v7  ;;  %8088 = vmatpush1.bf16.msra.mxu1 %v9506_v28  ;;  %v9568_v7 = vcombine.low %v1031_v5, %v1039_v44  ;;  %v9570_v28 = vcombine.low %v1032_v63, %v1040_v40  ;;  %v1095_v5 = vld [vmem:[#allocation2 + $0x16a0] sm:$0xff]  ;;  %v1096_v63 = vld [vmem:[#allocation2 + $0x16a8] sm:$0xff] }
 0x2ac   :  { %7805 = vmatprep.subr.bf16.mxu0 %v9521_v22  ;;  %8089 = vmatprep.subr.bf16.mxu1 %v9523_v26  ;;  %v9585_v22 = vcombine.high %v1047_v20, %v1055_v10  ;;  %v9587_v26 = vcombine.high %v1048_v14, %v1056_v27  ;;  %v1103_v44 = vld [vmem:[#allocation2 + $0x16e0] sm:$0xff]  ;;  %v1104_v40 = vld [vmem:[#allocation2 + $0x16e8] sm:$0xff] }
 0x2ae   :  { %7785 = vmatmul.mubr.bf16.gmra.mrb[44].mxu0 %v10643_v50  ;;  %8069 = vmatmul.mubr.bf16.gmra.mrb[44].mxu1 %v10643_v50 }
 0x2af   :  { %7806 = vmatpush1.bf16.msra.mxu0 %v9520_v31  ;;  %8090 = vmatpush1.bf16.msra.mxu1 %v9522_v47  ;;  %v9584_v31 = vcombine.low %v1047_v20, %v1055_v10  ;;  %v9586_v47 = vcombine.low %v1048_v14, %v1056_v27  ;;  %v1111_v20 = vld [vmem:[#allocation2 + $0x1720] sm:$0xff]  ;;  %v1112_v14 = vld [vmem:[#allocation2 + $0x1728] sm:$0xff] }
 0x2b0   :  { %7807 = vmatprep.subr.bf16.mxu0 %v9537_v43  ;;  %8091 = vmatprep.subr.bf16.mxu1 %v9539_v49  ;;  %v9601_v43 = vcombine.high %v1063_v51, %v1071_v59  ;;  %v9603_v49 = vcombine.high %v1064_v39, %v1072_v30  ;;  %v1119_v10 = vld [vmem:[#allocation2 + $0x1760] sm:$0xff]  ;;  %v1120_v27 = vld [vmem:[#allocation2 + $0x1768] sm:$0xff] }
 0x2b1   :  { %7825 = vmatprep.mubr.bf16.mxu0 %v10645_v42  ;;  %8109 = vmatprep.mubr.bf16.mxu1 %v10645_v42 }
 0x2b3   :  { %7808 = vmatpush1.bf16.msra.mxu0 %v9536_v35  ;;  %8092 = vmatpush1.bf16.msra.mxu1 %v9538_v0  ;;  %v9600_v35 = vcombine.low %v1063_v51, %v1071_v59  ;;  %v9602_v0 = vcombine.low %v1064_v39, %v1072_v30  ;;  %v1127_v51 = vld [vmem:[#allocation2 + $0x17a0] sm:$0xff]  ;;  %v1128_v39 = vld [vmem:[#allocation2 + $0x17a8] sm:$0xff] }
 0x2b4   :  { %7809 = vmatprep.subr.bf16.mxu0 %v9553_v61  ;;  %8093 = vmatprep.subr.bf16.mxu1 %v9555_v52  ;;  %v9617_v61 = vcombine.high %v1079_v33, %v1087_v56  ;;  %v9619_v52 = vcombine.high %v1080_v55, %v1088_v62  ;;  %v1135_v59 = vld [vmem:[#allocation2 + $0x17e0] sm:$0xff]  ;;  %v1136_v30 = vld [vmem:[#allocation2 + $0x17e8] sm:$0xff] }
 0x2b7   :  { %7810 = vmatpush1.bf16.msra.mxu0 %v9552_v6  ;;  %8094 = vmatpush1.bf16.msra.mxu1 %v9554_v9  ;;  %v9616_v6 = vcombine.low %v1079_v33, %v1087_v56  ;;  %v9618_v9 = vcombine.low %v1080_v55, %v1088_v62  ;;  %v1143_v33 = vld [vmem:[#allocation2 + $0x1820] sm:$0xff]  ;;  %v1144_v55 = vld [vmem:[#allocation2 + $0x1828] sm:$0xff] }
 0x2b8   :  { %7811 = vmatprep.subr.bf16.mxu0 %v9569_v15  ;;  %8095 = vmatprep.subr.bf16.mxu1 %v9571_v19  ;;  %v9633_v15 = vcombine.high %v1095_v5, %v1103_v44  ;;  %v9635_v19 = vcombine.high %v1096_v63, %v1104_v40  ;;  %v1151_v56 = vld [vmem:[#allocation2 + $0x1860] sm:$0xff]  ;;  %v1152_v62 = vld [vmem:[#allocation2 + $0x1868] sm:$0xff] }
 0x2bb   :  { %7812 = vmatpush1.bf16.msra.mxu0 %v9568_v7  ;;  %8096 = vmatpush1.bf16.msra.mxu1 %v9570_v28  ;;  %v9632_v7 = vcombine.low %v1095_v5, %v1103_v44  ;;  %v9634_v28 = vcombine.low %v1096_v63, %v1104_v40  ;;  %v1159_v5 = vld [vmem:[#allocation2 + $0x18a0] sm:$0xff]  ;;  %v1160_v63 = vld [vmem:[#allocation2 + $0x18a8] sm:$0xff] }
 0x2bc   :  { %7813 = vmatprep.subr.bf16.mxu0 %v9585_v22  ;;  %8097 = vmatprep.subr.bf16.mxu1 %v9587_v26  ;;  %v9649_v22 = vcombine.high %v1111_v20, %v1119_v10  ;;  %v9651_v26 = vcombine.high %v1112_v14, %v1120_v27  ;;  %v1167_v44 = vld [vmem:[#allocation2 + $0x18e0] sm:$0xff]  ;;  %v1168_v40 = vld [vmem:[#allocation2 + $0x18e8] sm:$0xff] }
 0x2bf   :  { %7814 = vmatpush1.bf16.msra.mxu0 %v9584_v31  ;;  %8098 = vmatpush1.bf16.msra.mxu1 %v9586_v47  ;;  %v9648_v31 = vcombine.low %v1111_v20, %v1119_v10  ;;  %v9650_v47 = vcombine.low %v1112_v14, %v1120_v27  ;;  %v1175_v20 = vld [vmem:[#allocation2 + $0x1920] sm:$0xff]  ;;  %v1176_v14 = vld [vmem:[#allocation2 + $0x1928] sm:$0xff] }
 0x2c0   :  { %7815 = vmatprep.subr.bf16.mxu0 %v9601_v43  ;;  %8099 = vmatprep.subr.bf16.mxu1 %v9603_v49  ;;  %v9665_v43 = vcombine.high %v1127_v51, %v1135_v59  ;;  %v9667_v49 = vcombine.high %v1128_v39, %v1136_v30  ;;  %v1183_v10 = vld [vmem:[#allocation2 + $0x1960] sm:$0xff]  ;;  %v1184_v27 = vld [vmem:[#allocation2 + $0x1968] sm:$0xff] }
 0x2c3   :  { %7816 = vmatpush1.bf16.msra.mxu0 %v9600_v35  ;;  %8100 = vmatpush1.bf16.msra.mxu1 %v9602_v0  ;;  %v9664_v35 = vcombine.low %v1127_v51, %v1135_v59  ;;  %v9666_v0 = vcombine.low %v1128_v39, %v1136_v30  ;;  %v1191_v51 = vld [vmem:[#allocation2 + $0x19a0] sm:$0xff]  ;;  %v1192_v39 = vld [vmem:[#allocation2 + $0x19a8] sm:$0xff] }
 0x2c4   :  { %7817 = vmatprep.subr.bf16.mxu0 %v9617_v61  ;;  %8101 = vmatprep.subr.bf16.mxu1 %v9619_v52  ;;  %v9681_v61 = vcombine.high %v1143_v33, %v1151_v56  ;;  %v9683_v52 = vcombine.high %v1144_v55, %v1152_v62  ;;  %v1199_v59 = vld [vmem:[#allocation2 + $0x19e0] sm:$0xff]  ;;  %v1200_v30 = vld [vmem:[#allocation2 + $0x19e8] sm:$0xff] }
 0x2c7   :  { %7818 = vmatpush1.bf16.msra.mxu0 %v9616_v6  ;;  %8102 = vmatpush1.bf16.msra.mxu1 %v9618_v9  ;;  %v9680_v6 = vcombine.low %v1143_v33, %v1151_v56  ;;  %v9682_v9 = vcombine.low %v1144_v55, %v1152_v62  ;;  %v1207_v33 = vld [vmem:[#allocation2 + $0x1a20] sm:$0xff]  ;;  %v1208_v55 = vld [vmem:[#allocation2 + $0x1a28] sm:$0xff] }
 0x2c8   :  { %7819 = vmatprep.subr.bf16.mxu0 %v9633_v15  ;;  %8103 = vmatprep.subr.bf16.mxu1 %v9635_v19  ;;  %v9697_v15 = vcombine.high %v1159_v5, %v1167_v44  ;;  %v9699_v19 = vcombine.high %v1160_v63, %v1168_v40  ;;  %v1215_v56 = vld [vmem:[#allocation2 + $0x1a60] sm:$0xff]  ;;  %v1216_v62 = vld [vmem:[#allocation2 + $0x1a68] sm:$0xff] }
 0x2cb   :  { %7820 = vmatpush1.bf16.msra.mxu0 %v9632_v7  ;;  %8104 = vmatpush1.bf16.msra.mxu1 %v9634_v28  ;;  %v9696_v7 = vcombine.low %v1159_v5, %v1167_v44  ;;  %v9698_v28 = vcombine.low %v1160_v63, %v1168_v40  ;;  %v1223_v5 = vld [vmem:[#allocation2 + $0x1aa0] sm:$0xff]  ;;  %v1224_v63 = vld [vmem:[#allocation2 + $0x1aa8] sm:$0xff] }
 0x2cc   :  { %7821 = vmatprep.subr.bf16.mxu0 %v9649_v22  ;;  %8105 = vmatprep.subr.bf16.mxu1 %v9651_v26  ;;  %v9713_v22 = vcombine.high %v1175_v20, %v1183_v10  ;;  %v9715_v26 = vcombine.high %v1176_v14, %v1184_v27  ;;  %v1231_v44 = vld [vmem:[#allocation2 + $0x1ae0] sm:$0xff]  ;;  %v1232_v40 = vld [vmem:[#allocation2 + $0x1ae8] sm:$0xff] }
 0x2cf   :  { %7822 = vmatpush1.bf16.msra.mxu0 %v9648_v31  ;;  %8106 = vmatpush1.bf16.msra.mxu1 %v9650_v47  ;;  %v9712_v31 = vcombine.low %v1175_v20, %v1183_v10  ;;  %v9714_v47 = vcombine.low %v1176_v14, %v1184_v27  ;;  %v1239_v20 = vld [vmem:[#allocation2 + $0x1b20] sm:$0xff]  ;;  %v1240_v14 = vld [vmem:[#allocation2 + $0x1b28] sm:$0xff] }
 0x2d0   :  { %7823 = vmatprep.subr.bf16.mxu0 %v9665_v43  ;;  %8107 = vmatprep.subr.bf16.mxu1 %v9667_v49  ;;  %v9729_v43 = vcombine.high %v1191_v51, %v1199_v59  ;;  %v9731_v49 = vcombine.high %v1192_v39, %v1200_v30  ;;  %v1247_v10 = vld [vmem:[#allocation2 + $0x1b60] sm:$0xff]  ;;  %v1248_v27 = vld [vmem:[#allocation2 + $0x1b68] sm:$0xff] }
 0x2d3   :  { %7824 = vmatpush1.bf16.msra.mxu0 %v9664_v35  ;;  %8108 = vmatpush1.bf16.msra.mxu1 %v9666_v0  ;;  %v9728_v35 = vcombine.low %v1191_v51, %v1199_v59  ;;  %v9730_v0 = vcombine.low %v1192_v39, %v1200_v30  ;;  %v9779_v51 = vcombine.high %v1240_v14, %v1248_v27  ;;  %v1255_v59 = vld [vmem:[#allocation2 + $0x1ba0] sm:$0xff] }
 0x2d4   :  { %7864 = vmatprep.subr.bf16.mxu0 %v9681_v61  ;;  %8148 = vmatprep.subr.bf16.mxu1 %v9683_v52  ;;  %v9745_v61 = vcombine.high %v1207_v33, %v1215_v56  ;;  %v9747_v52 = vcombine.high %v1208_v55, %v1216_v62  ;;  %v1263_v39 = vld [vmem:[#allocation2 + $0x1be0] sm:$0xff] }
 0x2d6   :  { %7826 = vmatmul.mubr.bf16.vlgmr.msra.gmra.mrb[32].mxu0 %v10699_v4  ;;  %8110 = vmatmul.mubr.bf16.vlgmr.msra.gmra.mrb[32].mxu1 %v10699_v4 }
 0x2d7   :  { %7865 = vmatpush1.bf16.msra.mxu0 %v9680_v6  ;;  %8149 = vmatpush1.bf16.msra.mxu1 %v9682_v9  ;;  %v9744_v6 = vcombine.low %v1207_v33, %v1215_v56  ;;  %v9746_v9 = vcombine.low %v1208_v55, %v1216_v62  ;;  %v9776_v56 = vcombine.low %v1239_v20, %v1247_v10 }
 0x2d8   :  { %7866 = vmatprep.subr.bf16.mxu0 %v9697_v15  ;;  %8150 = vmatprep.subr.bf16.mxu1 %v9699_v19  ;;  %v9761_v15 = vcombine.high %v1223_v5, %v1231_v44  ;;  %v9763_v19 = vcombine.high %v1224_v63, %v1232_v40 }
 0x2d9   :  { %7835 = vmatprep.mubr.bf16.mxu0 %v10709_v24  ;;  %8119 = vmatprep.mubr.bf16.mxu1 %v10709_v24 }
 0x2db   :  { %7867 = vmatpush1.bf16.msra.mxu0 %v9696_v7  ;;  %8151 = vmatpush1.bf16.msra.mxu1 %v9698_v28  ;;  %v9760_v7 = vcombine.low %v1223_v5, %v1231_v44  ;;  %v9762_v28 = vcombine.low %v1224_v63, %v1232_v40  ;;  %v1271_v5 = vld [vmem:[#allocation2 + $0x1c20] sm:$0xff]  ;;  %v1272_v63 = vld [vmem:[#allocation2 + $0x1c28] sm:$0xff] }
 0x2dc   :  { %7868 = vmatprep.subr.bf16.mxu0 %v9713_v22  ;;  %8152 = vmatprep.subr.bf16.mxu1 %v9715_v26  ;;  %v9777_v22 = vcombine.high %v1239_v20, %v1247_v10  ;;  %v1279_v44 = vld [vmem:[#allocation2 + $0x1c60] sm:$0xff]  ;;  %v1280_v40 = vld [vmem:[#allocation2 + $0x1c68] sm:$0xff] }
 0x2dd   :  { %v9811_v20 = vcombine.high %v1272_v63, %v1280_v40  ;;  %v1287_v10 = vld [vmem:[#allocation2 + $0x1ca0] sm:$0xff] }
 0x2de   :  { %7836 = vmatmul.mubr.bf16.gmra.mrb[36].mxu0 %v10724_v54  ;;  %8120 = vmatmul.mubr.bf16.gmra.mrb[36].mxu1 %v10724_v54 }
 0x2df   :  { %7869 = vmatpush1.bf16.msra.mxu0 %v9712_v31  ;;  %8153 = vmatpush1.bf16.msra.mxu1 %v9714_v47  ;;  %v1256_v47 = vld [vmem:[#allocation2 + $0x1ba8] sm:$0xff] }
 0x2e0   :  { %7870 = vmatprep.subr.bf16.mxu0 %v9729_v43  ;;  %8154 = vmatprep.subr.bf16.mxu1 %v9731_v49  ;;  %v1264_v43 = vld [vmem:[#allocation2 + $0x1be8] sm:$0xff] }
 0x2e1   :  { %7845 = vmatprep.mubr.bf16.mxu0 %v10731_v16  ;;  %8129 = vmatprep.mubr.bf16.mxu1 %v10731_v16 }
 0x2e3   :  { %7871 = vmatpush1.bf16.msra.mxu0 %v9728_v35  ;;  %8155 = vmatpush1.bf16.msra.mxu1 %v9730_v0  ;;  %v9778_v35 = vcombine.low %v1240_v14, %v1248_v27  ;;  %v9793_v0 = vcombine.high %v1255_v59, %v1263_v39  ;;  %v1295_v14 = vld [vmem:[#allocation2 + $0x1ce0] sm:$0xff] }
 0x2e4   :  { %7872 = vmatprep.subr.bf16.mxu0 %v9745_v61  ;;  %8156 = vmatprep.subr.bf16.mxu1 %v9747_v52  ;;  %v9795_v52 = vcombine.high %v1256_v47, %v1264_v43 }
 0x2e6   :  { %7846 = vmatmul.mubr.bf16.gmra.mrb[40].mxu0 %v10753_v46  ;;  %8130 = vmatmul.mubr.bf16.gmra.mrb[40].mxu1 %v10753_v46 }
 0x2e7   :  { %7873 = vmatpush1.bf16.msra.mxu0 %v9744_v6  ;;  %8157 = vmatpush1.bf16.msra.mxu1 %v9746_v9  ;;  %v9792_v6 = vcombine.low %v1255_v59, %v1263_v39  ;;  %v9794_v9 = vcombine.low %v1256_v47, %v1264_v43  ;;  %v9808_v59 = vcombine.low %v1271_v5, %v1279_v44 }
 0x2e8   :  { %7874 = vmatprep.subr.bf16.mxu0 %v9761_v15  ;;  %8158 = vmatprep.subr.bf16.mxu1 %v9763_v19  ;;  %v9809_v15 = vcombine.high %v1271_v5, %v1279_v44  ;;  %v9825_v47 = vcombine.high %v1287_v10, %v1295_v14  ;;  %v1319_v44 = vld [vmem:[#allocation2 + $0x1da0] sm:$0xff] }
 0x2e9   :  { %v7330_v26 = vpop.f32.mrb[16].mxu0  ;;  %7855 = vmatprep.mubr.bf16.mxu0 %v10756_v53  ;;  %v7614_v30 = vpop.f32.mrb[16].mxu1  ;;  %8139 = vmatprep.mubr.bf16.mxu1 %v10756_v53 }
 0x2ea   :  { %8791 = vst [vmem:[%s11399_s4 + $0x20] sm:$0xff] %v7330_v26  ;;  %v7332_v31 = vpop.f32.mrb[17].mxu0  ;;  %8793 = vst [vmem:[%s11399_s4 + $0x30] sm:$0xff] %v7614_v30  ;;  %v7616_v49 = vpop.f32.mrb[17].mxu1 }
 0x2eb   :  { %8792 = vst [vmem:[%s11399_s4 + $0x28] sm:$0xff] %v7332_v31  ;;  %v7334_v33 = vpop.f32.mrb[18].mxu0  ;;  %7875 = vmatpush1.bf16.msra.mxu0 %v9760_v7  ;;  %8794 = vst [vmem:[%s11399_s4 + $0x38] sm:$0xff] %v7616_v49  ;;  %v7618_v55 = vpop.f32.mrb[18].mxu1  ;;  %8159 = vmatpush1.bf16.msra.mxu1 %v9762_v28  ;;  %v1288_v28 = vld [vmem:[#allocation2 + $0x1ca8] sm:$0xff]  ;;  %v9810_v31 = vcombine.low %v1272_v63, %v1280_v40  ;;  %v1327_v63 = vld [vmem:[#allocation2 + $0x1de0] sm:$0xff] }
 0x2ec   :  { %8807 = vst [vmem:[%s11399_s4 + $0xa0] sm:$0xff] %v7334_v33  ;;  %v7336_v62 = vpop.f32.mrb[19].mxu0  ;;  %7876 = vmatprep.subr.bf16.mxu0 %v9777_v22  ;;  %8809 = vst [vmem:[%s11399_s4 + $0xb0] sm:$0xff] %v7618_v55  ;;  %v7620_v61 = vpop.f32.mrb[19].mxu1  ;;  %8160 = vmatprep.subr.bf16.mxu1 %v9779_v51  ;;  %v1296_v22 = vld [vmem:[#allocation2 + $0x1ce8] sm:$0xff]  ;;  %v1303_v33 = vld [vmem:[#allocation2 + $0x1d20] sm:$0xff] }
 0x2ed   :  { %8808 = vst [vmem:[%s11399_s4 + $0xa8] sm:$0xff] %v7336_v62  ;;  %8810 = vst [vmem:[%s11399_s4 + $0xb8] sm:$0xff] %v7620_v61  ;;  %v9827_v49 = vcombine.high %v1288_v28, %v1296_v22  ;;  %v1304_v55 = vld [vmem:[#allocation2 + $0x1d28] sm:$0xff] }
 0x2ee   :  { %7856 = vmatmul.mubr.bf16.gmra.mrb[44].mxu0 %v10764_v21  ;;  %8140 = vmatmul.mubr.bf16.gmra.mrb[44].mxu1 %v10764_v21  ;;  %v1312_v62 = vld [vmem:[#allocation2 + $0x1d68] sm:$0xff] }
 0x2ef   :  { %7877 = vmatpush1.bf16.msra.mxu0 %v9776_v56  ;;  %8161 = vmatpush1.bf16.msra.mxu1 %v9778_v35  ;;  %v1311_v56 = vld [vmem:[#allocation2 + $0x1d60] sm:$0xff]  ;;  %v9824_v35 = vcombine.low %v1287_v10, %v1295_v14  ;;  %v9843_v5 = vcombine.high %v1304_v55, %v1312_v62 }
 0x2f0   :  { %7878 = vmatprep.subr.bf16.mxu0 %v9793_v0  ;;  %8162 = vmatprep.subr.bf16.mxu1 %v9795_v52  ;;  %v9826_v0 = vcombine.low %v1288_v28, %v1296_v22  ;;  %v9841_v61 = vcombine.high %v1303_v33, %v1311_v56  ;;  %v9840_v10 = vcombine.low %v1303_v33, %v1311_v56  ;;  %v1351_v56 = vld [vmem:[#allocation2 + $0x1ea0] sm:$0xff] }
 0x2f1   :  { %v7340_v19 = vpop.f32.mrb[20].mxu0  ;;  %7896 = vmatprep.mubr.bf16.mxu0 %v10766_v29  ;;  %v7624_v27 = vpop.f32.mrb[20].mxu1  ;;  %8180 = vmatprep.mubr.bf16.mxu1 %v10766_v29  ;;  %v9857_v28 = vcombine.high %v1319_v44, %v1327_v63 }
 0x2f2   :  { %8823 = vst [vmem:[%s11399_s4 + $0x120] sm:$0xff] %v7340_v19  ;;  %v7342_v7 = vpop.f32.mrb[21].mxu0  ;;  %8825 = vst [vmem:[%s11399_s4 + $0x130] sm:$0xff] %v7624_v27  ;;  %v7626_v26 = vpop.f32.mrb[21].mxu1 }
 0x2f3   :  { %8824 = vst [vmem:[%s11399_s4 + $0x128] sm:$0xff] %v7342_v7  ;;  %v7344_v51 = vpop.f32.mrb[22].mxu0  ;;  %7879 = vmatpush1.bf16.msra.mxu0 %v9792_v6  ;;  %8826 = vst [vmem:[%s11399_s4 + $0x138] sm:$0xff] %v7626_v26  ;;  %v7628_v39 = vpop.f32.mrb[22].mxu1  ;;  %8163 = vmatpush1.bf16.msra.mxu1 %v9794_v9  ;;  %v1320_v9 = vld [vmem:[#allocation2 + $0x1da8] sm:$0xff]  ;;  %v9842_v7 = vcombine.low %v1304_v55, %v1312_v62  ;;  %v1359_v55 = vld [vmem:[#allocation2 + $0x1ee0] sm:$0xff] }
 0x2f4   :  { %8839 = vst [vmem:[%s11399_s4 + $0x1a0] sm:$0xff] %v7344_v51  ;;  %v7346_v30 = vpop.f32.mrb[23].mxu0  ;;  %7880 = vmatprep.subr.bf16.mxu0 %v9809_v15  ;;  %8841 = vst [vmem:[%s11399_s4 + $0x1b0] sm:$0xff] %v7628_v39  ;;  %v7630_v43 = vpop.f32.mrb[23].mxu1  ;;  %8164 = vmatprep.subr.bf16.mxu1 %v9811_v20  ;;  %v1328_v15 = vld [vmem:[#allocation2 + $0x1de8] sm:$0xff]  ;;  %v1335_v51 = vld [vmem:[#allocation2 + $0x1e20] sm:$0xff] }
 0x2f5   :  { %8840 = vst [vmem:[%s11399_s4 + $0x1a8] sm:$0xff] %v7346_v30  ;;  %8842 = vst [vmem:[%s11399_s4 + $0x1b8] sm:$0xff] %v7630_v43  ;;  %v9859_v26 = vcombine.high %v1320_v9, %v1328_v15  ;;  %v1336_v39 = vld [vmem:[#allocation2 + $0x1e28] sm:$0xff] }
 0x2f6   :  { %v1344_v30 = vld [vmem:[#allocation2 + $0x1e68] sm:$0xff] }
 0x2f7   :  { %7881 = vmatpush1.bf16.msra.mxu0 %v9808_v59  ;;  %8165 = vmatpush1.bf16.msra.mxu1 %v9810_v31  ;;  %v1343_v59 = vld [vmem:[#allocation2 + $0x1e60] sm:$0xff]  ;;  %v9856_v31 = vcombine.low %v1319_v44, %v1327_v63  ;;  %v9875_v33 = vcombine.high %v1336_v39, %v1344_v30 }
 0x2f8   :  { %7882 = vmatprep.subr.bf16.mxu0 %v9825_v47  ;;  %8166 = vmatprep.subr.bf16.mxu1 %v9827_v49  ;;  %v9858_v47 = vcombine.low %v1320_v9, %v1328_v15  ;;  %v9873_v43 = vcombine.high %v1335_v51, %v1343_v59  ;;  %v9872_v44 = vcombine.low %v1335_v51, %v1343_v59  ;;  %v1383_v51 = vld [vmem:[#allocation2 + $0x1fa0] sm:$0xff] }
 0x2f9   :  { %v7350_v52 = vpop.f32.mrb[24].mxu0  ;;  %v7634_v40 = vpop.f32.mrb[24].mxu1  ;;  %v9889_v9 = vcombine.high %v1351_v56, %v1359_v55  ;;  %v1391_v59 = vld [vmem:[#allocation2 + $0x1fe0] sm:$0xff] }
 0x2fa   :  { %8855 = vst [vmem:[%s11399_s4 + $0x220] sm:$0xff] %v7350_v52  ;;  %v7352_v6 = vpop.f32.mrb[25].mxu0  ;;  %8857 = vst [vmem:[%s11399_s4 + $0x230] sm:$0xff] %v7634_v40  ;;  %v7636_v19 = vpop.f32.mrb[25].mxu1 }
 0x2fb   :  { %8856 = vst [vmem:[%s11399_s4 + $0x228] sm:$0xff] %v7352_v6  ;;  %v7354_v20 = vpop.f32.mrb[26].mxu0  ;;  %7883 = vmatpush1.bf16.msra.mxu0 %v9824_v35  ;;  %8858 = vst [vmem:[%s11399_s4 + $0x238] sm:$0xff] %v7636_v19  ;;  %v7638_v14 = vpop.f32.mrb[26].mxu1  ;;  %8167 = vmatpush1.bf16.msra.mxu1 %v9826_v0  ;;  %v1352_v0 = vld [vmem:[#allocation2 + $0x1ea8] sm:$0xff]  ;;  %v9874_v6 = vcombine.low %v1336_v39, %v1344_v30 }
 0x2fc   :  { %8871 = vst [vmem:[%s11399_s4 + $0x2a0] sm:$0xff] %v7354_v20  ;;  %v7356_v27 = vpop.f32.mrb[27].mxu0  ;;  %7884 = vmatprep.subr.bf16.mxu0 %v9841_v61  ;;  %8873 = vst [vmem:[%s11399_s4 + $0x2b0] sm:$0xff] %v7638_v14  ;;  %v7640_v22 = vpop.f32.mrb[27].mxu1  ;;  %8168 = vmatprep.subr.bf16.mxu1 %v9843_v5  ;;  %v1360_v61 = vld [vmem:[#allocation2 + $0x1ee8] sm:$0xff]  ;;  %v1367_v20 = vld [vmem:[#allocation2 + $0x1f20] sm:$0xff] }
 0x2fd   :  { %8872 = vst [vmem:[%s11399_s4 + $0x2a8] sm:$0xff] %v7356_v27  ;;  %8874 = vst [vmem:[%s11399_s4 + $0x2b8] sm:$0xff] %v7640_v22  ;;  %v9891_v19 = vcombine.high %v1352_v0, %v1360_v61  ;;  %v1368_v14 = vld [vmem:[#allocation2 + $0x1f28] sm:$0xff] }
 0x2fe   :  { %v1376_v27 = vld [vmem:[#allocation2 + $0x1f68] sm:$0xff] }
 0x2ff   :  { %7885 = vmatpush1.bf16.msra.mxu0 %v9840_v10  ;;  %8169 = vmatpush1.bf16.msra.mxu1 %v9842_v7  ;;  %v1375_v10 = vld [vmem:[#allocation2 + $0x1f60] sm:$0xff]  ;;  %v9888_v7 = vcombine.low %v1351_v56, %v1359_v55  ;;  %v1392_v39 = vld [vmem:[#allocation2 + $0x1fe8] sm:$0xff]  ;;  %v385_v56 = vld [vmem:[#allocation2 + $0x70] sm:$0xff] }
 0x300   :  { %7886 = vmatprep.subr.bf16.mxu0 %v9857_v28  ;;  %8170 = vmatprep.subr.bf16.mxu1 %v9859_v26  ;;  %v9890_v28 = vcombine.low %v1352_v0, %v1360_v61  ;;  %v9905_v22 = vcombine.high %v1367_v20, %v1375_v10  ;;  %v9907_v26 = vcombine.high %v1368_v14, %v1376_v27  ;;  %v378_v55 = vld [vmem:[#allocation2 + $0x38] sm:$0xff] }
 0x301   :  { %v7360_v49 = vpop.f32.mrb[28].mxu0  ;;  %v7644_v62 = vpop.f32.mrb[28].mxu1  ;;  %v9904_v30 = vcombine.low %v1367_v20, %v1375_v10  ;;  %v409_v20 = vld [vmem:[#allocation2 + $0x130] sm:$0xff] }
 0x302   :  { %8887 = vst [vmem:[%s11399_s4 + $0x320] sm:$0x1] %v7360_v49  ;;  %v7362_v35 = vpop.f32.mrb[29].mxu0  ;;  %8889 = vst [vmem:[%s11399_s4 + $0x330] sm:$0x1] %v7644_v62  ;;  %v7646_v52 = vpop.f32.mrb[29].mxu1 }
 0x303   :  { %8888 = vst [vmem:[%s11399_s4 + $0x328] sm:$0x1] %v7362_v35  ;;  %v7364_v5 = vpop.f32.mrb[30].mxu0  ;;  %7887 = vmatpush1.bf16.msra.mxu0 %v9856_v31  ;;  %8890 = vst [vmem:[%s11399_s4 + $0x338] sm:$0x1] %v7646_v52  ;;  %v7648_v63 = vpop.f32.mrb[30].mxu1  ;;  %8171 = vmatpush1.bf16.msra.mxu1 %v9858_v47  ;;  %v9906_v47 = vcombine.low %v1368_v14, %v1376_v27  ;;  %v9920_v35 = vcombine.low %v1383_v51, %v1391_v59 }
 0x304   :  { %v7365_v40 = vpop.f32.mrb[31].mxu0  ;;  %7888 = vmatprep.subr.bf16.mxu0 %v9873_v43  ;;  %v7649_v15 = vpop.f32.mrb[31].mxu1  ;;  %8172 = vmatprep.subr.bf16.mxu1 %v9875_v33  ;;  %v1384_v31 = vld [vmem:[#allocation2 + $0x1fa8] sm:$0xff]  ;;  %v9921_v43 = vcombine.high %v1383_v51, %v1391_v59  ;;  %v377_v33 = vld [vmem:[#allocation2 + $0x30] sm:$0xff]  ;;  %v386_v62 = vld [vmem:[#allocation2 + $0x78] sm:$0xff] }
 0x305   :  { %v9923_v49 = vcombine.high %v1384_v31, %v1392_v39  ;;  %v9922_v0 = vcombine.low %v1384_v31, %v1392_v39  ;;  %v8917_v61 = vcombine.high %v377_v33, %v385_v56  ;;  %v8919_v52 = vcombine.high %v378_v55, %v386_v62  ;;  %v393_v5 = vld [vmem:[#allocation2 + $0xb0] sm:$0xff]  ;;  %v394_v63 = vld [vmem:[#allocation2 + $0xb8] sm:$0xff] }
 0x306   :  { %v402_v40 = vld [vmem:[#allocation2 + $0xf8] sm:$0xff]  ;;  %v417_v10 = vld [vmem:[#allocation2 + $0x170] sm:$0xff] }
 0x307   :  { %7889 = vmatpush1.bf16.msra.mxu0 %v9872_v44  ;;  %8173 = vmatpush1.bf16.msra.mxu1 %v9874_v6  ;;  %v401_v44 = vld [vmem:[#allocation2 + $0xf0] sm:$0xff]  ;;  %v8916_v6 = vcombine.low %v377_v33, %v385_v56  ;;  %v410_v14 = vld [vmem:[#allocation2 + $0x138] sm:$0xff] }
 0x308   :  { %7890 = vmatprep.subr.bf16.mxu0 %v9889_v9  ;;  %8174 = vmatprep.subr.bf16.mxu1 %v9891_v19  ;;  %v8918_v9 = vcombine.low %v378_v55, %v386_v62  ;;  %v8933_v15 = vcombine.high %v393_v5, %v401_v44  ;;  %v8935_v19 = vcombine.high %v394_v63, %v402_v40  ;;  %v418_v27 = vld [vmem:[#allocation2 + $0x178] sm:$0xff]  ;;  %v425_v51 = vld [vmem:[#allocation2 + $0x1b0] sm:$0xff] }
 0x309   :  { %v433_v59 = vld [vmem:[#allocation2 + $0x1f0] sm:$0xff]  ;;  %v426_v31 = vld [vmem:[#allocation2 + $0x1b8] sm:$0xff] }
 0x30a   :  { %v434_v39 = vld [vmem:[#allocation2 + $0x1f8] sm:$0xff]  ;;  %v441_v33 = vld [vmem:[#allocation2 + $0x230] sm:$0xff] }
 0x30b   :  { %7891 = vmatpush1.bf16.msra.mxu0 %v9888_v7  ;;  %8175 = vmatpush1.bf16.msra.mxu1 %v9890_v28  ;;  %v8932_v7 = vcombine.low %v393_v5, %v401_v44  ;;  %v8934_v28 = vcombine.low %v394_v63, %v402_v40  ;;  %v449_v56 = vld [vmem:[#allocation2 + $0x270] sm:$0xff]  ;;  %v442_v55 = vld [vmem:[#allocation2 + $0x238] sm:$0xff] }
 0x30c   :  { %7892 = vmatprep.subr.bf16.mxu0 %v9905_v22  ;;  %8176 = vmatprep.subr.bf16.mxu1 %v9907_v26  ;;  %v8949_v22 = vcombine.high %v409_v20, %v417_v10  ;;  %v8951_v26 = vcombine.high %v410_v14, %v418_v27  ;;  %v450_v62 = vld [vmem:[#allocation2 + $0x278] sm:$0xff]  ;;  %v457_v5 = vld [vmem:[#allocation2 + $0x2b0] sm:$0xff] }
 0x30d   :  { %v465_v44 = vld [vmem:[#allocation2 + $0x2f0] sm:$0xff]  ;;  %v458_v63 = vld [vmem:[#allocation2 + $0x2b8] sm:$0xff] }
 0x30e   :  { %v466_v40 = vld [vmem:[#allocation2 + $0x2f8] sm:$0xff] }
 0x30f   :  { %7893 = vmatpush1.bf16.msra.mxu0 %v9904_v30  ;;  %8177 = vmatpush1.bf16.msra.mxu1 %v9906_v47  ;;  %v8948_v30 = vcombine.low %v409_v20, %v417_v10  ;;  %v8950_v47 = vcombine.low %v410_v14, %v418_v27  ;;  %v473_v20 = vld [vmem:[#allocation2 + $0x330] sm:$0xff]  ;;  %v474_v14 = vld [vmem:[#allocation2 + $0x338] sm:$0xff] }
 0x310   :  { %7894 = vmatprep.subr.bf16.mxu0 %v9921_v43  ;;  %8178 = vmatprep.subr.bf16.mxu1 %v9923_v49  ;;  %v8965_v43 = vcombine.high %v425_v51, %v433_v59  ;;  %v8967_v49 = vcombine.high %v426_v31, %v434_v39  ;;  %v481_v10 = vld [vmem:[#allocation2 + $0x370] sm:$0xff]  ;;  %v482_v27 = vld [vmem:[#allocation2 + $0x378] sm:$0xff] }
 0x313   :  { %7895 = vmatpush1.bf16.msra.mxu0 %v9920_v35  ;;  %8179 = vmatpush1.bf16.msra.mxu1 %v9922_v0  ;;  %v8964_v35 = vcombine.low %v425_v51, %v433_v59  ;;  %v8966_v0 = vcombine.low %v426_v31, %v434_v39  ;;  %v489_v51 = vld [vmem:[#allocation2 + $0x3b0] sm:$0xff]  ;;  %v490_v31 = vld [vmem:[#allocation2 + $0x3b8] sm:$0xff] }
 0x314   :  { %8219 = vmatprep.subr.bf16.mxu0 %v8917_v61  ;;  %8503 = vmatprep.subr.bf16.mxu1 %v8919_v52  ;;  %v8981_v61 = vcombine.high %v441_v33, %v449_v56  ;;  %v8983_v52 = vcombine.high %v442_v55, %v450_v62  ;;  %v497_v59 = vld [vmem:[#allocation2 + $0x3f0] sm:$0xff]  ;;  %v498_v39 = vld [vmem:[#allocation2 + $0x3f8] sm:$0xff] }
 0x316   :  { %7897 = vmatmul.mubr.bf16.vlgmr.msra.gmra.mrb[32].mxu0 %v10815_v13  ;;  %8181 = vmatmul.mubr.bf16.vlgmr.msra.gmra.mrb[32].mxu1 %v10815_v13 }
 0x317   :  { %8220 = vmatpush1.bf16.msra.mxu0 %v8916_v6  ;;  %8504 = vmatpush1.bf16.msra.mxu1 %v8918_v9  ;;  %v8980_v6 = vcombine.low %v441_v33, %v449_v56  ;;  %v8982_v9 = vcombine.low %v442_v55, %v450_v62  ;;  %v505_v33 = vld [vmem:[#allocation2 + $0x430] sm:$0xff]  ;;  %v506_v55 = vld [vmem:[#allocation2 + $0x438] sm:$0xff] }
 0x318   :  { %8221 = vmatprep.subr.bf16.mxu0 %v8933_v15  ;;  %8505 = vmatprep.subr.bf16.mxu1 %v8935_v19  ;;  %v8997_v15 = vcombine.high %v457_v5, %v465_v44  ;;  %v8999_v19 = vcombine.high %v458_v63, %v466_v40  ;;  %v513_v56 = vld [vmem:[#allocation2 + $0x470] sm:$0xff]  ;;  %v514_v62 = vld [vmem:[#allocation2 + $0x478] sm:$0xff] }
 0x319   :  { %7906 = vmatprep.mubr.bf16.mxu0 %v10825_v37  ;;  %8190 = vmatprep.mubr.bf16.mxu1 %v10825_v37 }
 0x31b   :  { %8222 = vmatpush1.bf16.msra.mxu0 %v8932_v7  ;;  %8506 = vmatpush1.bf16.msra.mxu1 %v8934_v28  ;;  %v8996_v7 = vcombine.low %v457_v5, %v465_v44  ;;  %v8998_v28 = vcombine.low %v458_v63, %v466_v40  ;;  %v521_v5 = vld [vmem:[#allocation2 + $0x4b0] sm:$0xff]  ;;  %v522_v63 = vld [vmem:[#allocation2 + $0x4b8] sm:$0xff] }
 0x31c   :  { %8223 = vmatprep.subr.bf16.mxu0 %v8949_v22  ;;  %8507 = vmatprep.subr.bf16.mxu1 %v8951_v26  ;;  %v9013_v22 = vcombine.high %v473_v20, %v481_v10  ;;  %v9015_v26 = vcombine.high %v474_v14, %v482_v27  ;;  %v529_v44 = vld [vmem:[#allocation2 + $0x4f0] sm:$0xff]  ;;  %v530_v40 = vld [vmem:[#allocation2 + $0x4f8] sm:$0xff] }
 0x31e   :  { %7907 = vmatmul.mubr.bf16.gmra.mrb[36].mxu0 %v10839_v2  ;;  %8191 = vmatmul.mubr.bf16.gmra.mrb[36].mxu1 %v10839_v2 }
 0x31f   :  { %8224 = vmatpush1.bf16.msra.mxu0 %v8948_v30  ;;  %8508 = vmatpush1.bf16.msra.mxu1 %v8950_v47  ;;  %v9012_v30 = vcombine.low %v473_v20, %v481_v10  ;;  %v9014_v47 = vcombine.low %v474_v14, %v482_v27  ;;  %v537_v20 = vld [vmem:[#allocation2 + $0x530] sm:$0xff]  ;;  %v538_v14 = vld [vmem:[#allocation2 + $0x538] sm:$0xff] }
 0x320   :  { %8225 = vmatprep.subr.bf16.mxu0 %v8965_v43  ;;  %8509 = vmatprep.subr.bf16.mxu1 %v8967_v49  ;;  %v9029_v43 = vcombine.high %v489_v51, %v497_v59  ;;  %v9031_v49 = vcombine.high %v490_v31, %v498_v39  ;;  %v545_v10 = vld [vmem:[#allocation2 + $0x570] sm:$0xff]  ;;  %v546_v27 = vld [vmem:[#allocation2 + $0x578] sm:$0xff] }
 0x321   :  { %7916 = vmatprep.mubr.bf16.mxu0 %v10846_v45  ;;  %8200 = vmatprep.mubr.bf16.mxu1 %v10846_v45 }
 0x323   :  { %8226 = vmatpush1.bf16.msra.mxu0 %v8964_v35  ;;  %8510 = vmatpush1.bf16.msra.mxu1 %v8966_v0  ;;  %v9028_v35 = vcombine.low %v489_v51, %v497_v59  ;;  %v9030_v0 = vcombine.low %v490_v31, %v498_v39  ;;  %v561_v51 = vld [vmem:[#allocation2 + $0x5f0] sm:$0xff]  ;;  %v554_v59 = vld [vmem:[#allocation2 + $0x5b8] sm:$0xff]  ;;  %v9076_v39 = vcombine.low %v537_v20, %v545_v10 }
 0x324   :  { %8227 = vmatprep.subr.bf16.mxu0 %v8981_v61  ;;  %8511 = vmatprep.subr.bf16.mxu1 %v8983_v52  ;;  %v9045_v61 = vcombine.high %v505_v33, %v513_v56  ;;  %v9047_v52 = vcombine.high %v506_v55, %v514_v62  ;;  %v562_v31 = vld [vmem:[#allocation2 + $0x5f8] sm:$0xff] }
 0x326   :  { %7917 = vmatmul.mubr.bf16.gmra.mrb[40].mxu0 %v10854_v3  ;;  %8201 = vmatmul.mubr.bf16.gmra.mrb[40].mxu1 %v10854_v3 }
 0x327   :  { %8228 = vmatpush1.bf16.msra.mxu0 %v8980_v6  ;;  %8512 = vmatpush1.bf16.msra.mxu1 %v8982_v9  ;;  %v9044_v6 = vcombine.low %v505_v33, %v513_v56  ;;  %v9046_v9 = vcombine.low %v506_v55, %v514_v62  ;;  %v577_v33 = vld [vmem:[#allocation2 + $0x670] sm:$0xff]  ;;  %v570_v56 = vld [vmem:[#allocation2 + $0x638] sm:$0xff] }
 0x328   :  { %8229 = vmatprep.subr.bf16.mxu0 %v8997_v15  ;;  %8513 = vmatprep.subr.bf16.mxu1 %v8999_v19  ;;  %v9061_v15 = vcombine.high %v521_v5, %v529_v44  ;;  %v9063_v19 = vcombine.high %v522_v63, %v530_v40  ;;  %v578_v55 = vld [vmem:[#allocation2 + $0x678] sm:$0xff] }
 0x329   :  { %7926 = vmatprep.mubr.bf16.mxu0 %v10857_v17  ;;  %8210 = vmatprep.mubr.bf16.mxu1 %v10857_v17 }
 0x32b   :  { %8230 = vmatpush1.bf16.msra.mxu0 %v8996_v7  ;;  %8514 = vmatpush1.bf16.msra.mxu1 %v8998_v28  ;;  %v9060_v7 = vcombine.low %v521_v5, %v529_v44  ;;  %v9062_v28 = vcombine.low %v522_v63, %v530_v40  ;;  %v593_v5 = vld [vmem:[#allocation2 + $0x6f0] sm:$0xff]  ;;  %v586_v44 = vld [vmem:[#allocation2 + $0x6b8] sm:$0xff] }
 0x32c   :  { %8231 = vmatprep.subr.bf16.mxu0 %v9013_v22  ;;  %8515 = vmatprep.subr.bf16.mxu1 %v9015_v26  ;;  %v9077_v22 = vcombine.high %v537_v20, %v545_v10  ;;  %v553_v26 = vld [vmem:[#allocation2 + $0x5b0] sm:$0xff]  ;;  %v594_v63 = vld [vmem:[#allocation2 + $0x6f8] sm:$0xff] }
 0x32d   :  { %v9092_v62 = vcombine.low %v553_v26, %v561_v51  ;;  %v609_v20 = vld [vmem:[#allocation2 + $0x770] sm:$0xff]  ;;  %v602_v10 = vld [vmem:[#allocation2 + $0x738] sm:$0xff] }
 0x32e   :  { %7927 = vmatmul.mubr.bf16.gmra.mrb[44].mxu0 %v10863_v32  ;;  %8211 = vmatmul.mubr.bf16.gmra.mrb[44].mxu1 %v10863_v32 }
 0x32f   :  { %8232 = vmatpush1.bf16.msra.mxu0 %v9012_v30  ;;  %8516 = vmatpush1.bf16.msra.mxu1 %v9014_v47  ;;  %v9078_v30 = vcombine.low %v538_v14, %v546_v27  ;;  %v9093_v47 = vcombine.high %v553_v26, %v561_v51  ;;  %v625_v26 = vld [vmem:[#allocation2 + $0x7f0] sm:$0xff]  ;;  %v618_v51 = vld [vmem:[#allocation2 + $0x7b8] sm:$0xff] }
 0x330   :  { %8233 = vmatprep.subr.bf16.mxu0 %v9029_v43  ;;  %8517 = vmatprep.subr.bf16.mxu1 %v9031_v49  ;;  %v9095_v43 = vcombine.high %v554_v59, %v562_v31  ;;  %v569_v49 = vld [vmem:[#allocation2 + $0x630] sm:$0xff] }
 0x331   :  { %8251 = vmatprep.mubr.bf16.mxu0 %v10410_v25  ;;  %8535 = vmatprep.mubr.bf16.mxu1 %v10410_v25  ;;  %v9079_v25 = vcombine.high %v538_v14, %v546_v27  ;;  %v9108_v40 = vcombine.low %v569_v49, %v577_v33  ;;  %v610_v14 = vld [vmem:[#allocation2 + $0x778] sm:$0xff] }
 0x333   :  { %8234 = vmatpush1.bf16.msra.mxu0 %v9028_v35  ;;  %8518 = vmatpush1.bf16.msra.mxu1 %v9030_v0  ;;  %v9094_v35 = vcombine.low %v554_v59, %v562_v31  ;;  %v9109_v0 = vcombine.high %v569_v49, %v577_v33  ;;  %v626_v59 = vld [vmem:[#allocation2 + $0x7f8] sm:$0xff]  ;;  %v641_v49 = vld [vmem:[#allocation2 + $0x870] sm:$0xff] }
 0x334   :  { %8235 = vmatprep.subr.bf16.mxu0 %v9045_v61  ;;  %8519 = vmatprep.subr.bf16.mxu1 %v9047_v52  ;;  %v9111_v61 = vcombine.high %v570_v56, %v578_v55  ;;  %v585_v52 = vld [vmem:[#allocation2 + $0x6b0] sm:$0xff]  ;;  %v634_v33 = vld [vmem:[#allocation2 + $0x838] sm:$0xff] }
 0x335   :  { %v9124_v27 = vcombine.low %v585_v52, %v593_v5 }
 0x337   :  { %8236 = vmatpush1.bf16.msra.mxu0 %v9044_v6  ;;  %8520 = vmatpush1.bf16.msra.mxu1 %v9046_v9  ;;  %v9110_v6 = vcombine.low %v570_v56, %v578_v55  ;;  %v9125_v9 = vcombine.high %v585_v52, %v593_v5  ;;  %v642_v56 = vld [vmem:[#allocation2 + $0x878] sm:$0xff]  ;;  %v657_v52 = vld [vmem:[#allocation2 + $0x8f0] sm:$0xff] }
 0x338   :  { %8237 = vmatprep.subr.bf16.mxu0 %v9061_v15  ;;  %8521 = vmatprep.subr.bf16.mxu1 %v9063_v19  ;;  %v9127_v15 = vcombine.high %v586_v44, %v594_v63  ;;  %v601_v19 = vld [vmem:[#allocation2 + $0x730] sm:$0xff]  ;;  %v650_v5 = vld [vmem:[#allocation2 + $0x8b8] sm:$0xff] }
 0x339   :  { %v9140_v31 = vcombine.low %v601_v19, %v609_v20 }
 0x33b   :  { %8238 = vmatpush1.bf16.msra.mxu0 %v9060_v7  ;;  %8522 = vmatpush1.bf16.msra.mxu1 %v9062_v28  ;;  %v9126_v7 = vcombine.low %v586_v44, %v594_v63  ;;  %v9141_v28 = vcombine.high %v601_v19, %v609_v20  ;;  %v658_v44 = vld [vmem:[#allocation2 + $0x8f8] sm:$0xff]  ;;  %v673_v19 = vld [vmem:[#allocation2 + $0x970] sm:$0xff] }
 0x33c   :  { %8239 = vmatprep.subr.bf16.mxu0 %v9077_v22  ;;  %8523 = vmatprep.subr.bf16.mxu1 %v9079_v25  ;;  %v9143_v22 = vcombine.high %v602_v10, %v610_v14  ;;  %v617_v25 = vld [vmem:[#allocation2 + $0x7b0] sm:$0xff]  ;;  %v666_v20 = vld [vmem:[#allocation2 + $0x938] sm:$0xff] }
 0x33d   :  { %v9156_v55 = vcombine.low %v617_v25, %v625_v26 }
 0x33f   :  { %8240 = vmatpush1.bf16.msra.mxu0 %v9076_v39  ;;  %8524 = vmatpush1.bf16.msra.mxu1 %v9078_v30  ;;  %v9142_v39 = vcombine.low %v602_v10, %v610_v14  ;;  %v9157_v30 = vcombine.high %v617_v25, %v625_v26  ;;  %v674_v10 = vld [vmem:[#allocation2 + $0x978] sm:$0xff]  ;;  %v689_v25 = vld [vmem:[#allocation2 + $0x9f0] sm:$0xff] }
 0x340   :  { %8241 = vmatprep.subr.bf16.mxu0 %v9093_v47  ;;  %8525 = vmatprep.subr.bf16.mxu1 %v9095_v43  ;;  %v9159_v47 = vcombine.high %v618_v51, %v626_v59  ;;  %v633_v43 = vld [vmem:[#allocation2 + $0x830] sm:$0xff]  ;;  %v682_v26 = vld [vmem:[#allocation2 + $0x9b8] sm:$0xff] }
 0x341   :  { %v9172_v63 = vcombine.low %v633_v43, %v641_v49 }
 0x343   :  { %8242 = vmatpush1.bf16.msra.mxu0 %v9092_v62  ;;  %8526 = vmatpush1.bf16.msra.mxu1 %v9094_v35  ;;  %v9158_v62 = vcombine.low %v618_v51, %v626_v59  ;;  %v9173_v35 = vcombine.high %v633_v43, %v641_v49  ;;  %v690_v51 = vld [vmem:[#allocation2 + $0x9f8] sm:$0xff] }
 0x344   :  { %8243 = vmatprep.subr.bf16.mxu0 %v9109_v0  ;;  %8527 = vmatprep.subr.bf16.mxu1 %v9111_v61  ;;  %v9175_v0 = vcombine.high %v634_v33, %v642_v56  ;;  %v649_v61 = vld [vmem:[#allocation2 + $0x8b0] sm:$0xff]  ;;  %v698_v43 = vld [vmem:[#allocation2 + $0xa38] sm:$0xff] }
 0x345   :  { %v9188_v14 = vcombine.low %v649_v61, %v657_v52  ;;  %v706_v49 = vld [vmem:[#allocation2 + $0xa78] sm:$0xff] }
 0x347   :  { %8244 = vmatpush1.bf16.msra.mxu0 %v9108_v40  ;;  %8528 = vmatpush1.bf16.msra.mxu1 %v9110_v6  ;;  %v9174_v40 = vcombine.low %v634_v33, %v642_v56  ;;  %v9189_v6 = vcombine.high %v649_v61, %v657_v52  ;;  %v722_v61 = vld [vmem:[#allocation2 + $0xaf8] sm:$0xff] }
 0x348   :  { %8245 = vmatprep.subr.bf16.mxu0 %v9125_v9  ;;  %8529 = vmatprep.subr.bf16.mxu1 %v9127_v15  ;;  %v9191_v9 = vcombine.high %v650_v5, %v658_v44  ;;  %v665_v15 = vld [vmem:[#allocation2 + $0x930] sm:$0xff] }
 0x349   :  { %v9204_v59 = vcombine.low %v665_v15, %v673_v19 }
 0x34b   :  { %8246 = vmatpush1.bf16.msra.mxu0 %v9124_v27  ;;  %8530 = vmatpush1.bf16.msra.mxu1 %v9126_v7  ;;  %v9190_v27 = vcombine.low %v650_v5, %v658_v44  ;;  %v9205_v7 = vcombine.high %v665_v15, %v673_v19  ;;  %v9238_v5 = vcombine.low %v698_v43, %v706_v49 }
 0x34c   :  { %8247 = vmatprep.subr.bf16.mxu0 %v9141_v28  ;;  %8531 = vmatprep.subr.bf16.mxu1 %v9143_v22  ;;  %v9207_v28 = vcombine.high %v666_v20, %v674_v10  ;;  %v681_v22 = vld [vmem:[#allocation2 + $0x9b0] sm:$0xff] }
 0x34d   :  { %v9220_v33 = vcombine.low %v681_v22, %v689_v25 }
 0x34f   :  { %8248 = vmatpush1.bf16.msra.mxu0 %v9140_v31  ;;  %8532 = vmatpush1.bf16.msra.mxu1 %v9142_v39  ;;  %v9221_v31 = vcombine.high %v681_v22, %v689_v25  ;;  %v9223_v39 = vcombine.high %v682_v26, %v690_v51 }
 0x350   :  { %8249 = vmatprep.subr.bf16.mxu0 %v9157_v30  ;;  %8533 = vmatprep.subr.bf16.mxu1 %v9159_v47  ;;  %v697_v30 = vld [vmem:[#allocation2 + $0xa30] sm:$0xff] }
 0x351   :  { %v705_v47 = vld [vmem:[#allocation2 + $0xa70] sm:$0xff] }
 0x352   :  { %v9237_v56 = vcombine.high %v697_v30, %v705_v47  ;;  %v9236_v52 = vcombine.low %v697_v30, %v705_v47  ;;  %v777_v47 = vld [vmem:[#allocation2 + $0xcb0] sm:$0xff] }
 0x353   :  { %8250 = vmatpush1.bf16.msra.mxu0 %v9156_v55  ;;  %8534 = vmatpush1.bf16.msra.mxu1 %v9158_v62  ;;  %v9239_v55 = vcombine.high %v698_v43, %v706_v49  ;;  %v713_v62 = vld [vmem:[#allocation2 + $0xab0] sm:$0xff]  ;;  %v778_v49 = vld [vmem:[#allocation2 + $0xcb8] sm:$0xff] }
 0x354   :  { %8290 = vmatprep.subr.bf16.mxu0 %v9173_v35  ;;  %8574 = vmatprep.subr.bf16.mxu1 %v9175_v0  ;;  %v721_v35 = vld [vmem:[#allocation2 + $0xaf0] sm:$0xff]  ;;  %v714_v0 = vld [vmem:[#allocation2 + $0xab8] sm:$0xff] }
 0x355   :  { %v9255_v44 = vcombine.high %v714_v0, %v722_v61  ;;  %v9252_v15 = vcombine.low %v713_v62, %v721_v35  ;;  %v785_v43 = vld [vmem:[#allocation2 + $0xcf0] sm:$0xff] }
 0x356   :  { %8252 = vmatmul.mubr.bf16.vlgmr.msra.gmra.mrb[48].mxu0 %v10457_v58  ;;  %8536 = vmatmul.mubr.bf16.vlgmr.msra.gmra.mrb[48].mxu1 %v10457_v58  ;;  %v9206_v58 = vcombine.low %v666_v20, %v674_v10  ;;  %v745_v10 = vld [vmem:[#allocation2 + $0xbb0] sm:$0xff] }
 0x357   :  { %8291 = vmatpush1.bf16.msra.mxu0 %v9172_v63  ;;  %8575 = vmatpush1.bf16.msra.mxu1 %v9174_v40  ;;  %v729_v63 = vld [vmem:[#allocation2 + $0xb30] sm:$0xff] }
 0x358   :  { %8292 = vmatprep.subr.bf16.mxu0 %v9189_v6  ;;  %8576 = vmatprep.subr.bf16.mxu1 %v9191_v9  ;;  %v737_v40 = vld [vmem:[#allocation2 + $0xb70] sm:$0xff]  ;;  %v730_v6 = vld [vmem:[#allocation2 + $0xb38] sm:$0xff] }
 0x359   :  { %8261 = vmatprep.mubr.bf16.mxu0 %v10467_v12  ;;  %8545 = vmatprep.mubr.bf16.mxu1 %v10467_v12  ;;  %v9222_v12 = vcombine.low %v682_v26, %v690_v51  ;;  %v738_v9 = vld [vmem:[#allocation2 + $0xb78] sm:$0xff]  ;;  %v9269_v19 = vcombine.high %v729_v63, %v737_v40  ;;  %v761_v26 = vld [vmem:[#allocation2 + $0xc30] sm:$0xff] }
 0x35a   :  { %v9271_v20 = vcombine.high %v730_v6, %v738_v9  ;;  %v9270_v22 = vcombine.low %v730_v6, %v738_v9  ;;  %v769_v51 = vld [vmem:[#allocation2 + $0xc70] sm:$0xff]  ;;  %v818_v6 = vld [vmem:[#allocation2 + $0xdf8] sm:$0xff] }
 0x35b   :  { %8293 = vmatpush1.bf16.msra.mxu0 %v9188_v14  ;;  %8577 = vmatpush1.bf16.msra.mxu1 %v9190_v27  ;;  %v753_v14 = vld [vmem:[#allocation2 + $0xbf0] sm:$0xff]  ;;  %v746_v27 = vld [vmem:[#allocation2 + $0xbb8] sm:$0xff] }
 0x35c   :  { %8294 = vmatprep.subr.bf16.mxu0 %v9205_v7  ;;  %8578 = vmatprep.subr.bf16.mxu1 %v9207_v28  ;;  %v754_v7 = vld [vmem:[#allocation2 + $0xbf8] sm:$0xff]  ;;  %v9268_v28 = vcombine.low %v729_v63, %v737_v40  ;;  %v817_v63 = vld [vmem:[#allocation2 + $0xdf0] sm:$0xff] }
 0x35d   :  { %v9287_v25 = vcombine.high %v746_v27, %v754_v7  ;;  %v810_v40 = vld [vmem:[#allocation2 + $0xdb8] sm:$0xff] }
 0x35e   :  { %8262 = vmatmul.mubr.bf16.gmra.mrb[52].mxu0 %v10482_v36  ;;  %8546 = vmatmul.mubr.bf16.gmra.mrb[52].mxu1 %v10482_v36  ;;  %v9253_v36 = vcombine.high %v713_v62, %v721_v35  ;;  %v793_v62 = vld [vmem:[#allocation2 + $0xd30] sm:$0xff] }
 0x35f   :  { %8295 = vmatpush1.bf16.msra.mxu0 %v9204_v59  ;;  %8579 = vmatpush1.bf16.msra.mxu1 %v9206_v58  ;;  %v762_v59 = vld [vmem:[#allocation2 + $0xc38] sm:$0xff]  ;;  %v801_v35 = vld [vmem:[#allocation2 + $0xd70] sm:$0xff] }
 0x360   :  { %8296 = vmatprep.subr.bf16.mxu0 %v9221_v31  ;;  %8580 = vmatprep.subr.bf16.mxu1 %v9223_v39  ;;  %v770_v58 = vld [vmem:[#allocation2 + $0xc78] sm:$0xff]  ;;  %v9284_v31 = vcombine.low %v745_v10, %v753_v14  ;;  %v9301_v39 = vcombine.high %v761_v26, %v769_v51  ;;  %v9332_v9 = vcombine.low %v793_v62, %v801_v35 }
 0x361   :  { %8271 = vmatprep.mubr.bf16.mxu0 %v10489_v48  ;;  %8555 = vmatprep.mubr.bf16.mxu1 %v10489_v48  ;;  %v9254_v48 = vcombine.low %v714_v0, %v722_v61  ;;  %v9303_v30 = vcombine.high %v762_v59, %v770_v58  ;;  %v794_v0 = vld [vmem:[#allocation2 + $0xd38] sm:$0xff] }
 0x362   :  { %v802_v61 = vld [vmem:[#allocation2 + $0xd78] sm:$0xff] }
 0x363   :  { %8297 = vmatpush1.bf16.msra.mxu0 %v9220_v33  ;;  %8581 = vmatpush1.bf16.msra.mxu1 %v9222_v12  ;;  %v786_v33 = vld [vmem:[#allocation2 + $0xcf8] sm:$0xff]  ;;  %v9300_v12 = vcombine.low %v761_v26, %v769_v51  ;;  %v849_v26 = vld [vmem:[#allocation2 + $0xef0] sm:$0xff] }
 0x364   :  { %8298 = vmatprep.subr.bf16.mxu0 %v9237_v56  ;;  %8582 = vmatprep.subr.bf16.mxu1 %v9239_v55  ;;  %v9302_v56 = vcombine.low %v762_v59, %v770_v58  ;;  %v9319_v55 = vcombine.high %v778_v49, %v786_v33  ;;  %v842_v51 = vld [vmem:[#allocation2 + $0xeb8] sm:$0xff] }
 0x365   :  { %v850_v59 = vld [vmem:[#allocation2 + $0xef8] sm:$0xff] }
 0x366   :  { %8272 = vmatmul.mubr.bf16.gmra.mrb[56].mxu0 %v10511_v8  ;;  %8556 = vmatmul.mubr.bf16.gmra.mrb[56].mxu1 %v10511_v8  ;;  %v9285_v8 = vcombine.high %v745_v10, %v753_v14  ;;  %v833_v10 = vld [vmem:[#allocation2 + $0xe70] sm:$0xff]  ;;  %v826_v14 = vld [vmem:[#allocation2 + $0xe38] sm:$0xff] }
 0x367   :  { %8299 = vmatpush1.bf16.msra.mxu0 %v9236_v52  ;;  %8583 = vmatpush1.bf16.msra.mxu1 %v9238_v5  ;;  %v9316_v52 = vcombine.low %v777_v47, %v785_v43  ;;  %v9318_v5 = vcombine.low %v778_v49, %v786_v33  ;;  %v866_v49 = vld [vmem:[#allocation2 + $0xf78] sm:$0xff] }
 0x368   :  { %8300 = vmatprep.subr.bf16.mxu0 %v9253_v36  ;;  %8584 = vmatprep.subr.bf16.mxu1 %v9255_v44  ;;  %v9333_v36 = vcombine.high %v793_v62, %v801_v35  ;;  %v809_v44 = vld [vmem:[#allocation2 + $0xdb0] sm:$0xff]  ;;  %v874_v35 = vld [vmem:[#allocation2 + $0xfb8] sm:$0xff] }
 0x369   :  { %8281 = vmatprep.mubr.bf16.mxu0 %v10514_v18  ;;  %8565 = vmatprep.mubr.bf16.mxu1 %v10514_v18  ;;  %v9286_v18 = vcombine.low %v746_v27, %v754_v7  ;;  %v834_v27 = vld [vmem:[#allocation2 + $0xe78] sm:$0xff]  ;;  %v9348_v7 = vcombine.low %v809_v44, %v817_v63  ;;  %v881_v62 = vld [vmem:[#allocation2 + $0xff0] sm:$0xff] }
 0x36b   :  { %8301 = vmatpush1.bf16.msra.mxu0 %v9252_v15  ;;  %8585 = vmatpush1.bf16.msra.mxu1 %v9254_v48  ;;  %v9334_v15 = vcombine.low %v794_v0, %v802_v61  ;;  %v9349_v48 = vcombine.high %v809_v44, %v817_v63  ;;  %v897_v44 = vld [vmem:[#allocation2 + $0x1070] sm:$0xff]  ;;  %v890_v63 = vld [vmem:[#allocation2 + $0x1038] sm:$0xff] }
 0x36c   :  { %8302 = vmatprep.subr.bf16.mxu0 %v9269_v19  ;;  %8586 = vmatprep.subr.bf16.mxu1 %v9271_v20  ;;  %v9351_v19 = vcombine.high %v810_v40, %v818_v6  ;;  %v825_v20 = vld [vmem:[#allocation2 + $0xe30] sm:$0xff] }
 0x36d   :  { %v9364_v58 = vcombine.low %v825_v20, %v833_v10 }
 0x36e   :  { %8282 = vmatmul.mubr.bf16.gmra.mrb[60].mxu0 %v10522_v34  ;;  %8566 = vmatmul.mubr.bf16.gmra.mrb[60].mxu1 %v10522_v34  ;;  %v9317_v34 = vcombine.high %v777_v47, %v785_v43  ;;  %v865_v47 = vld [vmem:[#allocation2 + $0xf70] sm:$0xff]  ;;  %v858_v43 = vld [vmem:[#allocation2 + $0xf38] sm:$0xff] }
 0x36f   :  { %8303 = vmatpush1.bf16.msra.mxu0 %v9268_v28  ;;  %8587 = vmatpush1.bf16.msra.mxu1 %v9270_v22  ;;  %v9350_v28 = vcombine.low %v810_v40, %v818_v6  ;;  %v9365_v22 = vcombine.high %v825_v20, %v833_v10  ;;  %v898_v40 = vld [vmem:[#allocation2 + $0x1078] sm:$0xff]  ;;  %v913_v20 = vld [vmem:[#allocation2 + $0x10f0] sm:$0xff] }
 0x370   :  { %8304 = vmatprep.subr.bf16.mxu0 %v9285_v8  ;;  %8588 = vmatprep.subr.bf16.mxu1 %v9287_v25  ;;  %v9367_v8 = vcombine.high %v826_v14, %v834_v27  ;;  %v841_v25 = vld [vmem:[#allocation2 + $0xeb0] sm:$0xff]  ;;  %v906_v10 = vld [vmem:[#allocation2 + $0x10b8] sm:$0xff] }
 0x371   :  { %8322 = vmatprep.mubr.bf16.mxu0 %v10524_v1  ;;  %8606 = vmatprep.mubr.bf16.mxu1 %v10524_v1  ;;  %v9335_v1 = vcombine.high %v794_v0, %v802_v61  ;;  %v9380_v33 = vcombine.low %v841_v25, %v849_v26  ;;  %v882_v0 = vld [vmem:[#allocation2 + $0xff8] sm:$0xff] }
 0x373   :  { %8305 = vmatpush1.bf16.msra.mxu0 %v9284_v31  ;;  %8589 = vmatpush1.bf16.msra.mxu1 %v9286_v18  ;;  %v9366_v31 = vcombine.low %v826_v14, %v834_v27  ;;  %v9381_v18 = vcombine.high %v841_v25, %v849_v26  ;;  %v914_v14 = vld [vmem:[#allocation2 + $0x10f8] sm:$0xff]  ;;  %v929_v25 = vld [vmem:[#allocation2 + $0x1170] sm:$0xff] }
 0x374   :  { %8306 = vmatprep.subr.bf16.mxu0 %v9301_v39  ;;  %8590 = vmatprep.subr.bf16.mxu1 %v9303_v30  ;;  %v9383_v39 = vcombine.high %v842_v51, %v850_v59  ;;  %v857_v30 = vld [vmem:[#allocation2 + $0xf30] sm:$0xff]  ;;  %v922_v26 = vld [vmem:[#allocation2 + $0x1138] sm:$0xff] }
 0x375   :  { %v9396_v61 = vcombine.low %v857_v30, %v865_v47 }
 0x377   :  { %8307 = vmatpush1.bf16.msra.mxu0 %v9300_v12  ;;  %8591 = vmatpush1.bf16.msra.mxu1 %v9302_v56  ;;  %v9382_v12 = vcombine.low %v842_v51, %v850_v59  ;;  %v9397_v56 = vcombine.high %v857_v30, %v865_v47  ;;  %v930_v51 = vld [vmem:[#allocation2 + $0x1178] sm:$0xff]  ;;  %v945_v30 = vld [vmem:[#allocation2 + $0x11f0] sm:$0xff] }
 0x378   :  { %8308 = vmatprep.subr.bf16.mxu0 %v9317_v34  ;;  %8592 = vmatprep.subr.bf16.mxu1 %v9319_v55  ;;  %v9399_v34 = vcombine.high %v858_v43, %v866_v49  ;;  %v873_v55 = vld [vmem:[#allocation2 + $0xfb0] sm:$0xff]  ;;  %v938_v47 = vld [vmem:[#allocation2 + $0x11b8] sm:$0xff] }
 0x379   :  { %v9412_v6 = vcombine.low %v873_v55, %v881_v62 }
 0x37b   :  { %8309 = vmatpush1.bf16.msra.mxu0 %v9316_v52  ;;  %8593 = vmatpush1.bf16.msra.mxu1 %v9318_v5  ;;  %v9398_v52 = vcombine.low %v858_v43, %v866_v49  ;;  %v9413_v5 = vcombine.high %v873_v55, %v881_v62  ;;  %v946_v43 = vld [vmem:[#allocation2 + $0x11f8] sm:$0xff] }
 0x37c   :  { %8310 = vmatprep.subr.bf16.mxu0 %v9333_v36  ;;  %8594 = vmatprep.subr.bf16.mxu1 %v9335_v1  ;;  %v9415_v36 = vcombine.high %v874_v35, %v882_v0  ;;  %v889_v1 = vld [vmem:[#allocation2 + $0x1030] sm:$0xff]  ;;  %v954_v55 = vld [vmem:[#allocation2 + $0x1238] sm:$0xff] }
 0x37d   :  { %v9428_v27 = vcombine.low %v889_v1, %v897_v44  ;;  %v962_v62 = vld [vmem:[#allocation2 + $0x1278] sm:$0xff] }
 0x37f   :  { %8311 = vmatpush1.bf16.msra.mxu0 %v9332_v9  ;;  %8595 = vmatpush1.bf16.msra.mxu1 %v9334_v15  ;;  %v9414_v9 = vcombine.low %v874_v35, %v882_v0  ;;  %v9429_v15 = vcombine.high %v889_v1, %v897_v44  ;;  %v978_v1 = vld [vmem:[#allocation2 + $0x12f8] sm:$0xff] }
 0x380   :  { %8312 = vmatprep.subr.bf16.mxu0 %v9349_v48  ;;  %8596 = vmatprep.subr.bf16.mxu1 %v9351_v19  ;;  %v9431_v48 = vcombine.high %v890_v63, %v898_v40  ;;  %v905_v19 = vld [vmem:[#allocation2 + $0x10b0] sm:$0xff] }
 0x381   :  { %v9444_v59 = vcombine.low %v905_v19, %v913_v20 }
 0x383   :  { %8313 = vmatpush1.bf16.msra.mxu0 %v9348_v7  ;;  %8597 = vmatpush1.bf16.msra.mxu1 %v9350_v28  ;;  %v9430_v7 = vcombine.low %v890_v63, %v898_v40  ;;  %v9445_v28 = vcombine.high %v905_v19, %v913_v20  ;;  %v9494_v63 = vcombine.low %v954_v55, %v962_v62 }
 0x384   :  { %8314 = vmatprep.subr.bf16.mxu0 %v9365_v22  ;;  %8598 = vmatprep.subr.bf16.mxu1 %v9367_v8  ;;  %v9447_v22 = vcombine.high %v906_v10, %v914_v14  ;;  %v921_v8 = vld [vmem:[#allocation2 + $0x1130] sm:$0xff] }
 0x385   :  { %v9460_v49 = vcombine.low %v921_v8, %v929_v25 }
 0x387   :  { %8315 = vmatpush1.bf16.msra.mxu0 %v9364_v58  ;;  %8599 = vmatpush1.bf16.msra.mxu1 %v9366_v31  ;;  %v9446_v58 = vcombine.low %v906_v10, %v914_v14  ;;  %v9461_v31 = vcombine.high %v921_v8, %v929_v25  ;;  %v1001_v14 = vld [vmem:[#allocation2 + $0x13b0] sm:$0xff] }
 0x388   :  { %8316 = vmatprep.subr.bf16.mxu0 %v9381_v18  ;;  %8600 = vmatprep.subr.bf16.mxu1 %v9383_v39  ;;  %v9463_v18 = vcombine.high %v922_v26, %v930_v51  ;;  %v937_v39 = vld [vmem:[#allocation2 + $0x11b0] sm:$0xff] }
 0x389   :  { %v9476_v35 = vcombine.low %v937_v39, %v945_v30 }
 0x38b   :  { %8317 = vmatpush1.bf16.msra.mxu0 %v9380_v33  ;;  %8601 = vmatpush1.bf16.msra.mxu1 %v9382_v12  ;;  %v9477_v33 = vcombine.high %v937_v39, %v945_v30  ;;  %v9479_v12 = vcombine.high %v938_v47, %v946_v43  ;;  %v1033_v30 = vld [vmem:[#allocation2 + $0x14b0] sm:$0xff] }
 0x38c   :  { %8318 = vmatprep.subr.bf16.mxu0 %v9397_v56  ;;  %8602 = vmatprep.subr.bf16.mxu1 %v9399_v34  ;;  %v953_v56 = vld [vmem:[#allocation2 + $0x1230] sm:$0xff] }
 0x38d   :  { %v961_v34 = vld [vmem:[#allocation2 + $0x1270] sm:$0xff] }
 0x38e   :  { %v9493_v0 = vcombine.high %v953_v56, %v961_v34  ;;  %v9492_v44 = vcombine.low %v953_v56, %v961_v34  ;;  %v1049_v56 = vld [vmem:[#allocation2 + $0x1530] sm:$0xff] }
 0x38f   :  { %8319 = vmatpush1.bf16.msra.mxu0 %v9396_v61  ;;  %8603 = vmatpush1.bf16.msra.mxu1 %v9398_v52  ;;  %v9495_v61 = vcombine.high %v954_v55, %v962_v62  ;;  %v969_v52 = vld [vmem:[#allocation2 + $0x12b0] sm:$0xff]  ;;  %v1050_v55 = vld [vmem:[#allocation2 + $0x1538] sm:$0xff] }
 0x390   :  { %8320 = vmatprep.subr.bf16.mxu0 %v9413_v5  ;;  %8604 = vmatprep.subr.bf16.mxu1 %v9415_v36  ;;  %v977_v5 = vld [vmem:[#allocation2 + $0x12f0] sm:$0xff]  ;;  %v970_v36 = vld [vmem:[#allocation2 + $0x12b8] sm:$0xff] }
 0x391   :  { %v9511_v40 = vcombine.high %v970_v36, %v978_v1  ;;  %v9508_v19 = vcombine.low %v969_v52, %v977_v5  ;;  %v1057_v34 = vld [vmem:[#allocation2 + $0x1570] sm:$0xff]  ;;  %v1058_v62 = vld [vmem:[#allocation2 + $0x1578] sm:$0xff] }
 0x393   :  { %8321 = vmatpush1.bf16.msra.mxu0 %v9412_v6  ;;  %8605 = vmatpush1.bf16.msra.mxu1 %v9414_v9  ;;  %v985_v6 = vld [vmem:[#allocation2 + $0x1330] sm:$0xff] }
 0x394   :  { %8361 = vmatprep.subr.bf16.mxu0 %v9429_v15  ;;  %8645 = vmatprep.subr.bf16.mxu1 %v9431_v48  ;;  %v993_v9 = vld [vmem:[#allocation2 + $0x1370] sm:$0xff]  ;;  %v986_v15 = vld [vmem:[#allocation2 + $0x1338] sm:$0xff] }
 0x395   :  { %v994_v48 = vld [vmem:[#allocation2 + $0x1378] sm:$0xff]  ;;  %v9525_v20 = vcombine.high %v985_v6, %v993_v9 }
 0x396   :  { %8323 = vmatmul.mubr.bf16.vlgmr.msra.gmra.mrb[48].mxu0 %v10573_v41  ;;  %8607 = vmatmul.mubr.bf16.vlgmr.msra.gmra.mrb[48].mxu1 %v10573_v41  ;;  %v9462_v41 = vcombine.low %v922_v26, %v930_v51  ;;  %v9527_v10 = vcombine.high %v986_v15, %v994_v48  ;;  %v9526_v8 = vcombine.low %v986_v15, %v994_v48  ;;  %v1017_v26 = vld [vmem:[#allocation2 + $0x1430] sm:$0xff]  ;;  %v1090_v15 = vld [vmem:[#allocation2 + $0x1678] sm:$0xff] }
 0x397   :  { %8362 = vmatpush1.bf16.msra.mxu0 %v9428_v27  ;;  %8646 = vmatpush1.bf16.msra.mxu1 %v9430_v7  ;;  %v1009_v27 = vld [vmem:[#allocation2 + $0x13f0] sm:$0xff]  ;;  %v1002_v7 = vld [vmem:[#allocation2 + $0x13b8] sm:$0xff] }
 0x398   :  { %8363 = vmatprep.subr.bf16.mxu0 %v9445_v28  ;;  %8647 = vmatprep.subr.bf16.mxu1 %v9447_v22  ;;  %v1010_v28 = vld [vmem:[#allocation2 + $0x13f8] sm:$0xff]  ;;  %v9524_v22 = vcombine.low %v985_v6, %v993_v9  ;;  %v1025_v51 = vld [vmem:[#allocation2 + $0x1470] sm:$0xff] }
 0x399   :  { %8332 = vmatprep.mubr.bf16.mxu0 %v10583_v57  ;;  %8616 = vmatprep.mubr.bf16.mxu1 %v10583_v57  ;;  %v9478_v57 = vcombine.low %v938_v47, %v946_v43  ;;  %v9543_v25 = vcombine.high %v1002_v7, %v1010_v28  ;;  %v1041_v47 = vld [vmem:[#allocation2 + $0x14f0] sm:$0xff]  ;;  %v1034_v43 = vld [vmem:[#allocation2 + $0x14b8] sm:$0xff] }
 0x39a   :  { %v1089_v6 = vld [vmem:[#allocation2 + $0x1670] sm:$0xff]  ;;  %v1082_v9 = vld [vmem:[#allocation2 + $0x1638] sm:$0xff] }
 0x39b   :  { %8364 = vmatpush1.bf16.msra.mxu0 %v9444_v59  ;;  %8648 = vmatpush1.bf16.msra.mxu1 %v9446_v58  ;;  %v1018_v59 = vld [vmem:[#allocation2 + $0x1438] sm:$0xff] }
 0x39c   :  { %8365 = vmatprep.subr.bf16.mxu0 %v9461_v31  ;;  %8649 = vmatprep.subr.bf16.mxu1 %v9463_v18  ;;  %v1026_v58 = vld [vmem:[#allocation2 + $0x1478] sm:$0xff]  ;;  %v9540_v31 = vcombine.low %v1001_v14, %v1009_v27  ;;  %v9557_v18 = vcombine.high %v1017_v26, %v1025_v51 }
 0x39d   :  { %v9559_v39 = vcombine.high %v1018_v59, %v1026_v58 }
 0x39e   :  { %8333 = vmatmul.mubr.bf16.gmra.mrb[52].mxu0 %v10598_v23  ;;  %8617 = vmatmul.mubr.bf16.gmra.mrb[52].mxu1 %v10598_v23  ;;  %v9509_v23 = vcombine.high %v969_v52, %v977_v5  ;;  %v1073_v52 = vld [vmem:[#allocation2 + $0x15f0] sm:$0xff]  ;;  %v1066_v5 = vld [vmem:[#allocation2 + $0x15b8] sm:$0xff] }
 0x39f   :  { %8366 = vmatpush1.bf16.msra.mxu0 %v9460_v49  ;;  %8650 = vmatpush1.bf16.msra.mxu1 %v9462_v41  ;;  %v1042_v49 = vld [vmem:[#allocation2 + $0x14f8] sm:$0xff]  ;;  %v9556_v41 = vcombine.low %v1017_v26, %v1025_v51  ;;  %v1121_v26 = vld [vmem:[#allocation2 + $0x1770] sm:$0xff] }
 0x3a0   :  { %8367 = vmatprep.subr.bf16.mxu0 %v9477_v33  ;;  %8651 = vmatprep.subr.bf16.mxu1 %v9479_v12  ;;  %v9558_v33 = vcombine.low %v1018_v59, %v1026_v58  ;;  %v9575_v12 = vcombine.high %v1034_v43, %v1042_v49  ;;  %v1114_v51 = vld [vmem:[#allocation2 + $0x1738] sm:$0xff] }
 0x3a1   :  { %8342 = vmatprep.mubr.bf16.mxu0 %v10605_v38  ;;  %8626 = vmatprep.mubr.bf16.mxu1 %v10605_v38  ;;  %v9510_v38 = vcombine.low %v970_v36, %v978_v1  ;;  %v1074_v36 = vld [vmem:[#allocation2 + $0x15f8] sm:$0xff]  ;;  %v9588_v1 = vcombine.low %v1049_v56, %v1057_v34 }
 0x3a2   :  { %v1122_v59 = vld [vmem:[#allocation2 + $0x1778] sm:$0xff] }
 0x3a3   :  { %8368 = vmatpush1.bf16.msra.mxu0 %v9476_v35  ;;  %8652 = vmatpush1.bf16.msra.mxu1 %v9478_v57  ;;  %v9572_v35 = vcombine.low %v1033_v30, %v1041_v47  ;;  %v9574_v57 = vcombine.low %v1034_v43, %v1042_v49  ;;  %v1138_v43 = vld [vmem:[#allocation2 + $0x17f8] sm:$0xff] }
 0x3a4   :  { %8369 = vmatprep.subr.bf16.mxu0 %v9493_v0  ;;  %8653 = vmatprep.subr.bf16.mxu1 %v9495_v61  ;;  %v9589_v0 = vcombine.high %v1049_v56, %v1057_v34  ;;  %v1065_v61 = vld [vmem:[#allocation2 + $0x15b0] sm:$0xff]  ;;  %v1146_v34 = vld [vmem:[#allocation2 + $0x1838] sm:$0xff] }
 0x3a5   :  { %v9604_v48 = vcombine.low %v1065_v61, %v1073_v52  ;;  %v1153_v56 = vld [vmem:[#allocation2 + $0x1870] sm:$0xff] }
 0x3a6   :  { %8343 = vmatmul.mubr.bf16.gmra.mrb[56].mxu0 %v10632_v60  ;;  %8627 = vmatmul.mubr.bf16.gmra.mrb[56].mxu1 %v10632_v60  ;;  %v9541_v60 = vcombine.high %v1001_v14, %v1009_v27  ;;  %v1105_v14 = vld [vmem:[#allocation2 + $0x16f0] sm:$0xff]  ;;  %v1098_v27 = vld [vmem:[#allocation2 + $0x16b8] sm:$0xff] }
 0x3a7   :  { %8370 = vmatpush1.bf16.msra.mxu0 %v9492_v44  ;;  %8654 = vmatpush1.bf16.msra.mxu1 %v9494_v63  ;;  %v9590_v44 = vcombine.low %v1050_v55, %v1058_v62  ;;  %v9605_v63 = vcombine.high %v1065_v61, %v1073_v52  ;;  %v1169_v61 = vld [vmem:[#allocation2 + $0x18f0] sm:$0xff]  ;;  %v1162_v52 = vld [vmem:[#allocation2 + $0x18b8] sm:$0xff] }
 0x3a8   :  { %8371 = vmatprep.subr.bf16.mxu0 %v9509_v23  ;;  %8655 = vmatprep.subr.bf16.mxu1 %v9511_v40  ;;  %v9607_v23 = vcombine.high %v1066_v5, %v1074_v36  ;;  %v1081_v40 = vld [vmem:[#allocation2 + $0x1630] sm:$0xff] }
 0x3a9   :  { %8352 = vmatprep.mubr.bf16.mxu0 %v10635_v11  ;;  %8636 = vmatprep.mubr.bf16.mxu1 %v10635_v11  ;;  %v9542_v11 = vcombine.low %v1002_v7, %v1010_v28  ;;  %v1106_v7 = vld [vmem:[#allocation2 + $0x16f8] sm:$0xff]  ;;  %v9620_v28 = vcombine.low %v1081_v40, %v1089_v6 }
 0x3ab   :  { %8372 = vmatpush1.bf16.msra.mxu0 %v9508_v19  ;;  %8656 = vmatpush1.bf16.msra.mxu1 %v9510_v38  ;;  %v9606_v19 = vcombine.low %v1066_v5, %v1074_v36  ;;  %v9621_v38 = vcombine.high %v1081_v40, %v1089_v6  ;;  %v1170_v5 = vld [vmem:[#allocation2 + $0x18f8] sm:$0xff]  ;;  %v1185_v40 = vld [vmem:[#allocation2 + $0x1970] sm:$0xff] }
 0x3ac   :  { %8373 = vmatprep.subr.bf16.mxu0 %v9525_v20  ;;  %8657 = vmatprep.subr.bf16.mxu1 %v9527_v10  ;;  %v9623_v20 = vcombine.high %v1082_v9, %v1090_v15  ;;  %v1097_v10 = vld [vmem:[#allocation2 + $0x16b0] sm:$0xff]  ;;  %v1178_v6 = vld [vmem:[#allocation2 + $0x1938] sm:$0xff] }
 0x3ad   :  { %v9636_v58 = vcombine.low %v1097_v10, %v1105_v14 }
 0x3ae   :  { %8353 = vmatmul.mubr.bf16.gmra.mrb[60].mxu0 %v10643_v50  ;;  %8637 = vmatmul.mubr.bf16.gmra.mrb[60].mxu1 %v10643_v50  ;;  %v9573_v50 = vcombine.high %v1033_v30, %v1041_v47  ;;  %v1137_v30 = vld [vmem:[#allocation2 + $0x17f0] sm:$0xff]  ;;  %v1130_v47 = vld [vmem:[#allocation2 + $0x17b8] sm:$0xff] }
 0x3af   :  { %8374 = vmatpush1.bf16.msra.mxu0 %v9524_v22  ;;  %8658 = vmatpush1.bf16.msra.mxu1 %v9526_v8  ;;  %v9622_v22 = vcombine.low %v1082_v9, %v1090_v15  ;;  %v9637_v8 = vcombine.high %v1097_v10, %v1105_v14  ;;  %v1186_v9 = vld [vmem:[#allocation2 + $0x1978] sm:$0xff]  ;;  %v1201_v10 = vld [vmem:[#allocation2 + $0x19f0] sm:$0xff] }
 0x3b0   :  { %8375 = vmatprep.subr.bf16.mxu0 %v9541_v60  ;;  %8659 = vmatprep.subr.bf16.mxu1 %v9543_v25  ;;  %v9639_v60 = vcombine.high %v1098_v27, %v1106_v7  ;;  %v1113_v25 = vld [vmem:[#allocation2 + $0x1730] sm:$0xff]  ;;  %v1194_v14 = vld [vmem:[#allocation2 + $0x19b8] sm:$0xff] }
 0x3b1   :  { %8393 = vmatprep.mubr.bf16.mxu0 %v10645_v42  ;;  %8677 = vmatprep.mubr.bf16.mxu1 %v10645_v42  ;;  %v9591_v42 = vcombine.high %v1050_v55, %v1058_v62  ;;  %v9652_v49 = vcombine.low %v1113_v25, %v1121_v26  ;;  %v1154_v55 = vld [vmem:[#allocation2 + $0x1878] sm:$0xff] }
 0x3b3   :  { %8376 = vmatpush1.bf16.msra.mxu0 %v9540_v31  ;;  %8660 = vmatpush1.bf16.msra.mxu1 %v9542_v11  ;;  %v9638_v31 = vcombine.low %v1098_v27, %v1106_v7  ;;  %v9653_v11 = vcombine.high %v1113_v25, %v1121_v26  ;;  %v1202_v27 = vld [vmem:[#allocation2 + $0x19f8] sm:$0xff] }
 0x3b4   :  { %8377 = vmatprep.subr.bf16.mxu0 %v9557_v18  ;;  %8661 = vmatprep.subr.bf16.mxu1 %v9559_v39  ;;  %v9655_v18 = vcombine.high %v1114_v51, %v1122_v59  ;;  %v1129_v39 = vld [vmem:[#allocation2 + $0x17b0] sm:$0xff]  ;;  %v1210_v25 = vld [vmem:[#allocation2 + $0x1a38] sm:$0xff] }
 0x3b5   :  { %v9668_v62 = vcombine.low %v1129_v39, %v1137_v30  ;;  %v1218_v26 = vld [vmem:[#allocation2 + $0x1a78] sm:$0xff] }
 0x3b7   :  { %8378 = vmatpush1.bf16.msra.mxu0 %v9556_v41  ;;  %8662 = vmatpush1.bf16.msra.mxu1 %v9558_v33  ;;  %v9654_v41 = vcombine.low %v1114_v51, %v1122_v59  ;;  %v9669_v33 = vcombine.high %v1129_v39, %v1137_v30  ;;  %v1234_v39 = vld [vmem:[#allocation2 + $0x1af8] sm:$0xff] }
 0x3b8   :  { %8379 = vmatprep.subr.bf16.mxu0 %v9573_v50  ;;  %8663 = vmatprep.subr.bf16.mxu1 %v9575_v12  ;;  %v9671_v50 = vcombine.high %v1130_v47, %v1138_v43  ;;  %v1145_v12 = vld [vmem:[#allocation2 + $0x1830] sm:$0xff] }
 0x3b9   :  { %v9684_v36 = vcombine.low %v1145_v12, %v1153_v56 }
 0x3bb   :  { %8380 = vmatpush1.bf16.msra.mxu0 %v9572_v35  ;;  %8664 = vmatpush1.bf16.msra.mxu1 %v9574_v57  ;;  %v9670_v35 = vcombine.low %v1130_v47, %v1138_v43  ;;  %v9685_v57 = vcombine.high %v1145_v12, %v1153_v56  ;;  %v9750_v47 = vcombine.low %v1210_v25, %v1218_v26 }
 0x3bc   :  { %8381 = vmatprep.subr.bf16.mxu0 %v9589_v0  ;;  %8665 = vmatprep.subr.bf16.mxu1 %v9591_v42  ;;  %v9687_v0 = vcombine.high %v1146_v34, %v1154_v55  ;;  %v1161_v42 = vld [vmem:[#allocation2 + $0x18b0] sm:$0xff] }
 0x3bd   :  { %v9700_v15 = vcombine.low %v1161_v42, %v1169_v61 }
 0x3bf   :  { %8382 = vmatpush1.bf16.msra.mxu0 %v9588_v1  ;;  %8666 = vmatpush1.bf16.msra.mxu1 %v9590_v44  ;;  %v9686_v1 = vcombine.low %v1146_v34, %v1154_v55  ;;  %v9701_v44 = vcombine.high %v1161_v42, %v1169_v61  ;;  %v1258_v42 = vld [vmem:[#allocation2 + $0x1bb8] sm:$0xff] }
 0x3c0   :  { %8383 = vmatprep.subr.bf16.mxu0 %v9605_v63  ;;  %8667 = vmatprep.subr.bf16.mxu1 %v9607_v23  ;;  %v9703_v63 = vcombine.high %v1162_v52, %v1170_v5  ;;  %v1177_v23 = vld [vmem:[#allocation2 + $0x1930] sm:$0xff]  ;;  %v1266_v61 = vld [vmem:[#allocation2 + $0x1bf8] sm:$0xff] }
 0x3c1   :  { %v9716_v7 = vcombine.low %v1177_v23, %v1185_v40 }
 0x3c3   :  { %8384 = vmatpush1.bf16.msra.mxu0 %v9604_v48  ;;  %8668 = vmatpush1.bf16.msra.mxu1 %v9606_v19  ;;  %v9702_v48 = vcombine.low %v1162_v52, %v1170_v5  ;;  %v9717_v19 = vcombine.high %v1177_v23, %v1185_v40  ;;  %v9799_v23 = vcombine.high %v1258_v42, %v1266_v61  ;;  %v1273_v40 = vld [vmem:[#allocation2 + $0x1c30] sm:$0xff] }
 0x3c4   :  { %8385 = vmatprep.subr.bf16.mxu0 %v9621_v38  ;;  %8669 = vmatprep.subr.bf16.mxu1 %v9623_v20  ;;  %v9719_v38 = vcombine.high %v1178_v6, %v1186_v9  ;;  %v1193_v20 = vld [vmem:[#allocation2 + $0x19b0] sm:$0xff] }
 0x3c5   :  { %v9732_v51 = vcombine.low %v1193_v20, %v1201_v10 }
 0x3c7   :  { %8386 = vmatpush1.bf16.msra.mxu0 %v9620_v28  ;;  %8670 = vmatpush1.bf16.msra.mxu1 %v9622_v22  ;;  %v9733_v28 = vcombine.high %v1193_v20, %v1201_v10  ;;  %v9735_v22 = vcombine.high %v1194_v14, %v1202_v27 }
 0x3c8   :  { %8387 = vmatprep.subr.bf16.mxu0 %v9637_v8  ;;  %8671 = vmatprep.subr.bf16.mxu1 %v9639_v60  ;;  %v1209_v8 = vld [vmem:[#allocation2 + $0x1a30] sm:$0xff] }
 0x3c9   :  { %v1217_v60 = vld [vmem:[#allocation2 + $0x1a70] sm:$0xff] }
 0x3ca   :  { %v9749_v59 = vcombine.high %v1209_v8, %v1217_v60  ;;  %v9748_v30 = vcombine.low %v1209_v8, %v1217_v60 }
 0x3cb   :  { %8388 = vmatpush1.bf16.msra.mxu0 %v9636_v58  ;;  %8672 = vmatpush1.bf16.msra.mxu1 %v9638_v31  ;;  %v9751_v58 = vcombine.high %v1210_v25, %v1218_v26  ;;  %v1225_v31 = vld [vmem:[#allocation2 + $0x1ab0] sm:$0xff] }
 0x3cc   :  { %8389 = vmatprep.subr.bf16.mxu0 %v9653_v11  ;;  %8673 = vmatprep.subr.bf16.mxu1 %v9655_v18  ;;  %v1233_v11 = vld [vmem:[#allocation2 + $0x1af0] sm:$0xff]  ;;  %v1226_v18 = vld [vmem:[#allocation2 + $0x1ab8] sm:$0xff] }
 0x3cd   :  { %v9767_v43 = vcombine.high %v1226_v18, %v1234_v39  ;;  %v9764_v12 = vcombine.low %v1225_v31, %v1233_v11 }
 0x3cf   :  { %8390 = vmatpush1.bf16.msra.mxu0 %v9652_v49  ;;  %8674 = vmatpush1.bf16.msra.mxu1 %v9654_v41  ;;  %v1241_v49 = vld [vmem:[#allocation2 + $0x1b30] sm:$0xff] }
 0x3d0   :  { %8391 = vmatprep.subr.bf16.mxu0 %v9669_v33  ;;  %8675 = vmatprep.subr.bf16.mxu1 %v9671_v50  ;;  %v1249_v41 = vld [vmem:[#allocation2 + $0x1b70] sm:$0xff]  ;;  %v1242_v33 = vld [vmem:[#allocation2 + $0x1b38] sm:$0xff] }
 0x3d1   :  { %v1250_v50 = vld [vmem:[#allocation2 + $0x1b78] sm:$0xff]  ;;  %v9781_v56 = vcombine.high %v1241_v49, %v1249_v41  ;;  %v9780_v5 = vcombine.low %v1241_v49, %v1249_v41  ;;  %v1321_v49 = vld [vmem:[#allocation2 + $0x1db0] sm:$0xff] }
 0x3d2   :  { %v9783_v55 = vcombine.high %v1242_v33, %v1250_v50  ;;  %v1329_v41 = vld [vmem:[#allocation2 + $0x1df0] sm:$0xff] }
 0x3d3   :  { %8392 = vmatpush1.bf16.msra.mxu0 %v9668_v62  ;;  %8676 = vmatpush1.bf16.msra.mxu1 %v9670_v35  ;;  %v1257_v62 = vld [vmem:[#allocation2 + $0x1bb0] sm:$0xff] }
 0x3d4   :  { %8432 = vmatprep.subr.bf16.mxu0 %v9685_v57  ;;  %8716 = vmatprep.subr.bf16.mxu1 %v9687_v0  ;;  %v1265_v35 = vld [vmem:[#allocation2 + $0x1bf0] sm:$0xff] }
 0x3d6   :  { %8394 = vmatmul.mubr.bf16.vlgmr.msra.gmra.mrb[48].mxu0 %v10699_v4  ;;  %8678 = vmatmul.mubr.bf16.vlgmr.msra.gmra.mrb[48].mxu1 %v10699_v4  ;;  %v9718_v4 = vcombine.low %v1178_v6, %v1186_v9  ;;  %v1281_v6 = vld [vmem:[#allocation2 + $0x1c70] sm:$0xff]  ;;  %v1274_v9 = vld [vmem:[#allocation2 + $0x1c38] sm:$0xff] }
 0x3d7   :  { %8433 = vmatpush1.bf16.msra.mxu0 %v9684_v36  ;;  %8717 = vmatpush1.bf16.msra.mxu1 %v9686_v1  ;;  %v9782_v1 = vcombine.low %v1242_v33, %v1250_v50  ;;  %v9812_v60 = vcombine.low %v1273_v40, %v1281_v6 }
 0x3d8   :  { %8434 = vmatprep.subr.bf16.mxu0 %v9701_v44  ;;  %8718 = vmatprep.subr.bf16.mxu1 %v9703_v63  ;;  %v9797_v44 = vcombine.high %v1257_v62, %v1265_v35 }
 0x3d9   :  { %8403 = vmatprep.mubr.bf16.mxu0 %v10709_v24  ;;  %8687 = vmatprep.mubr.bf16.mxu1 %v10709_v24  ;;  %v9734_v24 = vcombine.low %v1194_v14, %v1202_v27  ;;  %v1289_v14 = vld [vmem:[#allocation2 + $0x1cb0] sm:$0xff] }
 0x3da   :  { %v1297_v27 = vld [vmem:[#allocation2 + $0x1cf0] sm:$0xff] }
 0x3db   :  { %8435 = vmatpush1.bf16.msra.mxu0 %v9700_v15  ;;  %8719 = vmatpush1.bf16.msra.mxu1 %v9702_v48  ;;  %v1282_v15 = vld [vmem:[#allocation2 + $0x1c78] sm:$0xff]  ;;  %v9796_v48 = vcombine.low %v1257_v62, %v1265_v35 }
 0x3dc   :  { %8436 = vmatprep.subr.bf16.mxu0 %v9717_v19  ;;  %8720 = vmatprep.subr.bf16.mxu1 %v9719_v38  ;;  %v9798_v19 = vcombine.low %v1258_v42, %v1266_v61  ;;  %v9813_v38 = vcombine.high %v1273_v40, %v1281_v6  ;;  %v9815_v10 = vcombine.high %v1274_v9, %v1282_v15  ;;  %v1353_v40 = vld [vmem:[#allocation2 + $0x1eb0] sm:$0xff] }
 0x3dd   :  { %v9814_v26 = vcombine.low %v1274_v9, %v1282_v15  ;;  %v1361_v6 = vld [vmem:[#allocation2 + $0x1ef0] sm:$0xff] }
 0x3de   :  { %8404 = vmatmul.mubr.bf16.gmra.mrb[52].mxu0 %v10724_v54  ;;  %8688 = vmatmul.mubr.bf16.gmra.mrb[52].mxu1 %v10724_v54  ;;  %v9765_v54 = vcombine.high %v1225_v31, %v1233_v11  ;;  %v1313_v31 = vld [vmem:[#allocation2 + $0x1d70] sm:$0xff]  ;;  %v1306_v11 = vld [vmem:[#allocation2 + $0x1d38] sm:$0xff] }
 0x3df   :  { %8437 = vmatpush1.bf16.msra.mxu0 %v9716_v7  ;;  %8721 = vmatpush1.bf16.msra.mxu1 %v9718_v4 }
 0x3e0   :  { %8438 = vmatprep.subr.bf16.mxu0 %v9733_v28  ;;  %8722 = vmatprep.subr.bf16.mxu1 %v9735_v22  ;;  %v1290_v28 = vld [vmem:[#allocation2 + $0x1cb8] sm:$0xff] }
 0x3e1   :  { %8413 = vmatprep.mubr.bf16.mxu0 %v10731_v16  ;;  %8697 = vmatprep.mubr.bf16.mxu1 %v10731_v16  ;;  %v9766_v16 = vcombine.low %v1226_v18, %v1234_v39  ;;  %v1298_v22 = vld [vmem:[#allocation2 + $0x1cf8] sm:$0xff]  ;;  %v9828_v39 = vcombine.low %v1289_v14, %v1297_v27 }
 0x3e2   :  { %v1314_v18 = vld [vmem:[#allocation2 + $0x1d78] sm:$0xff] }
 0x3e3   :  { %8439 = vmatpush1.bf16.msra.mxu0 %v9732_v51  ;;  %8723 = vmatpush1.bf16.msra.mxu1 %v9734_v24  ;;  %v9829_v51 = vcombine.high %v1289_v14, %v1297_v27 }
 0x3e4   :  { %8440 = vmatprep.subr.bf16.mxu0 %v9749_v59  ;;  %8724 = vmatprep.subr.bf16.mxu1 %v9751_v58  ;;  %v9831_v59 = vcombine.high %v1290_v28, %v1298_v22  ;;  %v1305_v58 = vld [vmem:[#allocation2 + $0x1d30] sm:$0xff] }
 0x3e6   :  { %8414 = vmatmul.mubr.bf16.gmra.mrb[56].mxu0 %v10753_v46  ;;  %8698 = vmatmul.mubr.bf16.gmra.mrb[56].mxu1 %v10753_v46 }
 0x3e7   :  { %8441 = vmatpush1.bf16.msra.mxu0 %v9748_v30  ;;  %8725 = vmatpush1.bf16.msra.mxu1 %v9750_v47  ;;  %v9830_v30 = vcombine.low %v1290_v28, %v1298_v22  ;;  %v9845_v47 = vcombine.high %v1305_v58, %v1313_v31 }
 0x3e8   :  { %8442 = vmatprep.subr.bf16.mxu0 %v9765_v54  ;;  %8726 = vmatprep.subr.bf16.mxu1 %v9767_v43  ;;  %v9847_v43 = vcombine.high %v1306_v11, %v1314_v18 }
 0x3e9   :  { %v7898_v34 = vpop.f32.mrb[32].mxu0  ;;  %8423 = vmatprep.mubr.bf16.mxu0 %v10756_v53  ;;  %v8182_v57 = vpop.f32.mrb[32].mxu1  ;;  %8707 = vmatprep.mubr.bf16.mxu1 %v10756_v53 }
 0x3ea   :  { %8795 = vst [vmem:[%s11399_s4 + $0x40] sm:$0xff] %v7898_v34  ;;  %v7900_v0 = vpop.f32.mrb[33].mxu0  ;;  %8797 = vst [vmem:[%s11399_s4 + $0x50] sm:$0xff] %v8182_v57  ;;  %v8184_v46 = vpop.f32.mrb[33].mxu1  ;;  %v9846_v57 = vcombine.low %v1306_v11, %v1314_v18  ;;  %v1394_v11 = vld [vmem:[#allocation2 + $0x1ff8] sm:$0xff] }
 0x3eb   :  { %8796 = vst [vmem:[%s11399_s4 + $0x48] sm:$0xff] %v7900_v0  ;;  %v7902_v52 = vpop.f32.mrb[34].mxu0  ;;  %8443 = vmatpush1.bf16.msra.mxu0 %v9764_v12  ;;  %8798 = vst [vmem:[%s11399_s4 + $0x58] sm:$0xff] %v8184_v46  ;;  %v8186_v53 = vpop.f32.mrb[34].mxu1  ;;  %8727 = vmatpush1.bf16.msra.mxu1 %v9766_v16  ;;  %v1322_v12 = vld [vmem:[#allocation2 + $0x1db8] sm:$0xff]  ;;  %v9861_v0 = vcombine.high %v1321_v49, %v1329_v41  ;;  %v1337_v46 = vld [vmem:[#allocation2 + $0x1e30] sm:$0xff] }
 0x3ec   :  { %8811 = vst [vmem:[%s11399_s4 + $0xc0] sm:$0xff] %v7902_v52  ;;  %v7904_v36 = vpop.f32.mrb[35].mxu0  ;;  %8444 = vmatprep.subr.bf16.mxu0 %v9781_v56  ;;  %8813 = vst [vmem:[%s11399_s4 + $0xd0] sm:$0xff] %v8186_v53  ;;  %v8188_v63 = vpop.f32.mrb[35].mxu1  ;;  %8728 = vmatprep.subr.bf16.mxu1 %v9783_v55  ;;  %v1330_v16 = vld [vmem:[#allocation2 + $0x1df8] sm:$0xff]  ;;  %v9844_v55 = vcombine.low %v1305_v58, %v1313_v31  ;;  %v1345_v52 = vld [vmem:[#allocation2 + $0x1e70] sm:$0xff] }
 0x3ed   :  { %8812 = vst [vmem:[%s11399_s4 + $0xc8] sm:$0xff] %v7904_v36  ;;  %8814 = vst [vmem:[%s11399_s4 + $0xd8] sm:$0xff] %v8188_v63  ;;  %v9863_v61 = vcombine.high %v1322_v12, %v1330_v16  ;;  %v1346_v53 = vld [vmem:[#allocation2 + $0x1e78] sm:$0xff]  ;;  %v9860_v36 = vcombine.low %v1321_v49, %v1329_v41  ;;  %v1393_v58 = vld [vmem:[#allocation2 + $0x1ff0] sm:$0xff] }
 0x3ee   :  { %8424 = vmatmul.mubr.bf16.gmra.mrb[60].mxu0 %v10764_v21  ;;  %8708 = vmatmul.mubr.bf16.gmra.mrb[60].mxu1 %v10764_v21  ;;  %v1386_v31 = vld [vmem:[#allocation2 + $0x1fb8] sm:$0xff] }
 0x3ef   :  { %8445 = vmatpush1.bf16.msra.mxu0 %v9780_v5  ;;  %8729 = vmatpush1.bf16.msra.mxu1 %v9782_v1  ;;  %v1338_v5 = vld [vmem:[#allocation2 + $0x1e38] sm:$0xff]  ;;  %v9862_v1 = vcombine.low %v1322_v12, %v1330_v16 }
 0x3f0   :  { %8446 = vmatprep.subr.bf16.mxu0 %v9797_v44  ;;  %8730 = vmatprep.subr.bf16.mxu1 %v9799_v23  ;;  %v9877_v44 = vcombine.high %v1337_v46, %v1345_v52  ;;  %v9879_v23 = vcombine.high %v1338_v5, %v1346_v53 }
 0x3f1   :  { %v7908_v20 = vpop.f32.mrb[36].mxu0  ;;  %8464 = vmatprep.mubr.bf16.mxu0 %v10766_v29  ;;  %v8192_v7 = vpop.f32.mrb[36].mxu1  ;;  %8748 = vmatprep.mubr.bf16.mxu1 %v10766_v29 }
 0x3f2   :  { %8827 = vst [vmem:[%s11399_s4 + $0x140] sm:$0xff] %v7908_v20  ;;  %v7910_v4 = vpop.f32.mrb[37].mxu0  ;;  %8829 = vst [vmem:[%s11399_s4 + $0x150] sm:$0xff] %v8192_v7  ;;  %v8194_v21 = vpop.f32.mrb[37].mxu1  ;;  %v9878_v7 = vcombine.low %v1338_v5, %v1346_v53 }
 0x3f3   :  { %8828 = vst [vmem:[%s11399_s4 + $0x148] sm:$0xff] %v7910_v4  ;;  %v7912_v8 = vpop.f32.mrb[38].mxu0  ;;  %8447 = vmatpush1.bf16.msra.mxu0 %v9796_v48  ;;  %8830 = vst [vmem:[%s11399_s4 + $0x158] sm:$0xff] %v8194_v21  ;;  %v8196_v29 = vpop.f32.mrb[38].mxu1  ;;  %8731 = vmatpush1.bf16.msra.mxu1 %v9798_v19  ;;  %v1354_v48 = vld [vmem:[#allocation2 + $0x1eb8] sm:$0xff]  ;;  %v9893_v4 = vcombine.high %v1353_v40, %v1361_v6  ;;  %v1369_v21 = vld [vmem:[#allocation2 + $0x1f30] sm:$0xff] }
 0x3f4   :  { %8843 = vst [vmem:[%s11399_s4 + $0x1c0] sm:$0xff] %v7912_v8  ;;  %v7914_v25 = vpop.f32.mrb[39].mxu0  ;;  %8448 = vmatprep.subr.bf16.mxu0 %v9813_v38  ;;  %8845 = vst [vmem:[%s11399_s4 + $0x1d0] sm:$0xff] %v8196_v29  ;;  %v8198_v24 = vpop.f32.mrb[39].mxu1  ;;  %8732 = vmatprep.subr.bf16.mxu1 %v9815_v10  ;;  %v1362_v19 = vld [vmem:[#allocation2 + $0x1ef8] sm:$0xff]  ;;  %v9876_v10 = vcombine.low %v1337_v46, %v1345_v52  ;;  %v1377_v8 = vld [vmem:[#allocation2 + $0x1f70] sm:$0xff] }
 0x3f5   :  { %8844 = vst [vmem:[%s11399_s4 + $0x1c8] sm:$0xff] %v7914_v25  ;;  %8846 = vst [vmem:[%s11399_s4 + $0x1d8] sm:$0xff] %v8198_v24  ;;  %v9895_v22 = vcombine.high %v1354_v48, %v1362_v19  ;;  %v1378_v29 = vld [vmem:[#allocation2 + $0x1f78] sm:$0xff]  ;;  %v9892_v25 = vcombine.low %v1353_v40, %v1361_v6  ;;  %v9908_v18 = vcombine.low %v1369_v21, %v1377_v8 }
 0x3f7   :  { %8449 = vmatpush1.bf16.msra.mxu0 %v9812_v60  ;;  %8733 = vmatpush1.bf16.msra.mxu1 %v9814_v26  ;;  %v1370_v60 = vld [vmem:[#allocation2 + $0x1f38] sm:$0xff]  ;;  %v9894_v26 = vcombine.low %v1354_v48, %v1362_v19 }
 0x3f8   :  { %8450 = vmatprep.subr.bf16.mxu0 %v9829_v51  ;;  %8734 = vmatprep.subr.bf16.mxu1 %v9831_v59  ;;  %v9909_v51 = vcombine.high %v1369_v21, %v1377_v8  ;;  %v9911_v24 = vcombine.high %v1370_v60, %v1378_v29  ;;  %v1385_v59 = vld [vmem:[#allocation2 + $0x1fb0] sm:$0xff] }
 0x3f9   :  { %v7918_v54 = vpop.f32.mrb[40].mxu0  ;;  %v8202_v33 = vpop.f32.mrb[40].mxu1 }
 0x3fa   :  { %8859 = vst [vmem:[%s11399_s4 + $0x240] sm:$0xff] %v7918_v54  ;;  %v7920_v50 = vpop.f32.mrb[41].mxu0  ;;  %8861 = vst [vmem:[%s11399_s4 + $0x250] sm:$0xff] %v8202_v33  ;;  %v8204_v56 = vpop.f32.mrb[41].mxu1  ;;  %v9924_v54 = vcombine.low %v1385_v59, %v1393_v58 }
 0x3fb   :  { %8860 = vst [vmem:[%s11399_s4 + $0x248] sm:$0xff] %v7920_v50  ;;  %v7922_v34 = vpop.f32.mrb[42].mxu0  ;;  %8451 = vmatpush1.bf16.msra.mxu0 %v9828_v39  ;;  %8862 = vst [vmem:[%s11399_s4 + $0x258] sm:$0xff] %v8204_v56  ;;  %v8206_v62 = vpop.f32.mrb[42].mxu1  ;;  %8735 = vmatpush1.bf16.msra.mxu1 %v9830_v30  ;;  %v9910_v39 = vcombine.low %v1370_v60, %v1378_v29  ;;  %v9925_v30 = vcombine.high %v1385_v59, %v1393_v58 }
 0x3fc   :  { %8875 = vst [vmem:[%s11399_s4 + $0x2c0] sm:$0xff] %v7922_v34  ;;  %v7924_v35 = vpop.f32.mrb[43].mxu0  ;;  %8452 = vmatprep.subr.bf16.mxu0 %v9845_v47  ;;  %8877 = vst [vmem:[%s11399_s4 + $0x2d0] sm:$0xff] %v8206_v62  ;;  %v8208_v42 = vpop.f32.mrb[43].mxu1  ;;  %8736 = vmatprep.subr.bf16.mxu1 %v9847_v43  ;;  %v9927_v47 = vcombine.high %v1386_v31, %v1394_v11  ;;  %v9926_v43 = vcombine.low %v1386_v31, %v1394_v11 }
 0x3fd   :  { %8876 = vst [vmem:[%s11399_s4 + $0x2c8] sm:$0xff] %v7924_v35  ;;  %8878 = vst [vmem:[%s11399_s4 + $0x2d8] sm:$0xff] %v8208_v42 }
 0x3ff   :  { %8453 = vmatpush1.bf16.msra.mxu0 %v9844_v55  ;;  %8737 = vmatpush1.bf16.msra.mxu1 %v9846_v57 }
 0x400   :  { %8454 = vmatprep.subr.bf16.mxu0 %v9861_v0  ;;  %8738 = vmatprep.subr.bf16.mxu1 %v9863_v61 }
 0x401   :  { %v7928_v63 = vpop.f32.mrb[44].mxu0  ;;  %v8212_v9 = vpop.f32.mrb[44].mxu1 }
 0x402   :  { %8891 = vst [vmem:[%s11399_s4 + $0x340] sm:$0x1] %v7928_v63  ;;  %v7930_v15 = vpop.f32.mrb[45].mxu0  ;;  %8893 = vst [vmem:[%s11399_s4 + $0x350] sm:$0x1] %v8212_v9  ;;  %v8214_v38 = vpop.f32.mrb[45].mxu1 }
 0x403   :  { %8892 = vst [vmem:[%s11399_s4 + $0x348] sm:$0x1] %v7930_v15  ;;  %v7932_v20 = vpop.f32.mrb[46].mxu0  ;;  %8455 = vmatpush1.bf16.msra.mxu0 %v9860_v36  ;;  %8894 = vst [vmem:[%s11399_s4 + $0x358] sm:$0x1] %v8214_v38  ;;  %v8216_v14 = vpop.f32.mrb[46].mxu1  ;;  %8739 = vmatpush1.bf16.msra.mxu1 %v9862_v1 }
 0x404   :  { %v7933_v27 = vpop.f32.mrb[47].mxu0  ;;  %8456 = vmatprep.subr.bf16.mxu0 %v9877_v44  ;;  %v8217_v28 = vpop.f32.mrb[47].mxu1  ;;  %8740 = vmatprep.subr.bf16.mxu1 %v9879_v23 }
 0x407   :  { %8457 = vmatpush1.bf16.msra.mxu0 %v9876_v10  ;;  %8741 = vmatpush1.bf16.msra.mxu1 %v9878_v7 }
 0x408   :  { %8458 = vmatprep.subr.bf16.mxu0 %v9893_v4  ;;  %8742 = vmatprep.subr.bf16.mxu1 %v9895_v22 }
 0x40b   :  { %8459 = vmatpush1.bf16.msra.mxu0 %v9892_v25  ;;  %8743 = vmatpush1.bf16.msra.mxu1 %v9894_v26 }
 0x40c   :  { %8460 = vmatprep.subr.bf16.mxu0 %v9909_v51  ;;  %8744 = vmatprep.subr.bf16.mxu1 %v9911_v24 }
 0x40f   :  { %8461 = vmatpush1.bf16.msra.mxu0 %v9908_v18  ;;  %8745 = vmatpush1.bf16.msra.mxu1 %v9910_v39 }
 0x410   :  { %8462 = vmatprep.subr.bf16.mxu0 %v9925_v30  ;;  %8746 = vmatprep.subr.bf16.mxu1 %v9927_v47 }
 0x413   :  { %8463 = vmatpush1.bf16.msra.mxu0 %v9924_v54  ;;  %8747 = vmatpush1.bf16.msra.mxu1 %v9926_v43 }
 0x416   :  { %8465 = vmatmul.mubr.bf16.vlgmr.msra.gmra.mrb[48].mxu0 %v10815_v13  ;;  %8749 = vmatmul.mubr.bf16.vlgmr.msra.gmra.mrb[48].mxu1 %v10815_v13 }
 0x417   :  { %8474 = vmatprep.mubr.bf16.mxu0 %v10825_v37  ;;  %8758 = vmatprep.mubr.bf16.mxu1 %v10825_v37 }
 0x41e   :  { %8475 = vmatmul.mubr.bf16.gmra.mrb[52].mxu0 %v10839_v2  ;;  %8759 = vmatmul.mubr.bf16.gmra.mrb[52].mxu1 %v10839_v2 }
 0x41f   :  { %8484 = vmatprep.mubr.bf16.mxu0 %v10846_v45  ;;  %8768 = vmatprep.mubr.bf16.mxu1 %v10846_v45 }
 0x426   :  { %8485 = vmatmul.mubr.bf16.gmra.mrb[56].mxu0 %v10854_v3  ;;  %8769 = vmatmul.mubr.bf16.gmra.mrb[56].mxu1 %v10854_v3 }
 0x427   :  { %8494 = vmatprep.mubr.bf16.mxu0 %v10857_v17  ;;  %8778 = vmatprep.mubr.bf16.mxu1 %v10857_v17 }
 0x42e   :  { %8495 = vmatmul.mubr.bf16.gmra.mrb[60].mxu0 %v10863_v32  ;;  %8779 = vmatmul.mubr.bf16.gmra.mrb[60].mxu1 %v10863_v32 }
 0x4e9   :  { %v8466_v13 = vpop.f32.mrb[48].mxu0  ;;  %v8750_v37 = vpop.f32.mrb[48].mxu1 }
 0x4ea   :  { %8799 = vst [vmem:[%s11399_s4 + $0x60] sm:$0xff] %v8466_v13  ;;  %v8468_v2 = vpop.f32.mrb[49].mxu0  ;;  %8801 = vst [vmem:[%s11399_s4 + $0x70] sm:$0xff] %v8750_v37  ;;  %v8752_v45 = vpop.f32.mrb[49].mxu1 }
 0x4eb   :  { %8800 = vst [vmem:[%s11399_s4 + $0x68] sm:$0xff] %v8468_v2  ;;  %v8470_v3 = vpop.f32.mrb[50].mxu0  ;;  %8802 = vst [vmem:[%s11399_s4 + $0x78] sm:$0xff] %v8752_v45  ;;  %v8754_v17 = vpop.f32.mrb[50].mxu1 }
 0x4ec   :  { %8815 = vst [vmem:[%s11399_s4 + $0xe0] sm:$0xff] %v8470_v3  ;;  %v8472_v32 = vpop.f32.mrb[51].mxu0  ;;  %8817 = vst [vmem:[%s11399_s4 + $0xf0] sm:$0xff] %v8754_v17  ;;  %v8756_v49 = vpop.f32.mrb[51].mxu1 }
 0x4ed   :  { %8816 = vst [vmem:[%s11399_s4 + $0xe8] sm:$0xff] %v8472_v32  ;;  %8818 = vst [vmem:[%s11399_s4 + $0xf8] sm:$0xff] %v8756_v49 }
 0x4f1   :  { %v8476_v41 = vpop.f32.mrb[52].mxu0  ;;  %v8760_v33 = vpop.f32.mrb[52].mxu1 }
 0x4f2   :  { %8831 = vst [vmem:[%s11399_s4 + $0x160] sm:$0xff] %v8476_v41  ;;  %v8478_v50 = vpop.f32.mrb[53].mxu0  ;;  %8833 = vst [vmem:[%s11399_s4 + $0x170] sm:$0xff] %v8760_v33  ;;  %v8762_v12 = vpop.f32.mrb[53].mxu1 }
 0x4f3   :  { %8832 = vst [vmem:[%s11399_s4 + $0x168] sm:$0xff] %v8478_v50  ;;  %v8480_v16 = vpop.f32.mrb[54].mxu0  ;;  %8834 = vst [vmem:[%s11399_s4 + $0x178] sm:$0xff] %v8762_v12  ;;  %v8764_v56 = vpop.f32.mrb[54].mxu1 }
 0x4f4   :  { %8847 = vst [vmem:[%s11399_s4 + $0x1e0] sm:$0xff] %v8480_v16  ;;  %v8482_v34 = vpop.f32.mrb[55].mxu0  ;;  %8849 = vst [vmem:[%s11399_s4 + $0x1f0] sm:$0xff] %v8764_v56  ;;  %v8766_v55 = vpop.f32.mrb[55].mxu1 }
 0x4f5   :  { %8848 = vst [vmem:[%s11399_s4 + $0x1e8] sm:$0xff] %v8482_v34  ;;  %8850 = vst [vmem:[%s11399_s4 + $0x1f8] sm:$0xff] %v8766_v55 }
 0x4f9   :  { %v8486_v62 = vpop.f32.mrb[56].mxu0  ;;  %v8770_v35 = vpop.f32.mrb[56].mxu1 }
 0x4fa   :  { %8863 = vst [vmem:[%s11399_s4 + $0x260] sm:$0xff] %v8486_v62  ;;  %v8488_v57 = vpop.f32.mrb[57].mxu0  ;;  %8865 = vst [vmem:[%s11399_s4 + $0x270] sm:$0xff] %v8770_v35  ;;  %v8772_v0 = vpop.f32.mrb[57].mxu1 }
 0x4fb   :  { %8864 = vst [vmem:[%s11399_s4 + $0x268] sm:$0xff] %v8488_v57  ;;  %v8490_v42 = vpop.f32.mrb[58].mxu0  ;;  %8866 = vst [vmem:[%s11399_s4 + $0x278] sm:$0xff] %v8772_v0  ;;  %v8774_v61 = vpop.f32.mrb[58].mxu1 }
 0x4fc   :  { %8879 = vst [vmem:[%s11399_s4 + $0x2e0] sm:$0xff] %v8490_v42  ;;  %v8492_v46 = vpop.f32.mrb[59].mxu0  ;;  %8881 = vst [vmem:[%s11399_s4 + $0x2f0] sm:$0xff] %v8774_v61  ;;  %v8776_v52 = vpop.f32.mrb[59].mxu1 }
 0x4fd   :  { %8880 = vst [vmem:[%s11399_s4 + $0x2e8] sm:$0xff] %v8492_v46  ;;  %8882 = vst [vmem:[%s11399_s4 + $0x2f8] sm:$0xff] %v8776_v52 }
 0x501   :  { %v8496_v5 = vpop.f32.mrb[60].mxu0  ;;  %v8780_v53 = vpop.f32.mrb[60].mxu1 }
 0x502   :  { %8895 = vst [vmem:[%s11399_s4 + $0x360] sm:$0x1] %v8496_v5  ;;  %v8498_v36 = vpop.f32.mrb[61].mxu0  ;;  %8897 = vst [vmem:[%s11399_s4 + $0x370] sm:$0x1] %v8780_v53  ;;  %v8782_v1 = vpop.f32.mrb[61].mxu1 }
 0x503   :  { %8896 = vst [vmem:[%s11399_s4 + $0x368] sm:$0x1] %v8498_v36  ;;  %v8500_v44 = vpop.f32.mrb[62].mxu0  ;;  %8898 = vst [vmem:[%s11399_s4 + $0x378] sm:$0x1] %v8782_v1  ;;  %v8784_v63 = vpop.f32.mrb[62].mxu1 }
 0x504   :  { %v8501_v23 = vpop.f32.mrb[63].mxu0  ;;  %v8785_v40 = vpop.f32.mrb[63].mxu1 }
 0x505   :  { %8903 = vsyncpa [#allocation3], 1 }

</bundles_post_ra>
